<compile_context>
chip_gen: v6e
topology: v6e:2x2x1
jax: 0.10.0
libtpu: 0.0.40
codegen_flags: <defaults>
</compile_context>

<pallas_src>
import math

import jax
import jax.numpy as jnp
from jax import lax
from jax.experimental import pallas as pl
from jax.experimental.pallas import tpu as pltpu

SCALE_CLAMP = math.log(1000.0 / 16)  # Box2BoxTransform default scale clamp


def _round_up(x, m):
    return (x + m - 1) // m * m


def _padded_row_width(H, W):
    """Padded row width: >= W+2, multiple of 8, with H*Wp a multiple of 128."""
    Wp = _round_up(W + 2, 8)
    while (H * Wp) % 128:
        Wp += 8
    return Wp


# ----------------------------------------------------------------------------
# Fused RPN head + decode + clip kernel (one image per grid step)
# ----------------------------------------------------------------------------
def _make_rpn_kernel(H, W, C, A, Wp):
    assert Wp % 8 == 0 and Wp >= W + 2 and (H * Wp) % 128 == 0
    PL = 8 if Wp - W >= 8 else Wp - W           # left zero pad (>= 1)
    TAIL = Wp - PL - W                          # right in-row zero tail (>= 0)
    M = H * Wp                                  # slab rows (junk cols sliced off later)
    MAXOFF = 2 * Wp + 2 + (PL - 1)              # largest im2col tap row offset
    NPAD = _round_up(M + MAXOFF + 1, 8)         # scratch rows (covers all tap reads)
    INT0 = Wp                                   # first interior (written) scratch row
    INT1 = Wp + M                               # one past last interior scratch row

    def kernel(img_ref, x_ref, w3_ref, b3_ref, whT_ref, bhT_ref, anc_ref,
               out_ref, xpf_ref):
        # img_ref : SMEM (N, 2) int32, (h, w) per image   [scalar prefetch]
        # x_ref   : (1, H, W, C)  bf16 NHWC features (unpadded)
        # w3_ref  : (9*C, C)      bf16 3x3 conv weights, tap-major (ky*3+kx)
        # b3_ref  : (1, C)        f32 conv bias
        # whT_ref : (5A, C)       bf16 fused, transposed 1x1 heads
        #                         rows [0:A]=objectness, [A:5A]=dx|dy|dw|dh
        #                         (delta rows pre-scaled by 1/BBOX_REG_WEIGHTS)
        # bhT_ref : (5A, 1)       f32 fused head bias (same pre-scaling)
        # anc_ref : (4A, M)       f32 anchor constants widths|heights|cx|cy
        # out_ref : (1, 5A, M)    f32 merged output: logits | x1 | y1 | x2 | y2
        # xpf_ref : (NPAD, C)     f32 scratch: zero-padded row-flattened image
        b = pl.program_id(0)

        # -- stage 0: halo bands + widened, 8-aligned per-row stores ----------
        # (everything a tap can read is either freshly written or re-zeroed
        #  every grid step -> megacore-safe under the 'parallel' batch axis)
        xpf_ref[pl.ds(0, INT0), :] = jnp.zeros((INT0, C), jnp.float32)
        xpf_ref[pl.ds(INT1, NPAD - INT1), :] = (
            jnp.zeros((NPAD - INT1, C), jnp.float32))
        zl = jnp.zeros((PL, C), jnp.float32)
        zr = jnp.zeros((TAIL, C), jnp.float32) if TAIL else None
        for i in range(H):
            row = x_ref[0, i, :, :].astype(jnp.float32)          # (W, C)
            pieces = [zl, row] + ([zr] if TAIL else [])
            xpf_ref[pl.ds((i + 1) * Wp, Wp), :] = jnp.concatenate(pieces, axis=0)

        # -- stage 1: im2col slab + ONE whole-image MXU dot -------------------
        # tap (ky, kx) of output row m reads scratch row m + ky*Wp + kx + PL-1
        col = jnp.concatenate(
            [xpf_ref[pl.ds(ky * Wp + kx + PL - 1, M), :].astype(jnp.bfloat16)
             for ky in range(3) for kx in range(3)],
            axis=1)                                              # (M, 9C) bf16
        acc = jnp.dot(col, w3_ref[...],
                      preferred_element_type=jnp.float32)        # (M, C) f32
        act = jnp.maximum(acc + b3_ref[...], 0.0)                # bias + ReLU

        # -- stage 2: fused 1x1 heads, computed transposed --------------------
        # hwT[n, m] = sum_c whT[n, c] * act[m, c]  -> (5A, M), spatial on lanes
        hwT = lax.dot_general(
            whT_ref[...], act.astype(jnp.bfloat16),
            dimension_numbers=(((1,), (1,)), ((), ())),
            preferred_element_type=jnp.float32)
        hwT = hwT + bhT_ref[...]                                 # (5A, 1) broadcast

        # -- stage 3: stacked Box2BoxTransform.apply_deltas + Boxes.clip ------
        # reg-weight scaling is already folded into whT/bhT in the wrapper.
        d_xy = hwT[A:3 * A, :]                                   # dx | dy   (2A, M)
        d_wh = jnp.minimum(hwT[3 * A:5 * A, :], SCALE_CLAMP)     # dw | dh   (2A, M)
        size_wh = anc_ref[0:2 * A, :]                            # w  | h    (2A, M)
        ctr_xy = anc_ref[2 * A:4 * A, :]                         # cx | cy   (2A, M)

        p_ctr = d_xy * size_wh + ctr_xy
        half = 0.5 * jnp.exp(d_wh) * size_wh

        # image_sizes convention: (h, w) per image, like detectron2.
        h_img = img_ref[b, 0].astype(jnp.float32)
        w_img = img_ref[b, 1].astype(jnp.float32)
        rows = lax.broadcasted_iota(jnp.int32, (2 * A, 1), 0)
        bound = jnp.where(rows < A, w_img, h_img)                # x->w, y->h
        p1 = jnp.clip(p_ctr - half, 0.0, bound)                  # x1 | y1
        p2 = jnp.clip(p_ctr + half, 0.0, bound)                  # x2 | y2

        # single lane-dense (5A, M) store: logits | x1 | y1 | x2 | y2
        out_ref[0] = jnp.concatenate([hwT[0:A, :], p1, p2], axis=0)

    return kernel, M, NPAD


def rpn_head_decode(feat_nchw, image_sizes, params, anc, *, A, box_reg_weights, Wp):
    """Run the fused RPN kernel. Returns (logitsT (N,A,M), boxesT (N,4A,M))."""
    w3, b3, wo, bo, wd, bd = params
    N, C, H, W = feat_nchw.shape
    kernel, M, NPAD = _make_rpn_kernel(H, W, C, A, Wp)

    # NCHW -> NHWC, bf16 feature DMA
    x = jnp.transpose(feat_nchw, (0, 2, 3, 1)).astype(jnp.bfloat16)
    # (3,3,C,C) -> (9C, C), tap-major, bf16
    w3p = w3.reshape(9 * C, C).astype(jnp.bfloat16)
    # delta columns a*4+b -> coordinate-major b*A+a, fuse with objectness,
    # fold 1/BBOX_REG_WEIGHTS into the delta rows, transpose.
    wd_cm = wd.reshape(C, A, 4).transpose(0, 2, 1).reshape(C, 4 * A)
    bd_cm = bd.reshape(A, 4).transpose(1, 0).reshape(1, 4 * A)
    wh = jnp.concatenate([wo, wd_cm], axis=1)                      # (C, 5A)
    bh = jnp.concatenate([bo, bd_cm], axis=1)                      # (1, 5A)
    inv = jnp.concatenate(
        [jnp.ones((A,), jnp.float32)]
        + [jnp.full((A,), 1.0 / float(w_), jnp.float32) for w_ in box_reg_weights])
    whT = (wh * inv[None, :]).T.astype(jnp.bfloat16)               # (5A, C)
    bhT = (bh * inv[None, :]).T.astype(jnp.float32)                # (5A, 1)

    out = pl.pallas_call(
        kernel,
        out_shape=jax.ShapeDtypeStruct((N, 5 * A, M), jnp.float32),
        grid_spec=pltpu.PrefetchScalarGridSpec(
            num_scalar_prefetch=1,
            grid=(N,),
            in_specs=[
                pl.BlockSpec((1, H, W, C), lambda b, img: (b, 0, 0, 0)),
                pl.BlockSpec((9 * C, C), lambda b, img: (0, 0)),
                pl.BlockSpec((1, C), lambda b, img: (0, 0)),
                pl.BlockSpec((5 * A, C), lambda b, img: (0, 0)),
                pl.BlockSpec((5 * A, 1), lambda b, img: (0, 0)),
                pl.BlockSpec((4 * A, M), lambda b, img: (0, 0)),
            ],
            out_specs=pl.BlockSpec((1, 5 * A, M), lambda b, img: (b, 0, 0)),
            scratch_shapes=[pltpu.VMEM((NPAD, C), jnp.float32)],
        ),
        compiler_params=pltpu.CompilerParams(
            dimension_semantics=("parallel",),
            vmem_limit_bytes=32 * 1024 * 1024,
        ),
    )(image_sizes.astype(jnp.int32), x, w3p, b3.astype(jnp.float32),
      whT, bhT, anc)
    return out[:, :A, :], out[:, A:, :]


# ----------------------------------------------------------------------------
# Glue: anchors (DefaultAnchorGenerator), top-proposal selection, forward
# ----------------------------------------------------------------------------
def generate_cell_anchors(sizes, aspect_ratios):
    cell = []
    for size in sizes:
        area = float(size) ** 2
        for ar in aspect_ratios:
            w = math.sqrt(area / ar)
            h = ar * w
            cell.append([-w / 2.0, -h / 2.0, w / 2.0, h / 2.0])
    return jnp.asarray(cell, jnp.float32)                          # (A, 4)


def anchor_constants(H, W, Wp, stride, cell):
    """Per-slab-row anchor constants in the padded (H, Wp) layout: (4A, M)."""
    A = cell.shape[0]
    M = H * Wp
    r = jnp.arange(M, dtype=jnp.int32)
    sx = (r % Wp).astype(jnp.float32) * float(stride)              # shift_x per row
    sy = (r // Wp).astype(jnp.float32) * float(stride)             # shift_y per row
    a_w = (cell[:, 2] - cell[:, 0])[:, None]                       # (A, 1)
    a_h = (cell[:, 3] - cell[:, 1])[:, None]
    a_cx = (0.5 * (cell[:, 0] + cell[:, 2]))[:, None]
    a_cy = (0.5 * (cell[:, 1] + cell[:, 3]))[:, None]
    widths = jnp.broadcast_to(a_w, (A, M))
    heights = jnp.broadcast_to(a_h, (A, M))
    ctr_x = a_cx + sx[None, :]
    ctr_y = a_cy + sy[None, :]
    return jnp.concatenate([widths, heights, ctr_x, ctr_y], axis=0)  # (4A, M)


def find_top_rpn_proposals(boxes, logits, pre_nms_topk, post_nms_topk, min_size):
    # boxes: (N, R, 4) decoded+clipped, logits: (N, R)
    N, R, _ = boxes.shape
    k = min(pre_nms_topk, R)
    topk_scores, topk_idx = lax.top_k(logits, k)
    topk_boxes = jnp.take_along_axis(boxes, topk_idx[:, :, None], axis=1)
    widths = topk_boxes[..., 2] - topk_boxes[..., 0]
    heights = topk_boxes[..., 3] - topk_boxes[..., 1]
    keep = (widths > min_size) & (heights > min_size)
    topk_scores = jnp.where(keep, topk_scores, -jnp.inf)
    # TODO(synk): per-image NMS omitted (no clean Pallas/TPU equivalent);
    # proposals are pre-NMS, score-sorted, capped at post_nms_topk.
    post = min(post_nms_topk, k)
    return topk_boxes[:, :post, :], topk_scores[:, :post]


def customized_rpn_forward(feat_nchw, image_sizes, params, *,
                           stride, sizes, aspect_ratios,
                           bbox_reg_weights=(1.0, 1.0, 1.0, 1.0),
                           pre_nms_topk=200, post_nms_topk=50, min_size=0.0):
    """Inference-mode forward of CustomizedRPN (gt_instances=None -> losses={})."""
    N, C, H, W = feat_nchw.shape
    A = len(sizes) * len(aspect_ratios)
    Wp = _padded_row_width(H, W)
    R = H * W * A

    cell = generate_cell_anchors(sizes, aspect_ratios)
    anc = anchor_constants(H, W, Wp, stride, cell)                 # (4A, H*Wp)

    logitsT, boxesT = rpn_head_decode(
        feat_nchw, image_sizes, params, anc,
        A=A, box_reg_weights=bbox_reg_weights, Wp=Wp)

    # drop the junk columns per row and restore the reference ordering:
    #   logits: permute(0,2,3,1).flatten(1)      -> (N, H*W*A)
    #   boxes : (N, H, W, A, 4).flatten(1,-2)    -> (N, H*W*A, 4)
    logits = jnp.transpose(
        logitsT.reshape(N, A, H, Wp)[:, :, :, :W], (0, 2, 3, 1)).reshape(N, R)
    boxes = jnp.transpose(
        boxesT.reshape(N, 4, A, H, Wp)[..., :W], (0, 3, 4, 2, 1)).reshape(N, R, 4)

    prop_boxes, prop_scores = find_top_rpn_proposals(
        boxes, logits, pre_nms_topk, post_nms_topk, min_size)
    losses = {}
    return (prop_boxes, prop_scores), losses


# ----------------------------------------------------------------------------
if __name__ == "__main__":
    N, C, H, W = 2, 32, 16, 16
    stride = 4
    sizes = (32,)
    aspect_ratios = (0.5, 1.0, 2.0)
    A = len(sizes) * len(aspect_ratios)

    key = jax.random.PRNGKey(0)
    kx, k1, k2, k3 = jax.random.split(key, 4)
    feat_nchw = jax.random.normal(kx, (N, C, H, W), jnp.float32)   # NCHW like PyTorch
    # Deterministic synthetic weights (std=0.01 like the RPN head init).
    w3 = jax.random.normal(k1, (3, 3, C, C), jnp.float32) * 0.01   # (kh, kw, in, out)
    b3 = jnp.zeros((1, C), jnp.float32)
    wo = jax.random.normal(k2, (C, A), jnp.float32) * 0.01
    bo = jnp.zeros((1, A), jnp.float32)
    wd = jax.random.normal(k3, (C, 4 * A), jnp.float32) * 0.01     # cols a*4 + b
    bd = jnp.zeros((1, 4 * A), jnp.float32)
    image_sizes = jnp.array([[H * stride, W * stride]] * N, jnp.int32)  # (h, w)

    (prop_boxes, prop_scores), losses = customized_rpn_forward(
        feat_nchw, image_sizes, (w3, b3, wo, bo, wd, bd),
        stride=stride, sizes=sizes, aspect_ratios=aspect_ratios)

    jax.block_until_ready((prop_boxes, prop_scores))
    assert prop_boxes.shape == (N, 50, 4) and prop_scores.shape == (N, 50)
    assert bool(jnp.all(jnp.isfinite(prop_boxes)))
    print("KERNEL_OK")
</pallas_src>

<mosaic_0001>
module attributes {stable_mosaic.version = 11 : i64} {
  func.func @kernel(%arg0: i32, %arg1: memref<2x2xi32, #tpu.memory_space<smem>>, %arg2: memref<1x16x16x32xbf16, #tpu.memory_space<vmem>>, %arg3: memref<288x32xbf16, #tpu.memory_space<vmem>>, %arg4: memref<1x32xf32, #tpu.memory_space<vmem>>, %arg5: memref<15x32xbf16, #tpu.memory_space<vmem>>, %arg6: memref<15x1xf32, #tpu.memory_space<vmem>>, %arg7: memref<12x384xf32, #tpu.memory_space<vmem>>, %arg8: memref<1x15x384xf32, #tpu.memory_space<vmem>>, %arg9: memref<448x32xf32, #tpu.memory_space<vmem>>) attributes {dimension_semantics = [#tpu.dimension_semantics<parallel>], iteration_bounds = array<i64: 2>, scalar_prefetch = 1 : i64, scratch_operands = 1 : i64, tpu.core_type = #tpu.core_type<tc>, window_params = [{transform_indices = @transform_0, window_bounds = array<i64: 1, 16, 16, 32>}, {pipeline_mode = #tpu.pipeline_mode<synchronous>, transform_indices = @transform_1, window_bounds = array<i64: 288, 32>}, {pipeline_mode = #tpu.pipeline_mode<synchronous>, transform_indices = @transform_2, window_bounds = array<i64: 1, 32>}, {pipeline_mode = #tpu.pipeline_mode<synchronous>, transform_indices = @transform_3, window_bounds = array<i64: 15, 32>}, {pipeline_mode = #tpu.pipeline_mode<synchronous>, transform_indices = @transform_4, window_bounds = array<i64: 15, 1>}, {pipeline_mode = #tpu.pipeline_mode<synchronous>, transform_indices = @transform_5, window_bounds = array<i64: 12, 384>}, {transform_indices = @transform_6, window_bounds = array<i64: 1, 15, 384>}]} {
    %cst = arith.constant 0.000000e+00 : f32
    %0 = vector.broadcast %cst : f32 to vector<24x32xf32>
    %c0 = arith.constant 0 : index
    %c0_0 = arith.constant 0 : index
    %1 = vector.load %arg9[%c0, %c0_0] : memref<448x32xf32, #tpu.memory_space<vmem>>, vector<24x32xf32>
    tpu.vector_store %arg9[%c0, %c0_0], %0 {strides = array<i32>} : memref<448x32xf32, #tpu.memory_space<vmem>>, vector<24x32xf32>,
    %cst_1 = arith.constant 0.000000e+00 : f32
    %2 = vector.broadcast %cst_1 : f32 to vector<40x32xf32>
    %c408 = arith.constant 408 : index
    %c0_2 = arith.constant 0 : index
    %3 = vector.load %arg9[%c408, %c0_2] : memref<448x32xf32, #tpu.memory_space<vmem>>, vector<40x32xf32>
    tpu.vector_store %arg9[%c408, %c0_2], %2 {strides = array<i32>} : memref<448x32xf32, #tpu.memory_space<vmem>>, vector<40x32xf32>,
    %cst_3 = arith.constant 0.000000e+00 : f32
    %4 = vector.broadcast %cst_3 : f32 to vector<8x32xf32>
    %c0_4 = arith.constant 0 : index
    %c0_5 = arith.constant 0 : index
    %c0_6 = arith.constant 0 : index
    %c0_7 = arith.constant 0 : index
    %5 = vector.load %arg2[%c0_4, %c0_5, %c0_6, %c0_7] : memref<1x16x16x32xbf16, #tpu.memory_space<vmem>>, vector<1x1x16x32xbf16>
    %6 = vector.shape_cast %5 : vector<1x1x16x32xbf16> to vector<16x32xbf16>
    %7 = arith.extf %6 : vector<16x32xbf16> to vector<16x32xf32>
    %8 = tpu.concatenate %4, %7 in 0 : vector<8x32xf32>, vector<16x32xf32> -> vector<24x32xf32>
    %c24 = arith.constant 24 : index
    %c0_8 = arith.constant 0 : index
    %9 = vector.load %arg9[%c24, %c0_8] : memref<448x32xf32, #tpu.memory_space<vmem>>, vector<24x32xf32>
    tpu.vector_store %arg9[%c24, %c0_8], %8 {strides = array<i32>} : memref<448x32xf32, #tpu.memory_space<vmem>>, vector<24x32xf32>,
    %c0_9 = arith.constant 0 : index
    %c1 = arith.constant 1 : index
    %c0_10 = arith.constant 0 : index
    %c0_11 = arith.constant 0 : index
    %10 = vector.load %arg2[%c0_9, %c1, %c0_10, %c0_11] : memref<1x16x16x32xbf16, #tpu.memory_space<vmem>>, vector<1x1x16x32xbf16>
    %11 = vector.shape_cast %10 : vector<1x1x16x32xbf16> to vector<16x32xbf16>
    %12 = arith.extf %11 : vector<16x32xbf16> to vector<16x32xf32>
    %13 = tpu.concatenate %4, %12 in 0 : vector<8x32xf32>, vector<16x32xf32> -> vector<24x32xf32>
    %c48 = arith.constant 48 : index
    %c0_12 = arith.constant 0 : index
    %14 = vector.load %arg9[%c48, %c0_12] : memref<448x32xf32, #tpu.memory_space<vmem>>, vector<24x32xf32>
    tpu.vector_store %arg9[%c48, %c0_12], %13 {strides = array<i32>} : memref<448x32xf32, #tpu.memory_space<vmem>>, vector<24x32xf32>,
    %c0_13 = arith.constant 0 : index
    %c2 = arith.constant 2 : index
    %c0_14 = arith.constant 0 : index
    %c0_15 = arith.constant 0 : index
    %15 = vector.load %arg2[%c0_13, %c2, %c0_14, %c0_15] : memref<1x16x16x32xbf16, #tpu.memory_space<vmem>>, vector<1x1x16x32xbf16>
    %16 = vector.shape_cast %15 : vector<1x1x16x32xbf16> to vector<16x32xbf16>
    %17 = arith.extf %16 : vector<16x32xbf16> to vector<16x32xf32>
    %18 = tpu.concatenate %4, %17 in 0 : vector<8x32xf32>, vector<16x32xf32> -> vector<24x32xf32>
    %c72 = arith.constant 72 : index
    %c0_16 = arith.constant 0 : index
    %19 = vector.load %arg9[%c72, %c0_16] : memref<448x32xf32, #tpu.memory_space<vmem>>, vector<24x32xf32>
    tpu.vector_store %arg9[%c72, %c0_16], %18 {strides = array<i32>} : memref<448x32xf32, #tpu.memory_space<vmem>>, vector<24x32xf32>,
    %c0_17 = arith.constant 0 : index
    %c3 = arith.constant 3 : index
    %c0_18 = arith.constant 0 : index
    %c0_19 = arith.constant 0 : index
    %20 = vector.load %arg2[%c0_17, %c3, %c0_18, %c0_19] : memref<1x16x16x32xbf16, #tpu.memory_space<vmem>>, vector<1x1x16x32xbf16>
    %21 = vector.shape_cast %20 : vector<1x1x16x32xbf16> to vector<16x32xbf16>
    %22 = arith.extf %21 : vector<16x32xbf16> to vector<16x32xf32>
    %23 = tpu.concatenate %4, %22 in 0 : vector<8x32xf32>, vector<16x32xf32> -> vector<24x32xf32>
    %c96 = arith.constant 96 : index
    %c0_20 = arith.constant 0 : index
    %24 = vector.load %arg9[%c96, %c0_20] : memref<448x32xf32, #tpu.memory_space<vmem>>, vector<24x32xf32>
    tpu.vector_store %arg9[%c96, %c0_20], %23 {strides = array<i32>} : memref<448x32xf32, #tpu.memory_space<vmem>>, vector<24x32xf32>,
    %c0_21 = arith.constant 0 : index
    %c4 = arith.constant 4 : index
    %c0_22 = arith.constant 0 : index
    %c0_23 = arith.constant 0 : index
    %25 = vector.load %arg2[%c0_21, %c4, %c0_22, %c0_23] : memref<1x16x16x32xbf16, #tpu.memory_space<vmem>>, vector<1x1x16x32xbf16>
    %26 = vector.shape_cast %25 : vector<1x1x16x32xbf16> to vector<16x32xbf16>
    %27 = arith.extf %26 : vector<16x32xbf16> to vector<16x32xf32>
    %28 = tpu.concatenate %4, %27 in 0 : vector<8x32xf32>, vector<16x32xf32> -> vector<24x32xf32>
    %c120 = arith.constant 120 : index
    %c0_24 = arith.constant 0 : index
    %29 = vector.load %arg9[%c120, %c0_24] : memref<448x32xf32, #tpu.memory_space<vmem>>, vector<24x32xf32>
    tpu.vector_store %arg9[%c120, %c0_24], %28 {strides = array<i32>} : memref<448x32xf32, #tpu.memory_space<vmem>>, vector<24x32xf32>,
    %c0_25 = arith.constant 0 : index
    %c5 = arith.constant 5 : index
    %c0_26 = arith.constant 0 : index
    %c0_27 = arith.constant 0 : index
    %30 = vector.load %arg2[%c0_25, %c5, %c0_26, %c0_27] : memref<1x16x16x32xbf16, #tpu.memory_space<vmem>>, vector<1x1x16x32xbf16>
    %31 = vector.shape_cast %30 : vector<1x1x16x32xbf16> to vector<16x32xbf16>
    %32 = arith.extf %31 : vector<16x32xbf16> to vector<16x32xf32>
    %33 = tpu.concatenate %4, %32 in 0 : vector<8x32xf32>, vector<16x32xf32> -> vector<24x32xf32>
    %c144 = arith.constant 144 : index
    %c0_28 = arith.constant 0 : index
    %34 = vector.load %arg9[%c144, %c0_28] : memref<448x32xf32, #tpu.memory_space<vmem>>, vector<24x32xf32>
    tpu.vector_store %arg9[%c144, %c0_28], %33 {strides = array<i32>} : memref<448x32xf32, #tpu.memory_space<vmem>>, vector<24x32xf32>,
    %c0_29 = arith.constant 0 : index
    %c6 = arith.constant 6 : index
    %c0_30 = arith.constant 0 : index
    %c0_31 = arith.constant 0 : index
    %35 = vector.load %arg2[%c0_29, %c6, %c0_30, %c0_31] : memref<1x16x16x32xbf16, #tpu.memory_space<vmem>>, vector<1x1x16x32xbf16>
    %36 = vector.shape_cast %35 : vector<1x1x16x32xbf16> to vector<16x32xbf16>
    %37 = arith.extf %36 : vector<16x32xbf16> to vector<16x32xf32>
    %38 = tpu.concatenate %4, %37 in 0 : vector<8x32xf32>, vector<16x32xf32> -> vector<24x32xf32>
    %c168 = arith.constant 168 : index
    %c0_32 = arith.constant 0 : index
    %39 = vector.load %arg9[%c168, %c0_32] : memref<448x32xf32, #tpu.memory_space<vmem>>, vector<24x32xf32>
    tpu.vector_store %arg9[%c168, %c0_32], %38 {strides = array<i32>} : memref<448x32xf32, #tpu.memory_space<vmem>>, vector<24x32xf32>,
    %c0_33 = arith.constant 0 : index
    %c7 = arith.constant 7 : index
    %c0_34 = arith.constant 0 : index
    %c0_35 = arith.constant 0 : index
    %40 = vector.load %arg2[%c0_33, %c7, %c0_34, %c0_35] : memref<1x16x16x32xbf16, #tpu.memory_space<vmem>>, vector<1x1x16x32xbf16>
    %41 = vector.shape_cast %40 : vector<1x1x16x32xbf16> to vector<16x32xbf16>
    %42 = arith.extf %41 : vector<16x32xbf16> to vector<16x32xf32>
    %43 = tpu.concatenate %4, %42 in 0 : vector<8x32xf32>, vector<16x32xf32> -> vector<24x32xf32>
    %c192 = arith.constant 192 : index
    %c0_36 = arith.constant 0 : index
    %44 = vector.load %arg9[%c192, %c0_36] : memref<448x32xf32, #tpu.memory_space<vmem>>, vector<24x32xf32>
    tpu.vector_store %arg9[%c192, %c0_36], %43 {strides = array<i32>} : memref<448x32xf32, #tpu.memory_space<vmem>>, vector<24x32xf32>,
    %c0_37 = arith.constant 0 : index
    %c8 = arith.constant 8 : index
    %c0_38 = arith.constant 0 : index
    %c0_39 = arith.constant 0 : index
    %45 = vector.load %arg2[%c0_37, %c8, %c0_38, %c0_39] : memref<1x16x16x32xbf16, #tpu.memory_space<vmem>>, vector<1x1x16x32xbf16>
    %46 = vector.shape_cast %45 : vector<1x1x16x32xbf16> to vector<16x32xbf16>
    %47 = arith.extf %46 : vector<16x32xbf16> to vector<16x32xf32>
    %48 = tpu.concatenate %4, %47 in 0 : vector<8x32xf32>, vector<16x32xf32> -> vector<24x32xf32>
    %c216 = arith.constant 216 : index
    %c0_40 = arith.constant 0 : index
    %49 = vector.load %arg9[%c216, %c0_40] : memref<448x32xf32, #tpu.memory_space<vmem>>, vector<24x32xf32>
    tpu.vector_store %arg9[%c216, %c0_40], %48 {strides = array<i32>} : memref<448x32xf32, #tpu.memory_space<vmem>>, vector<24x32xf32>,
    %c0_41 = arith.constant 0 : index
    %c9 = arith.constant 9 : index
    %c0_42 = arith.constant 0 : index
    %c0_43 = arith.constant 0 : index
    %50 = vector.load %arg2[%c0_41, %c9, %c0_42, %c0_43] : memref<1x16x16x32xbf16, #tpu.memory_space<vmem>>, vector<1x1x16x32xbf16>
    %51 = vector.shape_cast %50 : vector<1x1x16x32xbf16> to vector<16x32xbf16>
    %52 = arith.extf %51 : vector<16x32xbf16> to vector<16x32xf32>
    %53 = tpu.concatenate %4, %52 in 0 : vector<8x32xf32>, vector<16x32xf32> -> vector<24x32xf32>
    %c240 = arith.constant 240 : index
    %c0_44 = arith.constant 0 : index
    %54 = vector.load %arg9[%c240, %c0_44] : memref<448x32xf32, #tpu.memory_space<vmem>>, vector<24x32xf32>
    tpu.vector_store %arg9[%c240, %c0_44], %53 {strides = array<i32>} : memref<448x32xf32, #tpu.memory_space<vmem>>, vector<24x32xf32>,
    %c0_45 = arith.constant 0 : index
    %c10 = arith.constant 10 : index
    %c0_46 = arith.constant 0 : index
    %c0_47 = arith.constant 0 : index
    %55 = vector.load %arg2[%c0_45, %c10, %c0_46, %c0_47] : memref<1x16x16x32xbf16, #tpu.memory_space<vmem>>, vector<1x1x16x32xbf16>
    %56 = vector.shape_cast %55 : vector<1x1x16x32xbf16> to vector<16x32xbf16>
    %57 = arith.extf %56 : vector<16x32xbf16> to vector<16x32xf32>
    %58 = tpu.concatenate %4, %57 in 0 : vector<8x32xf32>, vector<16x32xf32> -> vector<24x32xf32>
    %c264 = arith.constant 264 : index
    %c0_48 = arith.constant 0 : index
    %59 = vector.load %arg9[%c264, %c0_48] : memref<448x32xf32, #tpu.memory_space<vmem>>, vector<24x32xf32>
    tpu.vector_store %arg9[%c264, %c0_48], %58 {strides = array<i32>} : memref<448x32xf32, #tpu.memory_space<vmem>>, vector<24x32xf32>,
    %c0_49 = arith.constant 0 : index
    %c11 = arith.constant 11 : index
    %c0_50 = arith.constant 0 : index
    %c0_51 = arith.constant 0 : index
    %60 = vector.load %arg2[%c0_49, %c11, %c0_50, %c0_51] : memref<1x16x16x32xbf16, #tpu.memory_space<vmem>>, vector<1x1x16x32xbf16>
    %61 = vector.shape_cast %60 : vector<1x1x16x32xbf16> to vector<16x32xbf16>
    %62 = arith.extf %61 : vector<16x32xbf16> to vector<16x32xf32>
    %63 = tpu.concatenate %4, %62 in 0 : vector<8x32xf32>, vector<16x32xf32> -> vector<24x32xf32>
    %c288 = arith.constant 288 : index
    %c0_52 = arith.constant 0 : index
    %64 = vector.load %arg9[%c288, %c0_52] : memref<448x32xf32, #tpu.memory_space<vmem>>, vector<24x32xf32>
    tpu.vector_store %arg9[%c288, %c0_52], %63 {strides = array<i32>} : memref<448x32xf32, #tpu.memory_space<vmem>>, vector<24x32xf32>,
    %c0_53 = arith.constant 0 : index
    %c12 = arith.constant 12 : index
    %c0_54 = arith.constant 0 : index
    %c0_55 = arith.constant 0 : index
    %65 = vector.load %arg2[%c0_53, %c12, %c0_54, %c0_55] : memref<1x16x16x32xbf16, #tpu.memory_space<vmem>>, vector<1x1x16x32xbf16>
    %66 = vector.shape_cast %65 : vector<1x1x16x32xbf16> to vector<16x32xbf16>
    %67 = arith.extf %66 : vector<16x32xbf16> to vector<16x32xf32>
    %68 = tpu.concatenate %4, %67 in 0 : vector<8x32xf32>, vector<16x32xf32> -> vector<24x32xf32>
    %c312 = arith.constant 312 : index
    %c0_56 = arith.constant 0 : index
    %69 = vector.load %arg9[%c312, %c0_56] : memref<448x32xf32, #tpu.memory_space<vmem>>, vector<24x32xf32>
    tpu.vector_store %arg9[%c312, %c0_56], %68 {strides = array<i32>} : memref<448x32xf32, #tpu.memory_space<vmem>>, vector<24x32xf32>,
    %c0_57 = arith.constant 0 : index
    %c13 = arith.constant 13 : index
    %c0_58 = arith.constant 0 : index
    %c0_59 = arith.constant 0 : index
    %70 = vector.load %arg2[%c0_57, %c13, %c0_58, %c0_59] : memref<1x16x16x32xbf16, #tpu.memory_space<vmem>>, vector<1x1x16x32xbf16>
    %71 = vector.shape_cast %70 : vector<1x1x16x32xbf16> to vector<16x32xbf16>
    %72 = arith.extf %71 : vector<16x32xbf16> to vector<16x32xf32>
    %73 = tpu.concatenate %4, %72 in 0 : vector<8x32xf32>, vector<16x32xf32> -> vector<24x32xf32>
    %c336 = arith.constant 336 : index
    %c0_60 = arith.constant 0 : index
    %74 = vector.load %arg9[%c336, %c0_60] : memref<448x32xf32, #tpu.memory_space<vmem>>, vector<24x32xf32>
    tpu.vector_store %arg9[%c336, %c0_60], %73 {strides = array<i32>} : memref<448x32xf32, #tpu.memory_space<vmem>>, vector<24x32xf32>,
    %c0_61 = arith.constant 0 : index
    %c14 = arith.constant 14 : index
    %c0_62 = arith.constant 0 : index
    %c0_63 = arith.constant 0 : index
    %75 = vector.load %arg2[%c0_61, %c14, %c0_62, %c0_63] : memref<1x16x16x32xbf16, #tpu.memory_space<vmem>>, vector<1x1x16x32xbf16>
    %76 = vector.shape_cast %75 : vector<1x1x16x32xbf16> to vector<16x32xbf16>
    %77 = arith.extf %76 : vector<16x32xbf16> to vector<16x32xf32>
    %78 = tpu.concatenate %4, %77 in 0 : vector<8x32xf32>, vector<16x32xf32> -> vector<24x32xf32>
    %c360 = arith.constant 360 : index
    %c0_64 = arith.constant 0 : index
    %79 = vector.load %arg9[%c360, %c0_64] : memref<448x32xf32, #tpu.memory_space<vmem>>, vector<24x32xf32>
    tpu.vector_store %arg9[%c360, %c0_64], %78 {strides = array<i32>} : memref<448x32xf32, #tpu.memory_space<vmem>>, vector<24x32xf32>,
    %c0_65 = arith.constant 0 : index
    %c15 = arith.constant 15 : index
    %c0_66 = arith.constant 0 : index
    %c0_67 = arith.constant 0 : index
    %80 = vector.load %arg2[%c0_65, %c15, %c0_66, %c0_67] : memref<1x16x16x32xbf16, #tpu.memory_space<vmem>>, vector<1x1x16x32xbf16>
    %81 = vector.shape_cast %80 : vector<1x1x16x32xbf16> to vector<16x32xbf16>
    %82 = arith.extf %81 : vector<16x32xbf16> to vector<16x32xf32>
    %83 = tpu.concatenate %4, %82 in 0 : vector<8x32xf32>, vector<16x32xf32> -> vector<24x32xf32>
    %c384 = arith.constant 384 : index
    %c0_68 = arith.constant 0 : index
    %84 = vector.load %arg9[%c384, %c0_68] : memref<448x32xf32, #tpu.memory_space<vmem>>, vector<24x32xf32>
    tpu.vector_store %arg9[%c384, %c0_68], %83 {strides = array<i32>} : memref<448x32xf32, #tpu.memory_space<vmem>>, vector<24x32xf32>,
    %c7_69 = arith.constant 7 : index
    %c0_70 = arith.constant 0 : index
    %85 = vector.load %arg9[%c7_69, %c0_70] : memref<448x32xf32, #tpu.memory_space<vmem>>, vector<384x32xf32>
    %86 = arith.truncf %85 : vector<384x32xf32> to vector<384x32xbf16>
    %c8_71 = arith.constant 8 : index
    %c0_72 = arith.constant 0 : index
    %87 = vector.load %arg9[%c8_71, %c0_72] : memref<448x32xf32, #tpu.memory_space<vmem>>, vector<384x32xf32>
    %88 = arith.truncf %87 : vector<384x32xf32> to vector<384x32xbf16>
    %c9_73 = arith.constant 9 : index
    %c0_74 = arith.constant 0 : index
    %89 = vector.load %arg9[%c9_73, %c0_74] : memref<448x32xf32, #tpu.memory_space<vmem>>, vector<384x32xf32>
    %90 = arith.truncf %89 : vector<384x32xf32> to vector<384x32xbf16>
    %c31 = arith.constant 31 : index
    %c0_75 = arith.constant 0 : index
    %91 = vector.load %arg9[%c31, %c0_75] : memref<448x32xf32, #tpu.memory_space<vmem>>, vector<384x32xf32>
    %92 = arith.truncf %91 : vector<384x32xf32> to vector<384x32xbf16>
    %c32 = arith.constant 32 : index
    %c0_76 = arith.constant 0 : index
    %93 = vector.load %arg9[%c32, %c0_76] : memref<448x32xf32, #tpu.memory_space<vmem>>, vector<384x32xf32>
    %94 = arith.truncf %93 : vector<384x32xf32> to vector<384x32xbf16>
    %c33 = arith.constant 33 : index
    %c0_77 = arith.constant 0 : index
    %95 = vector.load %arg9[%c33, %c0_77] : memref<448x32xf32, #tpu.memory_space<vmem>>, vector<384x32xf32>
    %96 = arith.truncf %95 : vector<384x32xf32> to vector<384x32xbf16>
    %c55 = arith.constant 55 : index
    %c0_78 = arith.constant 0 : index
    %97 = vector.load %arg9[%c55, %c0_78] : memref<448x32xf32, #tpu.memory_space<vmem>>, vector<384x32xf32>
    %98 = arith.truncf %97 : vector<384x32xf32> to vector<384x32xbf16>
    %c56 = arith.constant 56 : index
    %c0_79 = arith.constant 0 : index
    %99 = vector.load %arg9[%c56, %c0_79] : memref<448x32xf32, #tpu.memory_space<vmem>>, vector<384x32xf32>
    %100 = arith.truncf %99 : vector<384x32xf32> to vector<384x32xbf16>
    %c57 = arith.constant 57 : index
    %c0_80 = arith.constant 0 : index
    %101 = vector.load %arg9[%c57, %c0_80] : memref<448x32xf32, #tpu.memory_space<vmem>>, vector<384x32xf32>
    %102 = arith.truncf %101 : vector<384x32xf32> to vector<384x32xbf16>
    %103 = tpu.concatenate %86, %88, %90, %92, %94, %96, %98, %100, %102 in 1 : vector<384x32xbf16>, vector<384x32xbf16>, vector<384x32xbf16>, vector<384x32xbf16>, vector<384x32xbf16>, vector<384x32xbf16>, vector<384x32xbf16>, vector<384x32xbf16>, vector<384x32xbf16> -> vector<384x288xbf16>
    %c0_81 = arith.constant 0 : index
    %c0_82 = arith.constant 0 : index
    %104 = vector.load %arg3[%c0_81, %c0_82] : memref<288x32xbf16, #tpu.memory_space<vmem>>, vector<288x32xbf16>
    %cst_83 = arith.constant dense<0.000000e+00> : vector<384x32xf32>
    %105 = tpu.matmul %103, %104, %cst_83 {dimension_numbers = #tpu.dot_dimension_numbers<[1], [0], [0], [1], [0, 0, 1, 1], [], []>} : vector<384x288xbf16>, vector<288x32xbf16>, vector<384x32xf32> -> vector<384x32xf32>
    %c0_84 = arith.constant 0 : index
    %c0_85 = arith.constant 0 : index
    %106 = vector.load %arg4[%c0_84, %c0_85] : memref<1x32xf32, #tpu.memory_space<vmem>>, vector<1x32xf32>
    %107 = vector.broadcast %106 : vector<1x32xf32> to vector<384x32xf32>
    %108 = arith.addf %105, %107 : vector<384x32xf32>
    %cst_86 = arith.constant 0.000000e+00 : f32
    %109 = vector.broadcast %cst_86 : f32 to vector<384x32xf32>
    %110 = arith.maximumf %108, %109 : vector<384x32xf32>
    %c0_87 = arith.constant 0 : index
    %c0_88 = arith.constant 0 : index
    %111 = vector.load %arg5[%c0_87, %c0_88] : memref<15x32xbf16, #tpu.memory_space<vmem>>, vector<15x32xbf16>
    %112 = arith.truncf %110 : vector<384x32xf32> to vector<384x32xbf16>
    %cst_89 = arith.constant dense<0.000000e+00> : vector<15x384xf32>
    %113 = tpu.matmul %111, %112, %cst_89 {dimension_numbers = #tpu.dot_dimension_numbers<[1], [1], [0], [0], [0, 0, 1, 0], [], []>} : vector<15x32xbf16>, vector<384x32xbf16>, vector<15x384xf32> -> vector<15x384xf32>
    %c0_90 = arith.constant 0 : index
    %c0_91 = arith.constant 0 : index
    %114 = vector.load %arg6[%c0_90, %c0_91] : memref<15x1xf32, #tpu.memory_space<vmem>>, vector<15x1xf32>
    %115 = vector.broadcast %114 : vector<15x1xf32> to vector<15x384xf32>
    %116 = arith.addf %113, %115 : vector<15x384xf32>
    %117 = vector.extract_strided_slice %116 {offsets = [3, 0], sizes = [6, 384], strides = [1, 1]} : vector<15x384xf32> to vector<6x384xf32>
    %118 = vector.extract_strided_slice %116 {offsets = [9, 0], sizes = [6, 384], strides = [1, 1]} : vector<15x384xf32> to vector<6x384xf32>
    %cst_92 = arith.constant 4.13516665 : f32
    %119 = vector.broadcast %cst_92 : f32 to vector<6x384xf32>
    %120 = arith.minimumf %118, %119 : vector<6x384xf32>
    %c0_93 = arith.constant 0 : index
    %c0_94 = arith.constant 0 : index
    %121 = vector.load %arg7[%c0_93, %c0_94] : memref<12x384xf32, #tpu.memory_space<vmem>>, vector<6x384xf32>
    %c6_95 = arith.constant 6 : index
    %c0_96 = arith.constant 0 : index
    %122 = vector.load %arg7[%c6_95, %c0_96] : memref<12x384xf32, #tpu.memory_space<vmem>>, vector<6x384xf32>
    %123 = arith.mulf %117, %121 : vector<6x384xf32>
    %124 = arith.addf %123, %122 : vector<6x384xf32>
    %125 = math.exp %120 : vector<6x384xf32>
    %cst_97 = arith.constant 5.000000e-01 : f32
    %126 = vector.broadcast %cst_97 : f32 to vector<6x384xf32>
    %127 = arith.mulf %126, %125 : vector<6x384xf32>
    %128 = arith.mulf %127, %121 : vector<6x384xf32>
    %129 = arith.index_cast %arg0 : i32 to index
    %c0_98 = arith.constant 0 : index
    %130 = memref.load %arg1[%129, %c0_98] : memref<2x2xi32, #tpu.memory_space<smem>>
    %131 = arith.sitofp %130 : i32 to f32
    %132 = arith.index_cast %arg0 : i32 to index
    %c1_99 = arith.constant 1 : index
    %133 = memref.load %arg1[%132, %c1_99] : memref<2x2xi32, #tpu.memory_space<smem>>
    %134 = arith.sitofp %133 : i32 to f32
    %135 = tpu.iota {dimensions = array<i32: 0>} : vector<6x1xi32>
    %c3_i32 = arith.constant 3 : i32
    %136 = vector.broadcast %c3_i32 : i32 to vector<6x1xi32>
    %137 = arith.cmpi slt, %135, %136 : vector<6x1xi32>
    %138 = vector.broadcast %134 : f32 to vector<6x1xf32>
    %139 = vector.broadcast %131 : f32 to vector<6x1xf32>
    %140 = arith.select %137, %138, %139 : vector<6x1xi1>, vector<6x1xf32>
    %141 = arith.subf %124, %128 : vector<6x384xf32>
    %cst_100 = arith.constant 0.000000e+00 : f32
    %142 = vector.broadcast %cst_100 : f32 to vector<6x384xf32>
    %143 = arith.maximumf %142, %141 : vector<6x384xf32>
    %144 = vector.broadcast %140 : vector<6x1xf32> to vector<6x384xf32>
    %145 = arith.minimumf %144, %143 : vector<6x384xf32>
    %146 = arith.addf %124, %128 : vector<6x384xf32>
    %cst_101 = arith.constant 0.000000e+00 : f32
    %147 = vector.broadcast %cst_101 : f32 to vector<6x384xf32>
    %148 = arith.maximumf %147, %146 : vector<6x384xf32>
    %149 = vector.broadcast %140 : vector<6x1xf32> to vector<6x384xf32>
    %150 = arith.minimumf %149, %148 : vector<6x384xf32>
    %151 = vector.extract_strided_slice %116 {offsets = [0, 0], sizes = [3, 384], strides = [1, 1]} : vector<15x384xf32> to vector<3x384xf32>
    %152 = tpu.concatenate %151, %145, %150 in 0 : vector<3x384xf32>, vector<6x384xf32>, vector<6x384xf32> -> vector<15x384xf32>
    %c0_102 = arith.constant 0 : index
    %c0_103 = arith.constant 0 : index
    %c0_104 = arith.constant 0 : index
    %153 = vector.load %arg8[%c0_102, %c0_103, %c0_104] : memref<1x15x384xf32, #tpu.memory_space<vmem>>, vector<1x15x384xf32>
    %154 = vector.shape_cast %153 : vector<1x15x384xf32> to vector<15x384xf32>
    %155 = vector.shape_cast %152 : vector<15x384xf32> to vector<1x15x384xf32>
    tpu.vector_store %arg8[%c0_102, %c0_103, %c0_104], %155 {strides = array<i32>} : memref<1x15x384xf32, #tpu.memory_space<vmem>>, vector<1x15x384xf32>,
    return
  }
  func.func @transform_0(%arg0: i32, %arg1: memref<2x2xi32, #tpu.memory_space<smem>>) -> (i32, i32, i32, i32) {
    %c0_i32 = arith.constant 0 : i32
    %c0_i32_0 = arith.constant 0 : i32
    %c0_i32_1 = arith.constant 0 : i32
    %c0_i32_2 = arith.constant 0 : i32
    return %arg0, %c0_i32, %c0_i32_0, %c0_i32_1 : i32, i32, i32, i32
  }
  func.func @transform_1(%arg0: i32, %arg1: memref<2x2xi32, #tpu.memory_space<smem>>) -> (i32, i32) {
    %c0_i32 = arith.constant 0 : i32
    %c0_i32_0 = arith.constant 0 : i32
    %c0_i32_1 = arith.constant 0 : i32
    return %c0_i32, %c0_i32_0 : i32, i32
  }
  func.func @transform_2(%arg0: i32, %arg1: memref<2x2xi32, #tpu.memory_space<smem>>) -> (i32, i32) {
    %c0_i32 = arith.constant 0 : i32
    %c0_i32_0 = arith.constant 0 : i32
    %c0_i32_1 = arith.constant 0 : i32
    return %c0_i32, %c0_i32_0 : i32, i32
  }
  func.func @transform_3(%arg0: i32, %arg1: memref<2x2xi32, #tpu.memory_space<smem>>) -> (i32, i32) {
    %c0_i32 = arith.constant 0 : i32
    %c0_i32_0 = arith.constant 0 : i32
    %c0_i32_1 = arith.constant 0 : i32
    return %c0_i32, %c0_i32_0 : i32, i32
  }
  func.func @transform_4(%arg0: i32, %arg1: memref<2x2xi32, #tpu.memory_space<smem>>) -> (i32, i32) {
    %c0_i32 = arith.constant 0 : i32
    %c0_i32_0 = arith.constant 0 : i32
    %c0_i32_1 = arith.constant 0 : i32
    return %c0_i32, %c0_i32_0 : i32, i32
  }
  func.func @transform_5(%arg0: i32, %arg1: memref<2x2xi32, #tpu.memory_space<smem>>) -> (i32, i32) {
    %c0_i32 = arith.constant 0 : i32
    %c0_i32_0 = arith.constant 0 : i32
    %c0_i32_1 = arith.constant 0 : i32
    return %c0_i32, %c0_i32_0 : i32, i32
  }
  func.func @transform_6(%arg0: i32, %arg1: memref<2x2xi32, #tpu.memory_space<smem>>) -> (i32, i32, i32) {
    %c0_i32 = arith.constant 0 : i32
    %c0_i32_0 = arith.constant 0 : i32
    %c0_i32_1 = arith.constant 0 : i32
    return %arg0, %c0_i32, %c0_i32_0 : i32, i32, i32
  }
}

</mosaic_0001>

<bundles_post_ra>
// kernel: tpu_custom_call.1
= control target key start
LH: loop header
LB: loop body
LE: loop exit
PB: predicated region body
PF: predicated region fallthrough
CT: control target
= control target key end

     0   :  { %s4946_s0 = inlined_call_operand.vmem [shape: s32[2,2], index: 0, kind: input, shape index: {}]   ;;  %s4947_s1 = inlined_call_operand.hbm [shape: bf16[2,16,16,32], index: 1, kind: input, shape index: {}]   ;;  %s4948_s2 = inlined_call_operand.vmem [shape: bf16[288,32], index: 2, kind: input, shape index: {}]   ;;  %s4949_s3 = inlined_call_operand.vmem [shape: f32[1,32], index: 3, kind: input, shape index: {}]   ;;  %s4950_s4 = inlined_call_operand.vmem [shape: bf16[15,32], index: 4, kind: input, shape index: {}]   ;;  %s4951_s5 = inlined_call_operand.vmem [shape: f32[15,1], index: 5, kind: input, shape index: {}]   ;;  %s4952_s6 = inlined_call_operand.vmem [shape: f32[12,384], index: 6, kind: input, shape index: {}]   ;;  %s4953_s7 = inlined_call_operand.vmem [shape: f32[2,15,384], index: 7, kind: output, shape index: {}]  }
   0x1   :  { %s12_s26 = sshll.u32 %s4946_s0, 4  ;;  %s13_s26 = int_to_ptr.vmem [resolvable:$true] %s12_s26 }
   0x2   :  { %s3123_s27 = scalar_lea.vmem %s13_s26, 32  ;;  %p3128_p1 = scmp.lt.s32.totalorder %s13_s26, %s13_s26 }
   0x3   :  { %p3124_p0 = scmp.ne.s32.totalorder %s13_s26, %s3123_s27  ;;  %p3129_p2 = scmp.lt.s32.totalorder %s3123_s27, %s3123_s27 }
   0x5   :  { %p3130_p3 = por %p3129_p2, %p3128_p1 }
   0x7   :  { %p3131_p4 = pnand %p3130_p3, %p3124_p0 }
   0x9   :  { %3134 = shalt.err (!%p3131_p4)  }
   0xa   :  { %s3201_s28 = smov [#allocation4]  }
   0xb   :  { %15 = dma.vmem_to_smem %s13_s26, 32, %s3201_s28, [#allocation3] }
   0xc   :  { %3179 = dma.done.wait [#allocation3], 32 }
   0xd   :  { %3180 = vsyncadd [#allocation3], 4294967264 }
   0xe   :  { %17 = sfence }
   0xf   :  { %18 = vsyncpa [#allocation6], 0 }
  0x10   :  { %20 = vsyncpa [#allocation6 + $0x1], 0  ;;  %s3254_s29 = smov 0   ;;  %s3256_s30 = smov 0  }
  0x11   :  { %s3258_s0 = smov 0   ;;  %s3260_s8 = smov 0  }
  0x12 LB: > { %s3273_s9 = sadd.s32 4294967295, %s3199_s8   ;;  %s3276_s10 = sadd.s32 1, %s3199_s8   ;;  %s3199_s8 = sphi %s3260_s8, %s5070_s8   ;;  %s3195_s0 = sphi %s3258_s0, %s5069_s0   ;;  %s3191_s30 = sphi %s3256_s30, %s5068_s30   ;;  %s3187_s29 = sphi %s3254_s29, %s5067_s29  }
  0x13   : > { %s30_s11 = ssub.s32 %s3199_s8, %s3276_s10  ;;  %s33_s12 = sadd.s32 1, %s3195_s0 }
  0x14   : > { %p31_p5 = scmp.eq.s32.totalorder %s30_s11, 0  ;;  %p40_p6 = scmp.ne.s32.totalorder %s3195_s0, %s3191_s30 }
  0x15   : > { %p41_p7 = scmp.eq.s32.totalorder %s3199_s8, 0  ;;  %p46_p8 = scmp.ne.s32.totalorder %s3191_s30, %s3187_s29 }
  0x16   : > { %s3286_s13 = scalar_select %p31_p5, %s3195_s0, %s33_s12  }
  0x17   : > { %p42_p9 = por %p41_p7, %p40_p6  ;;  %p47_p10 = scmp.eq.s32.totalorder %s3273_s9, 0 }
  0x18   : > { %p3050_p11 = scmp.lt.s32.totalorder %s3199_s8, 2  ;;  %s216_s15 = sand.u32 1, %s3195_s0  }
  0x19   : > { %p3290_p12 = por %p47_p10, %p46_p8  ;;  %s2713_s16 = sshll.u32 %s216_s15, 7 }
  0x1a   : > { %s2798_s17 = sshll.u32 %s3199_s8, 11  ;;  %s220_s21 = scalar_lea.vmem [#allocation5], %s2713_s16 }
  0x1b   : > { %s4986_s14 = scalar_select %p3290_p12, 1, 0 }
  0x1c   : > { %s3299_s20 = scalar_lea.hbm %s4947_s1, %s2798_s17  ;;  %s227_s22 = sshll.u32 %s220_s21, 4  ;;  %s3301_s22 = int_to_ptr.vmem [resolvable:$true] %s227_s22 }
  0x1d   : > { %p3303_p13 = pnand %p3050_p11, %p42_p9  ;;  %s3308_s24 = scalar_lea.sflag [#allocation6], %s216_s15 }
  0x1e   : > { %s3135_s25 = scalar_lea.hbm %s3299_s20, 2048  ;;  %s3140_s28 = scalar_lea.hbm %s4947_s1, 4096 }
  0x1f   : > { %p3136_p1 = scmp.ne.s32.totalorder %s3299_s20, %s3135_s25  ;;  %p3137_p2 = pneg %p3303_p13 }
  0x20   : > { %p3141_p5 = scmp.lt.s32.totalorder %s3299_s20, %s4947_s1  ;;  %p3142_p6 = scmp.lt.s32.totalorder %s3140_s28, %s3135_s25 }
  0x21   : > { %p3138_p3 = pnand %p3137_p2, %p3136_p1 }
  0x22   : > { %p3143_p7 = por %p3142_p6, %p3141_p5 }
  0x23   : > { %p3139_p4 = pneg %p3138_p3 }
  0x25   : > { %p3144_p8 = pnand %p3143_p7, %p3139_p4 }
  0x27   : > { %3147 = shalt.err (!%p3144_p8)
}
  0x28   : > { %s3148_s12 = scalar_lea.vmem %s3301_s22, 2048  ;;  %s3202_s15 = smov [#allocation5]  }
  0x29   : > { %p3149_p9 = scmp.ne.s32.totalorder %s3301_s22, %s3148_s12  ;;  %s3153_s16 = sshll.u32 %s3202_s15, 4  ;;  %s3154_s16 = int_to_ptr.vmem [resolvable:$false] %s3153_s16 }
  0x2a   : > { %s3155_s17 = scalar_lea.vmem %s3154_s16, 4096  ;;  %p3156_p1 = scmp.lt.s32.totalorder %s3301_s22, %s3154_s16 }
  0x2b   : > { %p3151_p10 = pnand %p3149_p9, %p3137_p2  ;;  %p3157_p3 = scmp.lt.s32.totalorder %s3155_s17, %s3148_s12 }
  0x2d   : > { %p3152_p11 = pneg %p3151_p10  ;;  %p3158_p0 = por %p3157_p3, %p3156_p1 }
  0x2f   : > { %p3159_p12 = pnand %p3158_p0, %p3152_p11 }
  0x31   : > { %3162 = shalt.err (!%p3159_p12)
}
  0x32   : > { %s3203_s18 = smov 64   ;;  %s3204_s19 = smov 4  }
  0x33   : > { %3049 = dma.hbm_to_vmem [thread:$0]  (!%p3303_p13), %s3299_s20, 2048, %s3301_s22, %s3308_s24, %s3203_s18, %s3203_s18, %s3204_s19  }
  0x34   : > { %p235_p2 = scmp.lt.s32.totalorder %s3199_s8, 3  ;;  %p4988_p4 = scmp.ge.s32.totalorder %s3199_s8, 1 }
  0x36   : > { %p236_p5 = pnand %p4988_p4, %p235_p2 }
  0x38   : > { %239 = sbr.rel (%p236_p5) target bundleno = 983 (0x3d7), region = 44 }
  0x3d   : > { %s241_s21 = sand.u32 1, %s3191_s30   ;;  %p4989_p12 = scmp.ne.s32.totalorder %s4986_s14, 0 }
  0x3e   : > { %s2717_s25 = sshll.u32 %s241_s21, 7  ;;  %s242_s26 = scalar_lea.sflag [#allocation6], %s241_s21 }
  0x3f   : > { %s3333_s27 = scalar_lea.vmem [#allocation5], %s2717_s25 }
  0x40   : > { %3182 = dma.done.wait (%p4989_p12), %s242_s26, 2048  }
  0x41   : > { %3184 = vsyncadd (%p4989_p12), %s242_s26, 4294965248  ;;  %vm280_vm0 = vcmask 261120   ;;  %v4955_v0 = vmov 0.0   ;;  %v3206_v1 = vmov 0   ;;  %v2863_v2 = vld [vmem:[%s3333_s27 + $0x8] sm:$0xff]   ;;  %v2800_v3 = vld [vmem:[%s3333_s27] sm:$0xff]  }
  0x42   : > { %282 = vst.msk [vmem:[#allocation2 + $0x8] sm:$0xff] %vm280_vm0, %v4955_v0  ;;  %283 = vst.msk [vmem:[#allocation2 + $0x10] sm:$0xff] %vm280_vm0, %v4955_v0  ;;  %1751 = vmatprep.subr.bf16.mxu0 %v3206_v1  ;;  %3003 = vmatprep.subr.bf16.mxu1 %v3206_v1  ;;  %v2864_v4 = vld [vmem:[%s3333_s27 + $0x10] sm:$0xff]   ;;  %v2805_v8 = vunpack.c.l.bf16 %v2863_v2  ;;  %v2806_v9 = vunpack.c.h.bf16 %v2863_v2  ;;  %v2801_v10 = vunpack.c.l.bf16 %v2800_v3  ;;  %v2802_v11 = vunpack.c.h.bf16 %v2800_v3  ;;  %s3207_s8 = smov 64   ;;  %v2865_v17 = vld [vmem:[%s3333_s27 + $0x18] sm:$0xff]   ;;  %s3208_s14 = smov 32  }
  0x43   : > { %293 = vst.msk [vmem:[#allocation2 + $0x18] sm:$0xff] %vm280_vm0, %v4955_v0  ;;  %281 = vst.msk [vmem:[#allocation2] sm:$0xff] %vm280_vm0, %v4955_v0  ;;  %3092 = vset.pattern.permute.xlu0 %v3206_v1  ;;  %3093 = vset.pattern.permute.xlu1 %v3206_v1  ;;  %v2809_v14 = vunpack.c.l.bf16 %v2864_v4  ;;  %v2810_v15 = vunpack.c.h.bf16 %v2864_v4  ;;  %v2866_v18 = vld [vmem:[%s3333_s27 + $0x20] sm:$0xff]   ;;  %v2813_v19 = vunpack.c.l.bf16 %v2865_v17  ;;  %v2814_v20 = vunpack.c.h.bf16 %v2865_v17  ;;  %v3094_v22 = vld [vmem:[%s4948_s2 + $0x38] sm:$0xff]   ;;  %s3209_s15 = smov 96   ;;  %s2795_s18 = sshll.u32 %s3273_s9, 7 }
  0x44   : > { %284 = vst.msk [vmem:[#allocation2 + $0x198] sm:$0xff] %vm280_vm0, %v4955_v0  ;;  %285 = vst.msk [vmem:[#allocation2 + $0x1a0] sm:$0xff] %vm280_vm0, %v4955_v0  ;;  %v2817_v21 = vunpack.c.l.bf16 %v2866_v18  ;;  %v2818_v23 = vunpack.c.h.bf16 %v2866_v18  ;;  %1752 = vmatpush1.bf16.msra.mxu0 %v3094_v22  ;;  %v3095_v24 = vld [vmem:[%s4948_s2 + $0x30] sm:$0xff]   ;;  %3019 = vmatpush1.bf16.msra.mxu1 %v3094_v22  ;;  %v3096_v25 = vld [vmem:[%s4948_s2 + $0x28] sm:$0xff]   ;;  %vm1214_vm1 = vcmask 523264   ;;  %vm1263_vm2 = vcmask 785408  }
  0x45   : > { %286 = vst.msk [vmem:[#allocation2 + $0x1a8] sm:$0xff] %vm280_vm0, %v4955_v0  ;;  %287 = vst.msk [vmem:[#allocation2 + $0x1b0] sm:$0xff] %vm280_vm0, %v4955_v0  ;;  %1753 = vmatprep.subr.bf16.mxu0 %v3206_v1  ;;  %3004 = vmatprep.subr.bf16.mxu1 %v3206_v1  ;;  %v2867_v26 = vld [vmem:[%s3333_s27 + $0x28] sm:$0xff]   ;;  %v3097_v48 = vld [vmem:[%s4948_s2 + $0x20] sm:$0xff]   ;;  %vm3210_vm3 = vmmov 0   ;;  %s2527_s19 = sadd.s32 1, %s2795_s18 }
  0x46   : > { %288 = vst.msk [vmem:[#allocation2 + $0x1b8] sm:$0xff] %vm280_vm0, %v4955_v0  ;;  %301 = vst.msk [vmem:[#allocation2 + $0x30] sm:$0xff] %vm280_vm0, %v4955_v0  ;;  %v2821_v31 = vunpack.c.l.bf16 %v2867_v26  ;;  %v2822_v32 = vunpack.c.h.bf16 %v2867_v26  ;;  %v3099_v18 = vld [vmem:[%s4948_s2 + $0x10] sm:$0xff]   ;;  %v2873_v60 = vld [vmem:[%s3333_s27 + $0x58] sm:$0xff]   ;;  %s4848_s21 = sld [smem:[#allocation4 + %s2795_s18]]  ;;  %vm2484_vm4 = vcmask 1044480  }
  0x47   : > { %309 = vst.msk [vmem:[#allocation2 + $0x48] sm:$0xff] %vm280_vm0, %v4955_v0  ;;  %317 = vst.msk [vmem:[#allocation2 + $0x60] sm:$0xff] %vm280_vm0, %v4955_v0  ;;  %v2845_v51 = vunpack.c.l.bf16 %v2873_v60  ;;  %v2846_v44 = vunpack.c.h.bf16 %v2873_v60  ;;  %s4850_s25 = sld [smem:[#allocation4 + %s2527_s19]]  ;;  %p274_p13 = scmp.lt.s32.totalorder %s3273_s9, 1  ;;  %vm2629_vm6 = vcmask 1042432   ;;  %vm2633_vm7 = vcmask 1040384  }
  0x48   : > { %325 = vst.msk [vmem:[#allocation2 + $0x78] sm:$0xff] %vm280_vm0, %v4955_v0  ;;  %333 = vst.msk [vmem:[#allocation2 + $0x90] sm:$0xff] %vm280_vm0, %v4955_v0  ;;  %1754 = vmatpush1.bf16.msra.mxu0 %v3095_v24  ;;  %3020 = vmatpush1.bf16.msra.mxu1 %v3095_v24 }
  0x49   : > { %341 = vst.msk [vmem:[#allocation2 + $0xa8] sm:$0xff] %vm280_vm0, %v4955_v0  ;;  %349 = vst.msk [vmem:[#allocation2 + $0xc0] sm:$0xff] %vm280_vm0, %v4955_v0  ;;  %v560_v5 = vld [vmem:[#allocation2 + $0x9] sm:$0xff]  ;;  %1755 = vmatprep.subr.bf16.mxu0 %v3206_v1  ;;  %3005 = vmatprep.subr.bf16.mxu1 %v3206_v1  ;;  %s5072_s9 = smov (!%p274_p13, %s3273_s9), 1 }
  0x4a   : > { %357 = vst.msk [vmem:[#allocation2 + $0xd8] sm:$0xff] %vm280_vm0, %v4955_v0  ;;  %365 = vst.msk [vmem:[#allocation2 + $0xf0] sm:$0xff] %vm280_vm0, %v4955_v0  ;;  %v561_v6 = vld [vmem:[#allocation2 + $0x11] sm:$0xff]  ;;  %v488_v7 = vld [vmem:[#allocation2 + $0x8] sm:$0xff]  ;;  %s3043_s17 = smul.u32 48, %s5072_s9 }
  0x4b   : > { %373 = vst.msk [vmem:[#allocation2 + $0x108] sm:$0xff] %vm280_vm0, %v4955_v0  ;;  %381 = vst.msk [vmem:[#allocation2 + $0x120] sm:$0xff] %vm280_vm0, %v4955_v0  ;;  %v608_v12 = vpack.c.bf16 %v561_v6, %v560_v5  ;;  %v489_v13 = vld [vmem:[#allocation2 + $0x10] sm:$0xff]  ;;  %v490_v42 = vld [vmem:[#allocation2 + $0x18] sm:$0xff] }
  0x4c   : > { %389 = vst.msk [vmem:[#allocation2 + $0x138] sm:$0xff] %vm280_vm0, %v4955_v0  ;;  %397 = vst.msk [vmem:[#allocation2 + $0x150] sm:$0xff] %vm280_vm0, %v4955_v0  ;;  %v536_v16 = vpack.c.bf16 %v489_v13, %v488_v7  ;;  %1756 = vmatpush1.bf16.msra.mxu0 %v3096_v25  ;;  %3021 = vmatpush1.bf16.msra.mxu1 %v3096_v25  ;;  %s2526_s12 = scvt.s32.f32 %s4848_s21  ;;  %s4899_s9 = scalar_lea.vmem %s4953_s7, %s3043_s17 }
  0x4d   : > { %405 = vst.msk [vmem:[#allocation2 + $0x168] sm:$0xff] %vm280_vm0, %v4955_v0  ;;  %413 = vst.msk [vmem:[#allocation2 + $0x180] sm:$0xff] %vm280_vm0, %v4955_v0  ;;  %827 = vrot.lane.b32.xlu1 %v608_v12, %s3207_s8  ;;  %v3444_v40 = vld [vmem:[#allocation2 + $0x30] sm:$0xff]  ;;  %1757 = vmatprep.subr.bf16.mxu0 %v3206_v1  ;;  %v3098_v12 = vld [vmem:[%s4948_s2 + $0x18] sm:$0xff]   ;;  %s2529_s16 = scvt.s32.f32 %s4850_s25 }
  0x4e   : > { %302 = vst.msk [vmem:[#allocation2 + $0x38] sm:$0xff] %vm280_vm0, %v2805_v8  ;;  %303 = vst.msk [vmem:[#allocation2 + $0x40] sm:$0xff] %vm280_vm0, %v2806_v9  ;;  %755 = vrot.lane.b32.xlu0 %v536_v16, %s3208_s14  ;;  %v3426_v30 = vld [vmem:[#allocation2 + $0x48] sm:$0xff]  ;;  %v3487_v57 = vld [vmem:[#allocation2 + $0x60] sm:$0xff]  ;;  %3006 = vmatprep.subr.bf16.mxu1 %v3206_v1 }
  0x4f   : > { %294 = vst.msk [vmem:[#allocation2 + $0x20] sm:$0xff] %vm280_vm0, %v2801_v10  ;;  %295 = vst.msk [vmem:[#allocation2 + $0x28] sm:$0xff] %vm280_vm0, %v2802_v11  ;;  %v3497_v62 = vld [vmem:[#allocation2 + $0x78] sm:$0xff]  ;;  %v3523_v10 = vld [vmem:[#allocation2 + $0x90] sm:$0xff] }
  0x50   : > { %310 = vst.msk [vmem:[#allocation2 + $0x50] sm:$0xff] %vm280_vm0, %v2809_v14  ;;  %311 = vst.msk [vmem:[#allocation2 + $0x58] sm:$0xff] %vm280_vm0, %v2810_v15  ;;  %1758 = vmatpush1.bf16.msra.mxu0 %v3097_v48  ;;  %3022 = vmatpush1.bf16.msra.mxu1 %v3097_v48  ;;  %v3558_v24 = vld [vmem:[#allocation2 + $0xa8] sm:$0xff]  ;;  %v2876_v48 = vld [vmem:[%s3333_s27 + $0x70] sm:$0xff]  }
  0x51   : > { %318 = vst.msk [vmem:[#allocation2 + $0x68] sm:$0xff] %vm280_vm0, %v2813_v19  ;;  %319 = vst.msk [vmem:[#allocation2 + $0x70] sm:$0xff] %vm280_vm0, %v2814_v20  ;;  %1759 = vmatprep.subr.bf16.mxu0 %v3206_v1  ;;  %3007 = vmatprep.subr.bf16.mxu1 %v3206_v1  ;;  %v2868_v20 = vld [vmem:[%s3333_s27 + $0x30] sm:$0xff]  }
  0x52   : > { %326 = vst.msk [vmem:[#allocation2 + $0x80] sm:$0xff] %vm280_vm0, %v2817_v21  ;;  %327 = vst.msk [vmem:[#allocation2 + $0x88] sm:$0xff] %vm280_vm0, %v2818_v23  ;;  %v2825_v23 = vunpack.c.l.bf16 %v2868_v20  ;;  %v2826_v25 = vunpack.c.h.bf16 %v2868_v20  ;;  %v3753_v15 = vld [vmem:[#allocation2 + $0x108] sm:$0xff] }
  0x53   : > { %334 = vst.msk [vmem:[#allocation2 + $0x98] sm:$0xff] %vm280_vm0, %v2821_v31  ;;  %335 = vst.msk [vmem:[#allocation2 + $0xa0] sm:$0xff] %vm280_vm0, %v2822_v32  ;;  %v2877_v32 = vld [vmem:[%s3333_s27 + $0x78] sm:$0xff]  }
  0x54   : > { %1760 = vmatpush1.bf16.msra.mxu0 %v3098_v12  ;;  %3023 = vmatpush1.bf16.msra.mxu1 %v3098_v12  ;;  %4991 = vst [vmem:[#allocation10_spill] sm:$0xff] %v3558_v24  ;;  %342 = vst.msk [vmem:[#allocation2 + $0xb0] sm:$0xff] %vm280_vm0, %v2825_v23  ;;  %v3101_v12 = vld [vmem:[%s4948_s2] sm:$0xff]  }
  0x55   : > { %v3420_v27 = vld [vmem:[#allocation2 + $0x37] sm:$0xff]  ;;  %v3422_v28 = vld [vmem:[#allocation2 + $0x3f] sm:$0xff]  ;;  %v3499_v63 = vld [vmem:[#allocation2 + $0x47] sm:$0xff]  ;;  %1761 = vmatprep.subr.bf16.mxu0 %v3206_v1  ;;  %3008 = vmatprep.subr.bf16.mxu1 %v3206_v1  ;;  %343 = vst.msk [vmem:[#allocation2 + $0xb8] sm:$0xff] %vm280_vm0, %v2826_v25 }
  0x56   : > { %v3424_v29 = vld [vmem:[#allocation2 + $0x21] sm:$0xff]  ;;  %v3430_v33 = vpack.c.bf16 %v3422_v28, %v3420_v27  ;;  %v3432_v34 = vld [vmem:[#allocation2 + $0x29] sm:$0xff]  ;;  %v3440_v38 = vld [vmem:[#allocation2 + $0x38] sm:$0xff]  ;;  %382 = vst.msk [vmem:[#allocation2 + $0x128] sm:$0xff] %vm280_vm0, %v2845_v51 }
  0x57   : > { %v3434_v35 = vld [vmem:[#allocation2 + $0x1f] sm:$0xff]  ;;  %v3436_v36 = vld [vmem:[#allocation2 + $0x27] sm:$0xff]  ;;  %v689_v37 = vpack.c.bf16 %v3432_v34, %v3424_v29  ;;  %v3465_v47 = vld [vmem:[#allocation2 + $0x2f] sm:$0xff]  ;;  %383 = vst.msk [vmem:[#allocation2 + $0x130] sm:$0xff] %vm280_vm0, %v2846_v44 }
  0x58   : > { %v3442_v39 = vld [vmem:[#allocation2 + $0x40] sm:$0xff]  ;;  %1043 = vrot.lane.b32.xlu1 %v3430_v33, %s3207_s8  ;;  %v635_v41 = vpack.c.bf16 %v3436_v36, %v3434_v35  ;;  %v3470_v49 = vld [vmem:[#allocation2 + $0x31] sm:$0xff]  ;;  %v3476_v52 = vld [vmem:[#allocation2 + $0x28] sm:$0xff]  ;;  %v636_v14 = vpack.c.bf16 %v3420_v27, %v3465_v47  ;;  %1762 = vmatpush1.bf16.msra.mxu0 %v3099_v18 }
  0x59   : > { %971 = vrot.lane.b32.xlu0 %v689_v37, %s3208_s14  ;;  %v3461_v45 = vpack.c.bf16 %v3442_v39, %v3440_v38  ;;  %v3463_v46 = vld [vmem:[#allocation2 + $0x20] sm:$0xff]  ;;  %v3483_v55 = vld [vmem:[#allocation2 + $0x50] sm:$0xff]  ;;  %v3485_v56 = vld [vmem:[#allocation2 + $0x58] sm:$0xff]  ;;  %v538_v21 = vpack.c.bf16 %v3444_v40, %v3476_v52  ;;  %1763 = vmatprep.subr.bf16.mxu0 %v3206_v1 }
  0x5a   : > { %v3472_v50 = vld [vmem:[#allocation2 + $0x39] sm:$0xff]  ;;  %v537_v54 = vpack.c.bf16 %v3463_v46, %v490_v42  ;;  %v3495_v61 = vld [vmem:[#allocation2 + $0x68] sm:$0xff]  ;;  %v3503_v3 = vld [vmem:[#allocation2 + $0x70] sm:$0xff]  ;;  %v3541_v16 = vpack.c.bf16 %v3483_v55, %v3426_v30  ;;  %v2862_v42 = vunpack.c.h.bf16 %v2877_v32  ;;  %3024 = vmatpush1.bf16.msra.mxu1 %v3099_v18 }
  0x5b   : > { %v690_v58 = vpack.c.bf16 %v3472_v50, %v3470_v49  ;;  %v562_v59 = vld [vmem:[#allocation2 + $0x19] sm:$0xff]  ;;  %v3501_v2 = vld [vmem:[#allocation2 + $0x4f] sm:$0xff]  ;;  %v3543_v17 = vld [vmem:[#allocation2 + $0x41] sm:$0xff]  ;;  %3009 = vmatprep.subr.bf16.mxu1 %v3206_v1 }
  0x5c   : > { %899 = vrot.lane.b32.xlu1 %v635_v41, %s3209_s15  ;;  %v609_v6 = vpack.c.bf16 %v3424_v29, %v562_v59  ;;  %v3516_v7 = vpack.c.bf16 %v3501_v2, %v3499_v63  ;;  %v3518_v8 = vld [vmem:[#allocation2 + $0x80] sm:$0xff]  ;;  %v3520_v9 = vld [vmem:[#allocation2 + $0x88] sm:$0xff]  ;;  %v3530_v13 = vld [vmem:[#allocation2 + $0x98] sm:$0xff]  ;;  %v2861_v41 = vunpack.c.l.bf16 %v2877_v32  ;;  %415 = vst.msk [vmem:[#allocation2 + $0x190] sm:$0xff] %vm280_vm0, %v2862_v42  ;;  %v2858_v59 = vunpack.c.h.bf16 %v2876_v48 }
  0x5d   : > { %1094 = vrot.lane.b32.xlu0 %v3461_v45, %s3209_s15  ;;  %v3548_v19 = vld [vmem:[#allocation2 + $0x49] sm:$0xff]  ;;  %v3556_v22 = vld [vmem:[#allocation2 + $0xa0] sm:$0xff]  ;;  %v3564_v27 = vld [vmem:[#allocation2 + $0x57] sm:$0xff]  ;;  %v3632_v25 = vpack.c.bf16 %v3543_v17, %v3472_v50 }
  0x5e   : > { %4990 = vst [vmem:[#allocation9_spill] sm:$0xff] %v3556_v22  ;;  %v691_v26 = vpack.c.bf16 %v3548_v19, %v3543_v17  ;;  %v3100_v29 = vld [vmem:[%s4948_s2 + $0x8] sm:$0xff]   ;;  %v3572_v37 = vld [vmem:[#allocation2 + $0x5f] sm:$0xff]  ;;  %414 = vst.msk [vmem:[#allocation2 + $0x188] sm:$0xff] %vm280_vm0, %v2861_v41  ;;  %v638_v17 = vpack.c.bf16 %v3564_v27, %v3501_v2  ;;  %v3656_v41 = vpack.c.bf16 %v3503_v3, %v3495_v61 }
  0x5f   : > { %1764 = vmatpush1.bf16.msra.mxu0 %v3100_v29  ;;  %407 = vst.msk [vmem:[#allocation2 + $0x178] sm:$0xff] %vm280_vm0, %v2858_v59  ;;  %3025 = vmatpush1.bf16.msra.mxu1 %v3100_v29  ;;  %v3608_v18 = vld [vmem:[#allocation2 + $0x51] sm:$0xff]  ;;  %v3610_v20 = vld [vmem:[#allocation2 + $0x59] sm:$0xff]  ;;  %v3658_v42 = vld [vmem:[#allocation2 + $0x61] sm:$0xff] }
  0x60   : > { %757 = vrot.lane.b32.xlu1 %v537_v54, %s3208_s14  ;;  %v610_v54 = vpack.c.bf16 %v3470_v49, %v3432_v34  ;;  %1765 = vmatprep.subr.bf16.mxu0 %v3206_v1  ;;  %v637_v34 = vpack.c.bf16 %v3499_v63, %v3422_v28  ;;  %v3603_v49 = vpack.c.bf16 %v3487_v57, %v3485_v56  ;;  %v3103_v63 = vld [vmem:[%s4948_s2 + $0x70] sm:$0xff]   ;;  %v3636_v29 = vld [vmem:[#allocation2 + $0xb8] sm:$0xff]  ;;  %v3105_v59 = vld [vmem:[%s4948_s2 + $0x60] sm:$0xff]  }
  0x61   : > { %973 = vrot.lane.b32.xlu0 %v690_v58, %s3208_s14  ;;  %v2857_v58 = vunpack.c.l.bf16 %v2876_v48  ;;  %3010 = vmatprep.subr.bf16.mxu1 %v3206_v1  ;;  %v692_v28 = vpack.c.bf16 %v3610_v20, %v3608_v18  ;;  %v3624_v23 = vld [vmem:[#allocation2 + $0x6f] sm:$0xff]  ;;  %4993 = vst [vmem:[#allocation12_spill] sm:$0xff] %v3636_v29  ;;  %v432_v5 = vld [vmem:[#allocation2 + $0x87] sm:$0xff]  ;;  %v3774_v43 = vpack.c.bf16 %v3658_v42, %v3610_v20 }
  0x62   : > { %v3660_v48 = vld [vmem:[#allocation2 + $0x69] sm:$0xff]  ;;  %v575_v20 = vld [vmem:[#allocation2 + $0x81] sm:$0xff] }
  0x63   : > { %406 = vst.msk [vmem:[#allocation2 + $0x170] sm:$0xff] %vm280_vm0, %v2857_v58  ;;  %1766 = vmatpush1.bf16.msra.mxu0 %v3101_v12  ;;  %3026 = vmatpush1.bf16.msra.mxu1 %v3101_v12  ;;  %v2870_v58 = vld [vmem:[%s3333_s27 + $0x40] sm:$0xff]   ;;  %v3765_v4 = vld [vmem:[#allocation2 + $0x8f] sm:$0xff]  ;;  %4996 = vst [vmem:[#allocation15_spill] sm:$0xff] %v3774_v43 }
  0x64   : > { %829 = vrot.lane.b32.xlu1 %v609_v6, %s3207_s8  ;;  %v3587_v6 = vpack.c.bf16 %v3572_v37, %v3564_v27  ;;  %1767 = vmatprep.subr.bf16.mxu0 %v3206_v1  ;;  %v2833_v27 = vunpack.c.l.bf16 %v2870_v58  ;;  %v2874_v44 = vld [vmem:[%s3333_s27 + $0x60] sm:$0xff]  }
  0x65   : > { %1045 = vrot.lane.b32.xlu0 %v3516_v7, %s3207_s8  ;;  %3011 = vmatprep.subr.bf16.mxu1 %v3206_v1  ;;  %v3838_v53 = vld [vmem:[#allocation2 + $0xa7] sm:$0xff] }
  0x66   : > { %358 = vst.msk [vmem:[#allocation2 + $0xe0] sm:$0xff] %vm280_vm0, %v2833_v27  ;;  %v3718_v27 = vld [vmem:[#allocation2 + $0xd8] sm:$0xff] }
  0x68   : > { %901 = vrot.lane.b32.xlu1 %v636_v14, %s3209_s15  ;;  %v3102_v14 = vld [vmem:[%s4948_s2 + $0x78] sm:$0xff]  }
  0x69   : > { %1096 = vrot.lane.b32.xlu0 %v3541_v16, %s3209_s15  ;;  %1768 = vmatpush2.bf16.msra.mxu0 %v3102_v14 }
  0x6a   : > { %1769 = vmatprep.subr.bf16.mxu0 %v3206_v1  ;;  %3027 = vmatpush2.bf16.msra.mxu1 %v3102_v14  ;;  %v2871_v14 = vld [vmem:[%s3333_s27 + $0x48] sm:$0xff]  }
  0x6b   : > { %3012 = vmatprep.subr.bf16.mxu1 %v3206_v1  ;;  %v2838_v0 = vunpack.c.h.bf16 %v2871_v14 }
  0x6c   : > { %759 = vrot.lane.b32.xlu1 %v538_v21, %s3208_s14  ;;  %v3622_v21 = vld [vmem:[#allocation2 + $0x67] sm:$0xff] }
  0x6d   : > { %975 = vrot.lane.b32.xlu0 %v691_v26, %s3208_s14  ;;  %v3634_v26 = vld [vmem:[#allocation2 + $0xb0] sm:$0xff]  ;;  %v3641_v32 = vpack.c.bf16 %v3624_v23, %v3622_v21  ;;  %1770 = vmatpush2.bf16.msra.mxu0 %v3103_v63  ;;  %367 = vst.msk [vmem:[#allocation2 + $0x100] sm:$0xff] %vm280_vm0, %v2838_v0  ;;  %v3699_v0 = vpack.c.bf16 %v3608_v18, %v3548_v19 }
  0x6e   : > { %4992 = vst [vmem:[#allocation11_spill] sm:$0xff] %v3634_v26  ;;  %1771 = vmatprep.subr.bf16.mxu0 %v3206_v1  ;;  %3028 = vmatpush2.bf16.msra.mxu1 %v3103_v63  ;;  %v2837_v63 = vunpack.c.l.bf16 %v2871_v14  ;;  %v3109_v14 = vld [vmem:[%s4948_s2 + $0x40] sm:$0xff]  }
  0x6f   : > { %3013 = vmatprep.subr.bf16.mxu1 %v3206_v1  ;;  %4994 = vst [vmem:[#allocation13_spill] sm:$0xff] %v3699_v0 }
  0x70   : > { %831 = vrot.lane.b32.xlu1 %v610_v54, %s3207_s8  ;;  %v2869_v54 = vld [vmem:[%s3333_s27 + $0x38] sm:$0xff]   ;;  %366 = vst.msk [vmem:[#allocation2 + $0xf8] sm:$0xff] %vm280_vm0, %v2837_v63 }
  0x71   : > { %1047 = vrot.lane.b32.xlu0 %v3587_v6, %s3207_s8  ;;  %v2829_v12 = vunpack.c.l.bf16 %v2869_v54  ;;  %v2830_v2 = vunpack.c.h.bf16 %v2869_v54  ;;  %v3106_v54 = vld [vmem:[%s4948_s2 + $0x58] sm:$0xff]  }
  0x72   : > { %v573_v63 = vld [vmem:[#allocation2 + $0x71] sm:$0xff] }
  0x73   : > { %350 = vst.msk [vmem:[#allocation2 + $0xc8] sm:$0xff] %vm280_vm0, %v2829_v12  ;;  %351 = vst.msk [vmem:[#allocation2 + $0xd0] sm:$0xff] %vm280_vm0, %v2830_v2  ;;  %v3688_v12 = vld [vmem:[#allocation2 + $0x77] sm:$0xff]  ;;  %v3710_v2 = vld [vmem:[#allocation2 + $0xc0] sm:$0xff] }
  0x74   : > { %903 = vrot.lane.b32.xlu1 %v637_v34, %s3209_s15  ;;  %v2834_v34 = vunpack.c.h.bf16 %v2870_v58  ;;  %4995 = vst [vmem:[#allocation14_spill] sm:$0xff] %v3710_v2  ;;  %v3751_v31 = vld [vmem:[#allocation2 + $0x100] sm:$0xff]  ;;  %v640_v60 = vpack.c.bf16 %v3688_v12, %v3624_v23  ;;  %v3807_v23 = vld [vmem:[#allocation2 + $0x128] sm:$0xff] }
  0x75   : > { %1098 = vrot.lane.b32.xlu0 %v3603_v49, %s3209_s15 }
  0x76   : > { %359 = vst.msk [vmem:[#allocation2 + $0xe8] sm:$0xff] %vm280_vm0, %v2834_v34  ;;  %v639_v34 = vpack.c.bf16 %v3622_v21, %v3572_v37  ;;  %v3739_v37 = vld [vmem:[#allocation2 + $0xe0] sm:$0xff] }
  0x77   : > { %v3749_v18 = vld [vmem:[#allocation2 + $0xf8] sm:$0xff] }
  0x78   : > { %761 = vrot.lane.b32.xlu1 %v3461_v45, %s3208_s14  ;;  %v3104_v45 = vld [vmem:[%s4948_s2 + $0x68] sm:$0xff]  }
  0x79   : > { %977 = vrot.lane.b32.xlu0 %v692_v28, %s3208_s14  ;;  %1772 = vmatpush2.bf16.msra.mxu0 %v3104_v45  ;;  %v2872_v28 = vld [vmem:[%s3333_s27 + $0x50] sm:$0xff]  }
  0x7a   : > { %1773 = vmatprep.subr.bf16.mxu0 %v3206_v1  ;;  %v2841_v50 = vunpack.c.l.bf16 %v2872_v28  ;;  %3029 = vmatpush2.bf16.msra.mxu1 %v3104_v45  ;;  %v693_v45 = vpack.c.bf16 %v3660_v48, %v3658_v42  ;;  %v2842_v58 = vunpack.c.h.bf16 %v2872_v28  ;;  %v3714_v19 = vld [vmem:[#allocation2 + $0xd0] sm:$0xff]  ;;  %v3731_v28 = vpack.c.bf16 %v3518_v8, %v3497_v62 }
  0x7b   : > { %3014 = vmatprep.subr.bf16.mxu1 %v3206_v1  ;;  %v3798_v42 = vld [vmem:[#allocation2 + $0x89] sm:$0xff] }
  0x7c   : > { %833 = vrot.lane.b32.xlu1 %v3632_v25, %s3207_s8  ;;  %374 = vst.msk [vmem:[#allocation2 + $0x110] sm:$0xff] %vm280_vm0, %v2841_v50  ;;  %375 = vst.msk [vmem:[#allocation2 + $0x118] sm:$0xff] %vm280_vm0, %v2842_v58  ;;  %v3743_v58 = vld [vmem:[#allocation2 + $0xf0] sm:$0xff]  ;;  %v695_v51 = vpack.c.bf16 %v3798_v42, %v575_v20 }
  0x7d   : > { %1049 = vrot.lane.b32.xlu0 %v3641_v32, %s3207_s8  ;;  %1774 = vmatpush2.bf16.msra.mxu0 %v3105_v59  ;;  %v3741_v21 = vld [vmem:[#allocation2 + $0xe8] sm:$0xff] }
  0x7e   : > { %1775 = vmatprep.subr.bf16.mxu0 %v3206_v1  ;;  %3030 = vmatpush2.bf16.msra.mxu1 %v3105_v59  ;;  %v3107_v59 = vld [vmem:[%s4948_s2 + $0x50] sm:$0xff]  }
  0x7f   : > { %3015 = vmatprep.subr.bf16.mxu1 %v3206_v1 }
  0x80   : > { %905 = vrot.lane.b32.xlu1 %v638_v17, %s3209_s15  ;;  %v3690_v17 = vld [vmem:[#allocation2 + $0x7f] sm:$0xff] }
  0x81   : > { %1100 = vrot.lane.b32.xlu0 %v3656_v41, %s3209_s15  ;;  %v3704_v50 = vpack.c.bf16 %v3690_v17, %v3688_v12  ;;  %1776 = vmatpush2.bf16.msra.mxu0 %v3106_v54  ;;  %v2849_v12 = vunpack.c.l.bf16 %v2874_v44 }
  0x82   : > { %1777 = vmatprep.subr.bf16.mxu0 %v3206_v1  ;;  %3031 = vmatpush2.bf16.msra.mxu1 %v3106_v54  ;;  %v3736_v54 = vld [vmem:[#allocation2 + $0x79] sm:$0xff] }
  0x83   : > { %3016 = vmatprep.subr.bf16.mxu1 %v3206_v1  ;;  %v3776_v11 = vld [vmem:[#allocation2 + $0x110] sm:$0xff]  ;;  %390 = vst.msk [vmem:[#allocation2 + $0x140] sm:$0xff] %vm280_vm0, %v2849_v12  ;;  %v3830_v12 = vpack.c.bf16 %v3556_v22, %v3530_v13  ;;  %v3873_v22 = vld [vmem:[#allocation2 + $0x179] sm:$0xff] }
  0x84   : > { %763 = vrot.lane.b32.xlu1 %v3541_v16, %s3208_s14  ;;  %v3712_v16 = vld [vmem:[#allocation2 + $0xc8] sm:$0xff]  ;;  %5003 = vst [vmem:[#allocation22_spill] sm:$0xff] %v3873_v22 }
  0x85   : > { %979 = vrot.lane.b32.xlu0 %v693_v45, %s3208_s14  ;;  %1778 = vmatpush2.bf16.msra.mxu0 %v3107_v59  ;;  %v3108_v45 = vld [vmem:[%s4948_s2 + $0x48] sm:$0xff]  }
  0x86   : > { %1779 = vmatprep.subr.bf16.mxu0 %v3206_v1  ;;  %3032 = vmatpush2.bf16.msra.mxu1 %v3107_v59  ;;  %v694_v59 = vpack.c.bf16 %v3736_v54, %v573_v63 }
  0x87   : > { %3017 = vmatprep.subr.bf16.mxu1 %v3206_v1 }
  0x88   : > { %835 = vrot.lane.b32.xlu1 %v3699_v0, %s3207_s8  ;;  %v641_v0 = vpack.c.bf16 %v432_v5, %v3690_v17  ;;  %v3846_v17 = vpack.c.bf16 %v575_v20, %v3736_v54  ;;  %v534_v54 = vld [vmem:[#allocation2 + $0x178] sm:$0xff]  ;;  %v535_v20 = vld [vmem:[#allocation2 + $0x180] sm:$0xff] }
  0x89   : > { %1051 = vrot.lane.b32.xlu0 %v3704_v50, %s3207_s8  ;;  %1780 = vmatpush2.bf16.msra.mxu0 %v3108_v45 }
  0x8a   : > { %1781 = vmatprep.subr.bf16.mxu0 %v3206_v1  ;;  %3033 = vmatpush2.bf16.msra.mxu1 %v3108_v45  ;;  %v3782_v45 = vpack.c.bf16 %v3765_v4, %v432_v5  ;;  %v3840_v5 = vld [vmem:[#allocation2 + $0xaf] sm:$0xff]  ;;  %5000 = vst [vmem:[#allocation19_spill] sm:$0xff] %v3846_v17 }
  0x8b   : > { %3018 = vmatprep.subr.bf16.mxu1 %v3206_v1  ;;  %v3809_v1 = vld [vmem:[#allocation2 + $0x9f] sm:$0xff] }
  0x8c   : > { %907 = vrot.lane.b32.xlu1 %v639_v34, %s3209_s15  ;;  %v3778_v34 = vld [vmem:[#allocation2 + $0x118] sm:$0xff]  ;;  %4997 = vst [vmem:[#allocation16_spill] sm:$0xff] %v3782_v45 }
  0x8d   : > { %1102 = vrot.lane.b32.xlu0 %v3731_v28, %s3209_s15  ;;  %1782 = vmatpush2.bf16.msra.mxu0 %v3109_v14 }
  0x8e   : > { %3034 = vmatpush2.bf16.msra.mxu1 %v3109_v14  ;;  %v3805_v14 = vld [vmem:[#allocation2 + $0x120] sm:$0xff] }
  0x90   : > { %765 = vrot.lane.b32.xlu1 %v3603_v49, %s3208_s14  ;;  %v3796_v49 = vpack.c.bf16 %v3523_v10, %v3520_v9 }
  0x91   : > { %981 = vrot.lane.b32.xlu0 %v694_v59, %s3208_s14  ;;  %v434_v59 = vld [vmem:[#allocation2 + $0x97] sm:$0xff] }
  0x94   : > { %837 = vrot.lane.b32.xlu1 %v3774_v43, %s3207_s8  ;;  %v3821_v43 = vpack.c.bf16 %v3809_v1, %v434_v59 }
  0x95   : > { %1053 = vrot.lane.b32.xlu0 %v3782_v45, %s3207_s8  ;;  %v715_v45 = vld [vmem:[#allocation2 + $0x1af] sm:$0xff] }
  0x96   : > { %4999 = vst [vmem:[#allocation18_spill] sm:$0xff] %v3821_v43 }
  0x98   : > { %909 = vrot.lane.b32.xlu1 %v640_v60, %s3209_s15  ;;  %v3817_v60 = vpack.c.bf16 %v573_v63, %v3660_v48  ;;  %v3832_v48 = vld [vmem:[#allocation2 + $0x99] sm:$0xff] }
  0x99   : > { %1104 = vrot.lane.b32.xlu0 %v3796_v49, %s3209_s15 }
  0x9a   : > { %4998 = vst [vmem:[#allocation17_spill] sm:$0xff] %v3817_v60 }
  0x9c   : > { %767 = vrot.lane.b32.xlu1 %v3656_v41, %s3208_s14  ;;  %v577_v41 = vld [vmem:[#allocation2 + $0x91] sm:$0xff] }
  0x9d   : > { %983 = vrot.lane.b32.xlu0 %v695_v51, %s3208_s14  ;;  %v696_v63 = vpack.c.bf16 %v3832_v48, %v577_v41  ;;  %v2850_v51 = vunpack.c.h.bf16 %v2874_v44  ;;  %v687_v44 = vld [vmem:[#allocation2 + $0x191] sm:$0xff] }
  0x9f   : > { %391 = vst.msk [vmem:[#allocation2 + $0x148] sm:$0xff] %vm280_vm0, %v2850_v51  ;;  %v3857_v51 = vpack.c.bf16 %v3634_v26, %v3558_v24  ;;  %v3871_v26 = vpack.c.bf16 %v535_v20, %v534_v54  ;;  %v714_v24 = vld [vmem:[#allocation2 + $0x1a7] sm:$0xff]  ;;  %v721_v20 = vld [vmem:[#allocation2 + $0x1b0] sm:$0xff] }
  0xa0   : > { %839 = vrot.lane.b32.xlu1 %v3817_v60, %s3207_s8  ;;  %v3867_v60 = vld [vmem:[%s4948_s2 + $0x88] sm:$0xff]  }
  0xa1   : > { %1055 = vrot.lane.b32.xlu0 %v3821_v43, %s3207_s8  ;;  %v688_v43 = vld [vmem:[#allocation2 + $0x199] sm:$0xff]  ;;  %5002 = vst [vmem:[#allocation21_spill] sm:$0xff] %v3871_v26  ;;  %2931 = vmatprep.subr.bf16.mxu1 %v3867_v60  ;;  %v720_v54 = vld [vmem:[#allocation2 + $0x1a8] sm:$0xff] }
  0xa4   : > { %911 = vrot.lane.b32.xlu1 %v641_v0, %s3209_s15  ;;  %v3851_v0 = vpack.c.bf16 %v3840_v5, %v3838_v53 }
  0xa5   : > { %1106 = vrot.lane.b32.xlu0 %v3830_v12, %s3209_s15 }
  0xa6   : > { %5001 = vst [vmem:[#allocation20_spill] sm:$0xff] %v3851_v0 }
  0xa8   : > { %769 = vrot.lane.b32.xlu1 %v3731_v28, %s3208_s14  ;;  %v712_v28 = vpack.c.bf16 %v688_v43, %v687_v44  ;;  %v3875_v43 = vld [vmem:[#allocation2 + $0x181] sm:$0xff] }
  0xa9   : > { %985 = vrot.lane.b32.xlu0 %v696_v63, %s3208_s14  ;;  %v642_v63 = vpack.c.bf16 %v434_v59, %v3765_v4  ;;  %5004 = vst [vmem:[#allocation23_spill] sm:$0xff] %v3875_v43  ;;  %v3883_v4 = vpack.c.bf16 %v3875_v43, %v3873_v22  ;;  %v718_v59 = vpack.c.bf16 %v715_v45, %v714_v24  ;;  %v580_v43 = vld [vmem:[#allocation2 + $0xa9] sm:$0xff]  ;;  %v438_v45 = vld [vmem:[#allocation2 + $0xb7] sm:$0xff] }
  0xaa   : > { %v3925_v22 = vld [vmem:[#allocation2 + $0xcf] sm:$0xff] }
  0xab   : > { %5005 = vst [vmem:[#allocation24_spill] sm:$0xff] %v3883_v4 }
  0xac   : > { %841 = vrot.lane.b32.xlu1 %v3846_v17, %s3207_s8  ;;  %v2875_v17 = vld [vmem:[%s3333_s27 + $0x68] sm:$0xff]  }
  0xad   : > { %1057 = vrot.lane.b32.xlu0 %v3851_v0, %s3207_s8  ;;  %v2853_v44 = vunpack.c.l.bf16 %v2875_v17  ;;  %v2854_v0 = vunpack.c.h.bf16 %v2875_v17  ;;  %v3889_v17 = vld [vmem:[#allocation2 + $0x197] sm:$0xff] }
  0xae   : > { %5007 = vst [vmem:[#allocation26_spill] sm:$0xff] %v3889_v17 }
  0xaf   : > { %398 = vst.msk [vmem:[#allocation2 + $0x158] sm:$0xff] %vm280_vm0, %v2853_v44  ;;  %399 = vst.msk [vmem:[#allocation2 + $0x160] sm:$0xff] %vm280_vm0, %v2854_v0  ;;  %v579_v44 = vld [vmem:[#allocation2 + $0xa1] sm:$0xff] }
  0xb0   : > { %1108 = vrot.lane.b32.xlu1 %v3857_v51, %s3209_s15  ;;  %v697_v24 = vpack.c.bf16 %v580_v43, %v579_v44 }
  0xb1   : > { %1017 = vrot.lane.b32.xlu0 %v712_v28, %s3208_s14  ;;  %v3887_v28 = vld [vmem:[#allocation2 + $0x18f] sm:$0xff] }
  0xb2   : > { %5006 = vst [vmem:[#allocation25_spill] sm:$0xff] %v3887_v28  ;;  %v658_v0 = vpack.c.bf16 %v3889_v17, %v3887_v28 }
  0xb4   : > { %913 = vrot.lane.b32.xlu1 %v642_v63, %s3209_s15  ;;  %v724_v63 = vpack.c.bf16 %v721_v20, %v720_v54  ;;  %v416_v20 = vld [vmem:[#allocation2 + $0x7] sm:$0xff] }
  0xb5   : > { %801 = vrot.lane.b32.xlu0 %v3871_v26, %s3208_s14  ;;  %v3898_v26 = vld [vmem:[#allocation2 + $0xbf] sm:$0xff] }
  0xb8   : > { %873 = vrot.lane.b32.xlu1 %v3883_v4, %s3207_s8  ;;  %v3903_v4 = vpack.c.bf16 %v577_v41, %v3798_v42  ;;  %v3917_v42 = vpack.c.bf16 %v3710_v2, %v3636_v29  ;;  %v581_v41 = vld [vmem:[#allocation2 + $0xb1] sm:$0xff]  ;;  %v5010_v2 = vpack.c.bf16 %v3476_v52, %v3463_v46 }
  0xb9   : > { %1089 = vrot.lane.b32.xlu0 %v718_v59, %s3207_s8  ;;  %v3907_v59 = vpack.c.bf16 %v3898_v26, %v438_v45 }
  0xba   : > { %5008 = vst [vmem:[#allocation27_spill] sm:$0xff] %v3903_v4 }
  0xbb   : > { %5009 = vst [vmem:[#allocation28_spill] sm:$0xff] %v3907_v59 }
  0xbc   : > { %945 = vrot.lane.b32.xlu1 %v658_v0, %s3209_s15  ;;  %v417_v0 = vld [vmem:[#allocation2 + $0xf] sm:$0xff] }
  0xbd   : > { %1140 = vrot.lane.b32.xlu0 %v724_v63, %s3209_s15  ;;  %v643_v63 = vpack.c.bf16 %v3838_v53, %v3809_v1  ;;  %v464_v17 = vpack.c.bf16 %v417_v0, %v416_v20  ;;  %v440_v1 = vld [vmem:[#allocation2 + $0xc7] sm:$0xff]  ;;  %v3935_v0 = vpack.c.bf16 %v579_v44, %v3832_v48  ;;  %v3952_v48 = vpack.c.bf16 %v3714_v19, %v3712_v16 }
  0xbe   : > { %v583_v44 = vld [vmem:[#allocation2 + $0xc1] sm:$0xff] }
  0xbf   : > { %v828_v54 = vpop.permute.xlu1 %827 }
  0xc0   : > { %771 = vrot.lane.b32.xlu1 %v3796_v49, %s3208_s14  ;;  %v756_v49 = vpop.permute.xlu0 %755 }
  0xc1   : > { %987 = vrot.lane.b32.xlu0 %v697_v24, %s3208_s14  ;;  %v3919_v24 = vld [vmem:[#allocation2 + $0xb9] sm:$0xff] }
  0xc2   : > { %v698_v28 = vpack.c.bf16 %v3919_v24, %v581_v41 }
  0xc4   : > { %843 = vrot.lane.b32.xlu1 %v3903_v4, %s3207_s8 }
  0xc5   : > { %1059 = vrot.lane.b32.xlu0 %v3907_v59, %s3207_s8  ;;  %v1144_v59 = vsel %vm280_vm0, %v464_v17, %v756_v49 }
  0xc6   : > { %v1216_v49 = vsel %vm1214_vm1, %v1144_v59, %v828_v54  ;;  %v3954_v59 = vld [vmem:[#allocation2 + $0xc9] sm:$0xff] }
  0xc8   : > { %915 = vrot.lane.b32.xlu1 %v643_v63, %s3209_s15  ;;  %v3939_v63 = vpack.c.bf16 %v3925_v22, %v440_v1 }
  0xc9   : > { %1110 = vrot.lane.b32.xlu0 %v3917_v42, %s3209_s15 }
  0xca   : > { %v1044_v53 = vpop.permute.xlu1 %1043  ;;  %5011 = vst [vmem:[#allocation29_spill] sm:$0xff] %v3939_v63 }
  0xcb   : > { %v972_v4 = vpop.permute.xlu0 %971 }
  0xcc   : > { %v1338_v20 = vsel %vm280_vm0, %v5010_v2, %v972_v4  ;;  %773 = vrot.lane.b32.xlu1 %v3830_v12, %s3208_s14  ;;  %v644_v12 = vpack.c.bf16 %v438_v45, %v3840_v5  ;;  %v418_v4 = vld [vmem:[#allocation2 + $0x17] sm:$0xff]  ;;  %v699_v5 = vpack.c.bf16 %v3954_v59, %v583_v44 }
  0xcd   : > { %989 = vrot.lane.b32.xlu0 %v698_v28, %s3208_s14  ;;  %v1409_v46 = vsel %vm1214_vm1, %v1338_v20, %v1044_v53  ;;  %v442_v53 = vld [vmem:[#allocation2 + $0xd7] sm:$0xff]  ;;  %v3961_v20 = vld [vmem:[#allocation2 + $0xdf] sm:$0xff] }
  0xce   : > { %v900_v17 = vpop.permute.xlu1 %899 }
  0xcf   : > { %v1095_v29 = vpop.permute.xlu0 %1094  ;;  %v1265_v52 = vsel %vm1263_vm2, %v1216_v49, %v900_v17  ;;  %v3965_v49 = vpack.c.bf16 %v581_v41, %v580_v43 }
  0xd0   : > { %845 = vrot.lane.b32.xlu1 %v3935_v0, %s3207_s8  ;;  %v1457_v2 = vsel %vm1263_vm2, %v1409_v46, %v1095_v29  ;;  %v465_v29 = vpack.c.bf16 %v3434_v35, %v418_v4  ;;  %v3970_v35 = vpack.c.bf16 %v3961_v20, %v442_v53 }
  0xd1   : > { %1061 = vrot.lane.b32.xlu0 %v3939_v63, %s3207_s8  ;;  %1783 = vmatprep.mubr.bf16.mxu0 %v1457_v2 }
  0xd2   : > { %1784 = vmatmul.mubr.bf16.vlgmr.msra.gmra.mxu0 %v1265_v52  ;;  %v758_v28 = vpop.permute.xlu1 %757  ;;  %v5012_v52 = vpack.c.bf16 %v3440_v38, %v3444_v40  ;;  %v3987_v38 = vpack.c.bf16 %v3739_v37, %v3718_v27 }
  0xd3   : > { %v974_v54 = vpop.permute.xlu0 %973  ;;  %v1147_v46 = vsel %vm280_vm0, %v465_v29, %v758_v28  ;;  %v645_v28 = vpack.c.bf16 %v440_v1, %v3898_v26  ;;  %v3989_v29 = vld [vmem:[#allocation2 + $0xd9] sm:$0xff] }
  0xd4   : > { %917 = vrot.lane.b32.xlu1 %v644_v12, %s3209_s15  ;;  %v1341_v2 = vsel %vm280_vm0, %v5012_v52, %v974_v54  ;;  %v585_v54 = vld [vmem:[#allocation2 + $0xd1] sm:$0xff]  ;;  %v5013_v52 = vpack.c.bf16 %v3465_v47, %v3436_v36 }
  0xd5   : > { %1112 = vrot.lane.b32.xlu0 %v3952_v48, %s3209_s15  ;;  %v700_v26 = vpack.c.bf16 %v3989_v29, %v585_v54 }
  0xd6   : > { %v830_v45 = vpop.permute.xlu1 %829 }
  0xd7   : > { %v1046_v17 = vpop.permute.xlu0 %1045  ;;  %v1218_v12 = vsel %vm1214_vm1, %v1147_v46, %v830_v45  ;;  %v3995_v45 = vld [vmem:[#allocation2 + $0xef] sm:$0xff]  ;;  %v4000_v46 = vpack.c.bf16 %v583_v44, %v3919_v24 }
  0xd8   : > { %775 = vrot.lane.b32.xlu1 %v3857_v51, %s3208_s14  ;;  %v1411_v63 = vsel %vm1214_vm1, %v1341_v2, %v1046_v17 }
  0xd9   : > { %991 = vrot.lane.b32.xlu0 %v699_v5, %s3208_s14 }
  0xda   : > { %v902_v4 = vpop.permute.xlu1 %901 }
  0xdb   : > { %v1097_v51 = vpop.permute.xlu0 %1096  ;;  %v1268_v43 = vsel %vm1263_vm2, %v1218_v12, %v902_v4  ;;  %v5014_v4 = vpack.c.bf16 %v3426_v30, %v3442_v39  ;;  %v4025_v30 = vpack.c.bf16 %v3743_v58, %v3741_v21 }
  0xdc   : > { %847 = vrot.lane.b32.xlu1 %v3965_v49, %s3207_s8  ;;  %v1460_v41 = vsel %vm1263_vm2, %v1411_v63, %v1097_v51  ;;  %v444_v63 = vld [vmem:[#allocation2 + $0xe7] sm:$0xff] }
  0xdd   : > { %1063 = vrot.lane.b32.xlu0 %v3970_v35, %s3207_s8  ;;  %1791 = vmatprep.mubr.bf16.mxu0 %v1460_v41  ;;  %v4008_v12 = vpack.c.bf16 %v3995_v45, %v444_v63  ;;  %v646_v41 = vpack.c.bf16 %v442_v53, %v3925_v22 }
  0xde   : > { %1792 = vmatmul.mubr.bf16.gmra.mxu0 %v1268_v43  ;;  %v760_v40 = vpop.permute.xlu1 %759 }
  0xdf   : > { %v976_v5 = vpop.permute.xlu0 %975  ;;  %v1150_v2 = vsel %vm280_vm0, %v5013_v52, %v760_v40  ;;  %v4027_v40 = vld [vmem:[#allocation2 + $0xe9] sm:$0xff]  ;;  %v4038_v52 = vpack.c.bf16 %v585_v54, %v3954_v59 }
  0xe0   : > { %919 = vrot.lane.b32.xlu1 %v645_v28, %s3209_s15  ;;  %v1344_v51 = vsel %vm280_vm0, %v5014_v4, %v976_v5  ;;  %v587_v28 = vld [vmem:[#allocation2 + $0xe1] sm:$0xff] }
  0xe1   : > { %1114 = vrot.lane.b32.xlu0 %v3987_v38, %s3209_s15  ;;  %v701_v22 = vpack.c.bf16 %v4027_v40, %v587_v28 }
  0xe2   : > { %v832_v1 = vpop.permute.xlu1 %831 }
  0xe3   : > { %v1048_v17 = vpop.permute.xlu0 %1047 }
  0xe4   : > { %777 = vrot.lane.b32.xlu1 %v3917_v42, %s3208_s14  ;;  %v1220_v42 = vsel %vm1214_vm1, %v1150_v2, %v832_v1  ;;  %v1413_v24 = vsel %vm1214_vm1, %v1344_v51, %v1048_v17  ;;  %v4033_v1 = vld [vmem:[#allocation2 + $0xff] sm:$0xff]  ;;  %v5015_v51 = vpack.c.bf16 %v3485_v56, %v3483_v55  ;;  %v4061_v55 = vpack.c.bf16 %v3751_v31, %v3749_v18 }
  0xe5   : > { %993 = vrot.lane.b32.xlu0 %v700_v26, %s3208_s14  ;;  %v446_v26 = vld [vmem:[#allocation2 + $0xf7] sm:$0xff] }
  0xe6   : > { %v904_v43 = vpop.permute.xlu1 %903  ;;  %v4044_v4 = vpack.c.bf16 %v4033_v1, %v446_v26 }
  0xe7   : > { %v1099_v44 = vpop.permute.xlu0 %1098  ;;  %v1271_v36 = vsel %vm1263_vm2, %v1220_v42, %v904_v43 }
  0xe8   : > { %849 = vrot.lane.b32.xlu1 %v4000_v46, %s3207_s8  ;;  %v1463_v47 = vsel %vm1263_vm2, %v1413_v24, %v1099_v44  ;;  %v647_v44 = vpack.c.bf16 %v444_v63, %v3961_v20 }
  0xe9   : > { %1065 = vrot.lane.b32.xlu0 %v4008_v12, %s3207_s8  ;;  %1799 = vmatprep.mubr.bf16.mxu0 %v1463_v47  ;;  %v4063_v47 = vld [vmem:[#allocation2 + $0xf9] sm:$0xff] }
  0xea   : > { %1800 = vmatmul.mubr.bf16.gmra.mxu0 %v1271_v36  ;;  %v762_v39 = vpop.permute.xlu1 %761  ;;  %v589_v36 = vld [vmem:[#allocation2 + $0xf1] sm:$0xff] }
  0xeb   : > { %v978_v5 = vpop.permute.xlu0 %977  ;;  %v1153_v2 = vsel %vm280_vm0, %v3430_v33, %v762_v39  ;;  %v702_v20 = vpack.c.bf16 %v4063_v47, %v589_v36  ;;  %v448_v39 = vld [vmem:[#allocation2 + $0x107] sm:$0xff] }
  0xec   : > { %921 = vrot.lane.b32.xlu1 %v646_v41, %s3209_s15  ;;  %v1347_v42 = vsel %vm280_vm0, %v5015_v51, %v978_v5  ;;  %v4069_v5 = vld [vmem:[#allocation2 + $0x10f] sm:$0xff]  ;;  %v5016_v51 = vpack.c.bf16 %v3495_v61, %v3487_v57  ;;  %v4097_v57 = vpack.c.bf16 %v3776_v11, %v3753_v15 }
  0xed   : > { %1116 = vrot.lane.b32.xlu0 %v4025_v30, %s3209_s15 }
  0xee   : > { %v834_v53 = vpop.permute.xlu1 %833 }
  0xef   : > { %v1050_v17 = vpop.permute.xlu0 %1049  ;;  %v1222_v43 = vsel %vm1214_vm1, %v1153_v2, %v834_v53  ;;  %v4074_v53 = vpack.c.bf16 %v587_v28, %v3989_v29  ;;  %v4080_v2 = vpack.c.bf16 %v4069_v5, %v448_v39 }
  0xf0   : > { %779 = vrot.lane.b32.xlu1 %v3952_v48, %s3208_s14  ;;  %v1415_v48 = vsel %vm1214_vm1, %v1347_v42, %v1050_v17 }
  0xf1   : > { %995 = vrot.lane.b32.xlu0 %v701_v22, %s3208_s14 }
  0xf2   : > { %v906_v24 = vpop.permute.xlu1 %905 }
  0xf3   : > { %v1101_v59 = vpop.permute.xlu0 %1100  ;;  %v1274_v54 = vsel %vm1263_vm2, %v1222_v43, %v906_v24 }
  0xf4   : > { %851 = vrot.lane.b32.xlu1 %v4038_v52, %s3207_s8  ;;  %v1466_v33 = vsel %vm1263_vm2, %v1415_v48, %v1101_v59  ;;  %v648_v48 = vpack.c.bf16 %v446_v26, %v3995_v45  ;;  %v591_v59 = vld [vmem:[#allocation2 + $0x101] sm:$0xff] }
  0xf5   : > { %1067 = vrot.lane.b32.xlu0 %v4044_v4, %s3207_s8  ;;  %1807 = vmatprep.mubr.bf16.mxu0 %v1466_v33 }
  0xf6   : > { %1808 = vmatmul.mubr.bf16.gmra.mxu0 %v1274_v54  ;;  %v764_v56 = vpop.permute.xlu1 %763  ;;  %v4099_v54 = vld [vmem:[#allocation2 + $0x109] sm:$0xff] }
  0xf7   : > { %v980_v41 = vpop.permute.xlu0 %979  ;;  %v1156_v17 = vsel %vm280_vm0, %v3516_v7, %v764_v56  ;;  %v703_v45 = vpack.c.bf16 %v4099_v54, %v591_v59  ;;  %v4105_v56 = vld [vmem:[#allocation2 + $0x11f] sm:$0xff] }
  0xf8   : > { %923 = vrot.lane.b32.xlu1 %v647_v44, %s3209_s15  ;;  %v1350_v42 = vsel %vm280_vm0, %v5016_v51, %v980_v41  ;;  %v450_v44 = vld [vmem:[#allocation2 + $0x117] sm:$0xff] }
  0xf9   : > { %1118 = vrot.lane.b32.xlu0 %v4061_v55, %s3209_s15 }
  0xfa   : > { %v836_v63 = vpop.permute.xlu1 %835 }
  0xfb   : > { %v1052_v22 = vpop.permute.xlu0 %1051  ;;  %v1224_v43 = vsel %vm1214_vm1, %v1156_v17, %v836_v63  ;;  %v5017_v17 = vpack.c.bf16 %v3497_v62, %v3503_v3  ;;  %v4133_v62 = vpack.c.bf16 %v3805_v14, %v3778_v34 }
  0xfc   : > { %781 = vrot.lane.b32.xlu1 %v3987_v38, %s3208_s14  ;;  %v1417_v38 = vsel %vm1214_vm1, %v1350_v42, %v1052_v22  ;;  %v4116_v22 = vpack.c.bf16 %v4105_v56, %v450_v44 }
  0xfd   : > { %997 = vrot.lane.b32.xlu0 %v702_v20, %s3208_s14  ;;  %v4110_v20 = vpack.c.bf16 %v589_v36, %v4027_v40 }
  0xfe   : > { %v908_v24 = vpop.permute.xlu1 %907 }
  0xff   : > { %v1103_v29 = vpop.permute.xlu0 %1102  ;;  %v1277_v28 = vsel %vm1263_vm2, %v1224_v43, %v908_v24  ;;  %v649_v24 = vpack.c.bf16 %v448_v39, %v4033_v1  ;;  %v452_v39 = vld [vmem:[#allocation2 + $0x127] sm:$0xff] }
 0x100   : > { %853 = vrot.lane.b32.xlu1 %v4074_v53, %s3207_s8  ;;  %v1469_v7 = vsel %vm1263_vm2, %v1417_v38, %v1103_v29  ;;  %v593_v38 = vld [vmem:[#allocation2 + $0x111] sm:$0xff]  ;;  %v4135_v29 = vld [vmem:[#allocation2 + $0x119] sm:$0xff] }
 0x101   : > { %1069 = vrot.lane.b32.xlu0 %v4080_v2, %s3207_s8  ;;  %1815 = vmatprep.mubr.bf16.mxu0 %v1469_v7  ;;  %v704_v1 = vpack.c.bf16 %v4135_v29, %v593_v38 }
 0x102   : > { %1816 = vmatmul.mubr.bf16.gmra.mxu0 %v1277_v28  ;;  %v766_v61 = vpop.permute.xlu1 %765 }
 0x103   : > { %v982_v33 = vpop.permute.xlu0 %981  ;;  %v1159_v63 = vsel %vm280_vm0, %v3587_v6, %v766_v61 }
 0x104   : > { %925 = vrot.lane.b32.xlu1 %v648_v48, %s3209_s15  ;;  %v1353_v51 = vsel %vm280_vm0, %v5017_v17, %v982_v33  ;;  %v4141_v48 = vld [vmem:[#allocation2 + $0x12f] sm:$0xff]  ;;  %v4144_v33 = vpack.c.bf16 %v591_v59, %v4063_v47 }
 0x105   : > { %1120 = vrot.lane.b32.xlu0 %v4097_v57, %s3209_s15  ;;  %v4159_v59 = vld [vmem:[#allocation2 + $0x130] sm:$0xff] }
 0x106   : > { %v838_v26 = vpop.permute.xlu1 %837 }
 0x107   : > { %v1054_v41 = vpop.permute.xlu0 %1053  ;;  %v1226_v42 = vsel %vm1214_vm1, %v1159_v63, %v838_v26  ;;  %v4152_v26 = vpack.c.bf16 %v4141_v48, %v452_v39 }
 0x108   : > { %783 = vrot.lane.b32.xlu1 %v4025_v30, %s3208_s14  ;;  %v1419_v30 = vsel %vm1214_vm1, %v1353_v51, %v1054_v41  ;;  %v5019_v41 = vpack.c.bf16 %v3520_v9, %v3518_v8  ;;  %v4171_v8 = vpack.c.bf16 %v4159_v59, %v3807_v23  ;;  %v595_v9 = vld [vmem:[#allocation2 + $0x121] sm:$0xff] }
 0x109   : > { %999 = vrot.lane.b32.xlu0 %v703_v45, %s3208_s14  ;;  %5018 = vst [vmem:[#allocation30_spill] sm:$0xff] %v4152_v26 }
 0x10a   : > { %v910_v43 = vpop.permute.xlu1 %909 }
 0x10b   : > { %v1105_v40 = vpop.permute.xlu0 %1104  ;;  %v1280_v36 = vsel %vm1263_vm2, %v1226_v42, %v910_v43  ;;  %v650_v42 = vpack.c.bf16 %v450_v44, %v4069_v5 }
 0x10c   : > { %855 = vrot.lane.b32.xlu1 %v4110_v20, %s3207_s8  ;;  %v1472_v6 = vsel %vm1263_vm2, %v1419_v30, %v1105_v40  ;;  %v4173_v40 = vld [vmem:[#allocation2 + $0x129] sm:$0xff] }
 0x10d   : > { %1071 = vrot.lane.b32.xlu0 %v4116_v22, %s3207_s8  ;;  %1823 = vmatprep.mubr.bf16.mxu0 %v1472_v6  ;;  %v705_v5 = vpack.c.bf16 %v4173_v40, %v595_v9  ;;  %v4179_v6 = vld [vmem:[#allocation2 + $0x137] sm:$0xff] }
 0x10e   : > { %1824 = vmatmul.mubr.bf16.gmra.mxu0 %v1280_v36  ;;  %v768_v3 = vpop.permute.xlu1 %767 }
 0x10f   : > { %v984_v28 = vpop.permute.xlu0 %983  ;;  %v1162_v45 = vsel %vm280_vm0, %v3641_v32, %v768_v3 }
 0x110   : > { %927 = vrot.lane.b32.xlu1 %v649_v24, %s3209_s15  ;;  %v1356_v63 = vsel %vm280_vm0, %v5019_v41, %v984_v28  ;;  %v4181_v24 = vld [vmem:[#allocation2 + $0x13f] sm:$0xff]  ;;  %v4184_v28 = vpack.c.bf16 %v593_v38, %v4099_v54 }
 0x111   : > { %1122 = vrot.lane.b32.xlu0 %v4133_v62, %s3209_s15  ;;  %v4200_v54 = vld [vmem:[#allocation2 + $0x140] sm:$0xff] }
 0x112   : > { %v840_v7 = vpop.permute.xlu1 %839 }
 0x113   : > { %v1056_v61 = vpop.permute.xlu0 %1055  ;;  %v1228_v17 = vsel %vm1214_vm1, %v1162_v45, %v840_v7 }
 0x114   : > { %785 = vrot.lane.b32.xlu1 %v4061_v55, %s3208_s14  ;;  %v1421_v55 = vsel %vm1214_vm1, %v1356_v63, %v1056_v61  ;;  %v4195_v61 = vpack.c.bf16 %v4181_v24, %v4179_v6  ;;  %v4198_v63 = vld [vmem:[#allocation2 + $0x138] sm:$0xff] }
 0x115   : > { %1001 = vrot.lane.b32.xlu0 %v704_v1, %s3208_s14  ;;  %v5020_v1 = vpack.c.bf16 %v3530_v13, %v3523_v10  ;;  %v651_v10 = vpack.c.bf16 %v452_v39, %v4105_v56  ;;  %v4217_v56 = vld [vmem:[#allocation2 + $0x17f] sm:$0xff]  ;;  %v597_v39 = vld [vmem:[#allocation2 + $0x131] sm:$0xff] }
 0x116   : > { %v912_v47 = vpop.permute.xlu1 %911  ;;  %5021 = vst [vmem:[#allocation31_spill] sm:$0xff] %v4195_v61 }
 0x117   : > { %v1107_v51 = vpop.permute.xlu0 %1106  ;;  %v1283_v32 = vsel %vm1263_vm2, %v1228_v17, %v912_v47  ;;  %v4210_v17 = vld [vmem:[#allocation2 + $0x177] sm:$0xff]  ;;  %v4214_v47 = vpack.c.bf16 %v4200_v54, %v4198_v63 }
 0x118   : > { %857 = vrot.lane.b32.xlu1 %v4144_v33, %s3207_s8  ;;  %v1475_v43 = vsel %vm1263_vm2, %v1421_v55, %v1107_v51 }
 0x119   : > { %1073 = vrot.lane.b32.xlu0 %v4152_v26, %s3207_s8  ;;  %1831 = vmatprep.mubr.bf16.mxu0 %v1475_v43 }
 0x11a   : > { %1832 = vmatmul.mubr.bf16.gmra.mxu0 %v1283_v32  ;;  %v770_v30 = vpop.permute.xlu1 %769  ;;  %v4219_v32 = vld [vmem:[#allocation2 + $0x139] sm:$0xff] }
 0x11b   : > { %v986_v36 = vpop.permute.xlu0 %985  ;;  %v1165_v13 = vsel %vm280_vm0, %v3704_v50, %v770_v30  ;;  %v4223_v50 = vld [vmem:[#allocation2 + $0x198] sm:$0xff] }
 0x11c   : > { %929 = vrot.lane.b32.xlu1 %v650_v42, %s3209_s15  ;;  %v1359_v7 = vsel %vm280_vm0, %v5020_v1, %v986_v36  ;;  %v4221_v42 = vld [vmem:[#allocation2 + $0x190] sm:$0xff]  ;;  %v4229_v36 = vpack.c.bf16 %v4217_v56, %v4210_v17  ;;  %v4236_v1 = vld [vmem:[#allocation2 + $0x147] sm:$0xff] }
 0x11d   : > { %1124 = vrot.lane.b32.xlu0 %v4171_v8, %s3209_s15 }
 0x11e   : > { %v842_v44 = vpop.permute.xlu1 %841 }
 0x11f   : > { %v1058_v3 = vpop.permute.xlu0 %1057  ;;  %v1230_v55 = vsel %vm1214_vm1, %v1165_v13, %v842_v44  ;;  %v685_v44 = vpack.c.bf16 %v4223_v50, %v4221_v42 }
 0x120   : > { %787 = vrot.lane.b32.xlu1 %v4097_v57, %s3208_s14  ;;  %v1423_v45 = vsel %vm1214_vm1, %v1359_v7, %v1058_v3  ;;  %v4238_v7 = vld [vmem:[#allocation2 + $0x14f] sm:$0xff] }
 0x121   : > { %1003 = vrot.lane.b32.xlu0 %v705_v5, %s3208_s14  ;;  %v706_v5 = vpack.c.bf16 %v4219_v32, %v597_v39 }
 0x122   : > { %v1109_v41 = vpop.permute.xlu1 %1108 }
 0x123   : > { %v1018_v38 = vpop.permute.xlu0 %1017  ;;  %v1478_v57 = vsel %vm1263_vm2, %v1423_v45, %v1109_v41  ;;  %v4241_v41 = vpack.c.bf16 %v595_v9, %v4135_v29  ;;  %v4256_v29 = vld [vmem:[#allocation2 + $0x150] sm:$0xff] }
 0x124   : > { %1839 = vmatprep.mubr.bf16.mxu0 %v1478_v57  ;;  %859 = vrot.lane.b32.xlu1 %v4184_v28, %s3207_s8  ;;  %v1407_v13 = vsel %vm280_vm0, %v685_v44, %v1018_v38  ;;  %5024 = vst [vmem:[#allocation34_spill] sm:$0xff] %v4256_v29  ;;  %v652_v38 = vpack.c.bf16 %v4179_v6, %v4141_v48  ;;  %v3111_v44 = vld [vmem:[%s4948_s2 + $0x80] sm:$0xff]  }
 0x125   : > { %1075 = vrot.lane.b32.xlu0 %v4195_v61, %s3207_s8 }
 0x126   : > { %v914_v51 = vpop.permute.xlu1 %913 }
 0x127   : > { %v802_v43 = vpop.permute.xlu0 %801  ;;  %v1286_v30 = vsel %vm1263_vm2, %v1230_v55, %v914_v51 }
 0x128   : > { %1840 = vmatmul.mubr.bf16.gmra.mxu0 %v1286_v30  ;;  %931 = vrot.lane.b32.xlu1 %v651_v10, %s3209_s15  ;;  %v1213_v57 = vsel %vm280_vm0, %v4229_v36, %v802_v43  ;;  %v4250_v10 = vpack.c.bf16 %v4238_v7, %v4236_v1  ;;  %v4254_v30 = vld [vmem:[#allocation2 + $0x148] sm:$0xff] }
 0x129   : > { %1126 = vrot.lane.b32.xlu0 %v4214_v47, %s3209_s15  ;;  %5023 = vst [vmem:[#allocation33_spill] sm:$0xff] %v4254_v30 }
 0x12a   : > { %v874_v3 = vpop.permute.xlu1 %873  ;;  %5022 = vst [vmem:[#allocation32_spill] sm:$0xff] %v4250_v10 }
 0x12b   : > { %v1090_v45 = vpop.permute.xlu0 %1089  ;;  %v1262_v55 = vsel %vm1214_vm1, %v1213_v57, %v874_v3  ;;  %v4272_v3 = vpack.c.bf16 %v4256_v29, %v4254_v30  ;;  %v599_v57 = vld [vmem:[#allocation2 + $0x141] sm:$0xff]  ;;  %v5033_v30 = vld [vmem:[#allocation15_spill] sm:$0xff] }
 0x12c   : > { %789 = vrot.lane.b32.xlu1 %v4133_v62, %s3208_s14  ;;  %v1455_v62 = vsel %vm1214_vm1, %v1407_v13, %v1090_v45  ;;  %v4274_v13 = vld [vmem:[#allocation2 + $0x149] sm:$0xff] }
 0x12d   : > { %1005 = vrot.lane.b32.xlu0 %v706_v5, %s3208_s14  ;;  %v707_v6 = vpack.c.bf16 %v4274_v13, %v599_v57 }
 0x12e   : > { %v946_v51 = vpop.permute.xlu1 %945 }
 0x12f   : > { %v1141_v9 = vpop.permute.xlu0 %1140  ;;  %v1334_v43 = vsel %vm1263_vm2, %v1262_v55, %v946_v51  ;;  %v4283_v51 = vld [vmem:[#allocation2 + $0x157] sm:$0xff] }
 0x130   : > { %v1526_v5 = vsel %vm1263_vm2, %v1455_v62, %v1141_v9  ;;  %861 = vrot.lane.b32.xlu1 %v4241_v41, %s3207_s8  ;;  %v4285_v62 = vld [vmem:[#allocation2 + $0x15f] sm:$0xff] }
 0x131   : > { %1077 = vrot.lane.b32.xlu0 %v4250_v10, %s3207_s8  ;;  %1967 = vmatprep.mubr.bf16.mxu1 %v1526_v5  ;;  %v4297_v5 = vpack.c.bf16 %v4285_v62, %v4283_v51  ;;  %v5028_v10 = vld [vmem:[#allocation9_spill] sm:$0xff] }
 0x132   : > { %1968 = vmatmul.mubr.bf16.vlgmr.msra.gmra.mxu1 %v1334_v43  ;;  %v772_v45 = vpop.permute.xlu1 %771 }
 0x133   : > { %2932 = vmatpush3.bf16.msra.mxu1 %v3867_v60  ;;  %v988_v48 = vpop.permute.xlu0 %987  ;;  %2935 = vmatprep.mubr.msk.bf16.mxu1 %vm280_vm0, %v3632_v25  ;;  %v4290_v25 = vpack.c.bf16 %v597_v39, %v4173_v40  ;;  %v5025_v60 = vld [vmem:[#allocation16_spill] sm:$0xff] }
 0x134   : > { %933 = vrot.lane.b32.xlu1 %v652_v38, %s3209_s15  ;;  %2933 = vmatprep.subr.bf16.mxu1 %v3111_v44  ;;  %v1168_v43 = vsel %vm280_vm0, %v5025_v60, %v772_v45  ;;  %5026 = vst [vmem:[#allocation16_spill] sm:$0xff] %v4297_v5  ;;  %v5027_v38 = vld [vmem:[#allocation10_spill] sm:$0xff]  ;;  %v4306_v39 = vld [vmem:[#allocation2 + $0x158] sm:$0xff]  ;;  %v4308_v45 = vld [vmem:[#allocation2 + $0x160] sm:$0xff] }
 0x135   : > { %1128 = vrot.lane.b32.xlu0 %v4272_v3, %s3209_s15  ;;  %v5029_v61 = vpack.c.bf16 %v5027_v38, %v5028_v10  ;;  %5031 = vst [vmem:[#allocation10_spill] sm:$0xff] %v4306_v39  ;;  %5032 = vst [vmem:[#allocation9_spill] sm:$0xff] %v4308_v45  ;;  %v653_v10 = vpack.c.bf16 %v4236_v1, %v4181_v24  ;;  %v5034_v1 = vld [vmem:[#allocation17_spill] sm:$0xff] }
 0x136   : > { %v844_v55 = vpop.permute.xlu1 %843  ;;  %v460_v38 = vld [vmem:[#allocation2 + $0x167] sm:$0xff] }
 0x137   : > { %2934 = vmatpush3.bf16.msra.mxu1 %v3111_v44  ;;  %v1060_v9 = vpop.permute.xlu0 %1059  ;;  %v1362_v44 = vsel %vm280_vm0, %v5029_v61, %v988_v48  ;;  %v1232_v29 = vsel %vm1214_vm1, %v1168_v43, %v844_v55  ;;  %v4323_v48 = vpack.c.bf16 %v4308_v45, %v4306_v39  ;;  %v601_v55 = vld [vmem:[#allocation2 + $0x151] sm:$0xff] }
 0x138   : > { %791 = vrot.lane.b32.xlu1 %v4171_v8, %s3208_s14  ;;  %v5030_v8 = vld [vmem:[#allocation13_spill] sm:$0xff] }
 0x139   : > { %1007 = vrot.lane.b32.xlu0 %v707_v6, %s3208_s14  ;;  %v1425_v6 = vsel %vm1214_vm1, %v1362_v44, %v1060_v9  ;;  %v4333_v44 = vld [vmem:[#allocation2 + $0x16f] sm:$0xff] }
 0x13a   : > { %2936 = vmatmul.mubr.msk.bf16.vlgmr.msra.gmra.mxu1 %vm280_vm0, %v5030_v8  ;;  %v916_v40 = vpop.permute.xlu1 %915  ;;  %v5035_v8 = vld [vmem:[#allocation19_spill] sm:$0xff] }
 0x13b   : > { %v1111_v60 = vpop.permute.xlu0 %1110  ;;  %v1289_v26 = vsel %vm1263_vm2, %v1232_v29, %v916_v40  ;;  %2939 = vmatprep.mubr.msk.bf16.mxu1 %vm280_vm0, %v5033_v30  ;;  %v4325_v30 = vld [vmem:[#allocation2 + $0x159] sm:$0xff]  ;;  %v4340_v40 = vpack.c.bf16 %v599_v57, %v4219_v32  ;;  %v4355_v32 = vld [vmem:[#allocation2 + $0x168] sm:$0xff] }
 0x13c   : > { %v1481_v61 = vsel %vm1263_vm2, %v1425_v6, %v1111_v60  ;;  %863 = vrot.lane.b32.xlu1 %v4290_v25, %s3207_s8  ;;  %v708_v24 = vpack.c.bf16 %v4325_v30, %v601_v55  ;;  %v5036_v6 = vld [vmem:[#allocation18_spill] sm:$0xff] }
 0x13d   : > { %1079 = vrot.lane.b32.xlu0 %v4297_v5, %s3207_s8  ;;  %1847 = vmatprep.mubr.bf16.mxu0 %v1481_v61  ;;  %v4346_v61 = vpack.c.bf16 %v4333_v44, %v460_v38  ;;  %v5038_v5 = vld [vmem:[#allocation11_spill] sm:$0xff] }
 0x13e   : > { %1848 = vmatmul.mubr.bf16.gmra.mxu0 %v1289_v26  ;;  %v774_v29 = vpop.permute.xlu1 %773 }
 0x13f   : > { %v990_v9 = vpop.permute.xlu0 %989  ;;  %v1171_v60 = vsel %vm280_vm0, %v5036_v6, %v774_v29 }
 0x140   : > { %935 = vrot.lane.b32.xlu1 %v653_v10, %s3209_s15  ;;  %v4348_v10 = vld [vmem:[#allocation2 + $0x170] sm:$0xff] }
 0x141   : > { %1130 = vrot.lane.b32.xlu0 %v4323_v48, %s3209_s15 }
 0x142   : > { %2940 = vmatmul.mubr.msk.bf16.gmra.mxu1 %vm280_vm0, %v5034_v1  ;;  %v846_v43 = vpop.permute.xlu1 %845  ;;  %v5037_v1 = vld [vmem:[#allocation12_spill] sm:$0xff] }
 0x143   : > { %v1062_v26 = vpop.permute.xlu0 %1061  ;;  %2943 = vmatprep.mubr.msk.bf16.mxu1 %vm280_vm0, %v5035_v8  ;;  %v5039_v45 = vpack.c.bf16 %v5037_v1, %v5038_v5  ;;  %v654_v5 = vpack.c.bf16 %v4283_v51, %v4238_v7 }
 0x144   : > { %793 = vrot.lane.b32.xlu1 %v4214_v47, %s3208_s14  ;;  %v1234_v47 = vsel %vm1214_vm1, %v1171_v60, %v846_v43  ;;  %v603_v43 = vld [vmem:[#allocation2 + $0x161] sm:$0xff] }
 0x145   : > { %1009 = vrot.lane.b32.xlu0 %v708_v24, %s3208_s14  ;;  %v1365_v8 = vsel %vm280_vm0, %v5039_v45, %v990_v9  ;;  %v4368_v45 = vpack.c.bf16 %v4348_v10, %v4355_v32  ;;  %v5040_v9 = vld [vmem:[#allocation27_spill] sm:$0xff] }
 0x146   : > { %v918_v39 = vpop.permute.xlu1 %917  ;;  %v1427_v57 = vsel %vm1214_vm1, %v1365_v8, %v1062_v26  ;;  %v4372_v26 = vld [vmem:[#allocation2 + $0x169] sm:$0xff]  ;;  %v4383_v8 = vpack.c.bf16 %v601_v55, %v4274_v13 }
 0x147   : > { %v1113_v29 = vpop.permute.xlu0 %1112  ;;  %v1292_v24 = vsel %vm1263_vm2, %v1234_v47, %v918_v39  ;;  %v709_v7 = vpack.c.bf16 %v4372_v26, %v603_v43  ;;  %v5041_v47 = vld [vmem:[#allocation20_spill] sm:$0xff] }
 0x148   : > { %v1484_v6 = vsel %vm1263_vm2, %v1427_v57, %v1113_v29  ;;  %865 = vrot.lane.b32.xlu1 %v4340_v40, %s3207_s8 }
 0x149   : > { %1081 = vrot.lane.b32.xlu0 %v4346_v61, %s3207_s8  ;;  %1855 = vmatprep.mubr.bf16.mxu0 %v1484_v6 }
 0x14a   : > { %1856 = vmatmul.mubr.bf16.gmra.mxu0 %v1292_v24  ;;  %2944 = vmatmul.mubr.msk.bf16.gmra.mxu1 %vm280_vm0, %v5040_v9  ;;  %v776_v39 = vpop.permute.xlu1 %775 }
 0x14b   : > { %v992_v60 = vpop.permute.xlu0 %991  ;;  %2947 = vmatprep.mubr.msk.bf16.mxu1 %vm280_vm0, %v3935_v0  ;;  %v1174_v57 = vsel %vm280_vm0, %v5041_v47, %v776_v39  ;;  %v5042_v0 = vld [vmem:[#allocation14_spill] sm:$0xff]  ;;  %v5046_v47 = vld [vmem:[#allocation25_spill] sm:$0xff] }
 0x14c   : > { %937 = vrot.lane.b32.xlu1 %v654_v5, %s3209_s15  ;;  %v5043_v29 = vpack.c.bf16 %v3712_v16, %v5042_v0  ;;  %v655_v16 = vpack.c.bf16 %v460_v38, %v4285_v62  ;;  %v5047_v0 = vld [vmem:[#allocation28_spill] sm:$0xff] }
 0x14d   : > { %1132 = vrot.lane.b32.xlu0 %v4368_v45, %s3209_s15 }
 0x14e   : > { %v848_v51 = vpop.permute.xlu1 %847  ;;  %v1368_v24 = vsel %vm280_vm0, %v5043_v29, %v992_v60 }
 0x14f   : > { %v1064_v1 = vpop.permute.xlu0 %1063  ;;  %v1236_v6 = vsel %vm1214_vm1, %v1174_v57, %v848_v51 }
 0x150   : > { %795 = vrot.lane.b32.xlu1 %v4272_v3, %s3208_s14  ;;  %v1429_v3 = vsel %vm1214_vm1, %v1368_v24, %v1064_v1  ;;  %v632_v1 = vld [vmem:[#allocation2 + $0x187] sm:$0xff] }
 0x151   : > { %1011 = vrot.lane.b32.xlu0 %v709_v7, %s3208_s14  ;;  %v5044_v7 = vld [vmem:[#allocation22_spill] sm:$0xff]  ;;  %v716_v57 = vpack.c.bf16 %v5046_v47, %v632_v1  ;;  %v719_v47 = vld [vmem:[#allocation2 + $0x1a0] sm:$0xff] }
 0x152   : > { %2948 = vmatmul.mubr.msk.bf16.gmra.mxu1 %vm280_vm0, %v3965_v49  ;;  %v920_v5 = vpop.permute.xlu1 %919  ;;  %v605_v49 = vld [vmem:[#allocation2 + $0x171] sm:$0xff]  ;;  %v4422_v24 = vld [vmem:[#allocation2 + $0x188] sm:$0xff] }
 0x153   : > { %v1115_v13 = vpop.permute.xlu0 %1114  ;;  %v1295_v55 = vsel %vm1263_vm2, %v1236_v6, %v920_v5  ;;  %2951 = vmatprep.mubr.msk.bf16.mxu1 %vm280_vm0, %v4000_v46  ;;  %v710_v51 = vpack.c.bf16 %v5044_v7, %v605_v49  ;;  %v5045_v46 = vld [vmem:[#allocation21_spill] sm:$0xff] }
 0x154   : > { %v1487_v9 = vsel %vm1263_vm2, %v1429_v3, %v1115_v13  ;;  %867 = vrot.lane.b32.xlu1 %v4383_v8, %s3207_s8  ;;  %v656_v13 = vpack.c.bf16 %v4210_v17, %v4333_v44  ;;  %v5049_v17 = vld [vmem:[#allocation23_spill] sm:$0xff] }
 0x155   : > { %1083 = vrot.lane.b32.xlu0 %v4229_v36, %s3207_s8  ;;  %1863 = vmatprep.mubr.bf16.mxu0 %v1487_v9  ;;  %v4416_v36 = vpack.c.bf16 %v603_v43, %v4325_v30 }
 0x156   : > { %1864 = vmatmul.mubr.bf16.gmra.mxu0 %v1295_v55  ;;  %v778_v39 = vpop.permute.xlu1 %777 }
 0x157   : > { %v994_v60 = vpop.permute.xlu0 %993  ;;  %v1177_v29 = vsel %vm280_vm0, %v5047_v0, %v778_v39 }
 0x158   : > { %939 = vrot.lane.b32.xlu1 %v655_v16, %s3209_s15  ;;  %v713_v16 = vld [vmem:[#allocation2 + $0x19f] sm:$0xff] }
 0x159   : > { %1134 = vrot.lane.b32.xlu0 %v5045_v46, %s3209_s15  ;;  %v5052_v46 = vpack.c.bf16 %v3741_v21, %v3739_v37  ;;  %v657_v37 = vpack.c.bf16 %v632_v1, %v4217_v56  ;;  %v723_v21 = vpack.c.bf16 %v719_v47, %v4223_v50  ;;  %v5053_v50 = vpack.c.bf16 %v3749_v18, %v3743_v58 }
 0x15a   : > { %2952 = vmatmul.mubr.msk.bf16.gmra.mxu1 %vm280_vm0, %v4038_v52  ;;  %v850_v62 = vpop.permute.xlu1 %849  ;;  %v5048_v52 = vpack.c.bf16 %v3718_v27, %v3714_v19  ;;  %v722_v19 = vpack.c.bf16 %v4221_v42, %v4422_v24  ;;  %v4439_v27 = vld [vmem:[#allocation2 + $0x189] sm:$0xff] }
 0x15b   : > { %v1066_v38 = vpop.permute.xlu0 %1065  ;;  %2955 = vmatprep.mubr.msk.bf16.mxu1 %vm280_vm0, %v4074_v53  ;;  %v1238_v6 = vsel %vm1214_vm1, %v1177_v29, %v850_v62  ;;  %v711_v44 = vpack.c.bf16 %v4439_v27, %v5049_v17  ;;  %v5055_v17 = vld [vmem:[#allocation24_spill] sm:$0xff] }
 0x15c   : > { %797 = vrot.lane.b32.xlu1 %v4323_v48, %s3208_s14  ;;  %v1371_v53 = vsel %vm280_vm0, %v5048_v52, %v994_v60  ;;  %v5050_v60 = vld [vmem:[#allocation26_spill] sm:$0xff] }
 0x15d   : > { %1013 = vrot.lane.b32.xlu0 %v710_v51, %s3208_s14  ;;  %v1431_v30 = vsel %vm1214_vm1, %v1371_v53, %v1066_v38  ;;  %v717_v7 = vpack.c.bf16 %v713_v16, %v5050_v60  ;;  %v5051_v51 = vld [vmem:[#allocation29_spill] sm:$0xff] }
 0x15e   : > { %v922_v48 = vpop.permute.xlu1 %921 }
 0x15f   : > { %v1117_v43 = vpop.permute.xlu0 %1116  ;;  %v1298_v5 = vsel %vm1263_vm2, %v1238_v6, %v922_v48 }
 0x160   : > { %v1490_v3 = vsel %vm1263_vm2, %v1431_v30, %v1117_v43  ;;  %869 = vrot.lane.b32.xlu1 %v4416_v36, %s3207_s8 }
 0x161   : > { %1085 = vrot.lane.b32.xlu0 %v716_v57, %s3207_s8  ;;  %1871 = vmatprep.mubr.bf16.mxu0 %v1490_v3  ;;  %v5054_v3 = vpack.c.bf16 %v3753_v15, %v3751_v31  ;;  %v3119_v15 = vld [vmem:[#allocation2 + $0x191] sm:$0xff] }
 0x162   : > { %1872 = vmatmul.mubr.bf16.gmra.mxu0 %v1298_v5  ;;  %2956 = vmatmul.mubr.msk.bf16.gmra.mxu1 %vm280_vm0, %v4110_v20  ;;  %v780_v55 = vpop.permute.xlu1 %779  ;;  %v630_v20 = vpack.c.bf16 %v605_v49, %v4372_v26  ;;  %v728_v31 = vpack.c.bf16 %v3119_v15, %v4439_v27 }
 0x163   : > { %v996_v9 = vpop.permute.xlu0 %995  ;;  %2959 = vmatprep.mubr.msk.bf16.mxu1 %vm280_vm0, %v4144_v33  ;;  %v1180_v33 = vsel %vm280_vm0, %v5051_v51, %v780_v55  ;;  %v726_v51 = vld [vmem:[#allocation2 + $0x1a9] sm:$0xff] }
 0x164   : > { %941 = vrot.lane.b32.xlu1 %v656_v13, %s3209_s15  ;;  %v1374_v62 = vsel %vm280_vm0, %v5052_v46, %v996_v9 }
 0x165   : > { %1136 = vrot.lane.b32.xlu0 %v722_v19, %s3209_s15 }
 0x166   : > { %v852_v42 = vpop.permute.xlu1 %851 }
 0x167   : > { %v1068_v39 = vpop.permute.xlu0 %1067  ;;  %v1240_v38 = vsel %vm1214_vm1, %v1180_v33, %v852_v42  ;;  %v3120_v42 = vld [vmem:[#allocation2 + $0x199] sm:$0xff]  ;;  %v727_v33 = vld [vmem:[#allocation2 + $0x1b1] sm:$0xff] }
 0x168   : > { %799 = vrot.lane.b32.xlu1 %v4368_v45, %s3208_s14  ;;  %v1433_v26 = vsel %vm1214_vm1, %v1374_v62, %v1068_v39  ;;  %v5056_v62 = vpack.c.bf16 %v3778_v34, %v3776_v11  ;;  %v730_v47 = vpack.c.bf16 %v727_v33, %v726_v51 }
 0x169   : > { %1015 = vrot.lane.b32.xlu0 %v711_v44, %s3208_s14  ;;  %v725_v44 = vld [vmem:[#allocation2 + $0x1a1] sm:$0xff] }
 0x16a   : > { %2960 = vmatmul.mubr.msk.bf16.gmra.mxu1 %vm280_vm0, %v4184_v28  ;;  %v924_v45 = vpop.permute.xlu1 %923  ;;  %v729_v39 = vpack.c.bf16 %v725_v44, %v3120_v42 }
 0x16b   : > { %v1119_v49 = vpop.permute.xlu0 %1118  ;;  %v1301_v57 = vsel %vm1263_vm2, %v1240_v38, %v924_v45  ;;  %2963 = vmatprep.mubr.msk.bf16.mxu1 %vm280_vm0, %v4241_v41 }
 0x16c   : > { %v1493_v0 = vsel %vm1263_vm2, %v1433_v26, %v1119_v49  ;;  %871 = vrot.lane.b32.xlu1 %v630_v20, %s3207_s8 }
 0x16d   : > { %1087 = vrot.lane.b32.xlu0 %v717_v7, %s3207_s8  ;;  %1879 = vmatprep.mubr.bf16.mxu0 %v1493_v0 }
 0x16e   : > { %1880 = vmatmul.mubr.bf16.gmra.mxu0 %v1301_v57  ;;  %v782_v28 = vpop.permute.xlu1 %781 }
 0x16f   : > { %v998_v29 = vpop.permute.xlu0 %997  ;;  %v1183_v56 = vsel %vm280_vm0, %v3970_v35, %v782_v28 }
 0x170   : > { %943 = vrot.lane.b32.xlu1 %v657_v37, %s3209_s15  ;;  %v1377_v1 = vsel %vm280_vm0, %v5053_v50, %v998_v29 }
 0x171   : > { %1138 = vrot.lane.b32.xlu0 %v723_v21, %s3209_s15 }
 0x172   : > { %2964 = vmatmul.mubr.msk.bf16.gmra.mxu1 %vm280_vm0, %v4290_v25  ;;  %v854_v41 = vpop.permute.xlu1 %853 }
 0x173   : > { %v1070_v52 = vpop.permute.xlu0 %1069  ;;  %2967 = vmatprep.mubr.msk.bf16.mxu1 %vm280_vm0, %v4340_v40  ;;  %v1242_v53 = vsel %vm1214_vm1, %v1183_v56, %v854_v41  ;;  %v5057_v56 = vpack.c.bf16 %v3807_v23, %v3805_v14  ;;  %v679_v14 = vpack.c.bf16 %v4198_v63, %v4159_v59 }
 0x174   : > { %v1435_v48 = vsel %vm1214_vm1, %v1377_v1, %v1070_v52 }
 0x176   : > { %v926_v6 = vpop.permute.xlu1 %925 }
 0x177   : > { %v1121_v30 = vpop.permute.xlu0 %1120  ;;  %v1304_v25 = vsel %vm1263_vm2, %v1242_v53, %v926_v6 }
 0x178   : > { %v1496_v43 = vsel %vm1263_vm2, %v1435_v48, %v1121_v30 }
 0x179   : > { %1887 = vmatprep.mubr.bf16.mxu0 %v1496_v43 }
 0x17a   : > { %1888 = vmatmul.mubr.bf16.gmra.mxu0 %v1304_v25  ;;  %2968 = vmatmul.mubr.msk.bf16.gmra.mxu1 %vm280_vm0, %v4383_v8  ;;  %v784_v35 = vpop.permute.xlu1 %783 }
 0x17b   : > { %v1000_v40 = vpop.permute.xlu0 %999  ;;  %2971 = vmatprep.mubr.msk.bf16.mxu1 %vm280_vm0, %v4416_v36  ;;  %v1186_v5 = vsel %vm280_vm0, %v4008_v12, %v784_v35 }
 0x17c   : > { %v1380_v13 = vsel %vm280_vm0, %v5054_v3, %v1000_v40 }
 0x17e   : > { %v856_v18 = vpop.permute.xlu1 %855 }
 0x17f   : > { %v1072_v58 = vpop.permute.xlu0 %1071  ;;  %v1244_v19 = vsel %vm1214_vm1, %v1186_v5, %v856_v18 }
 0x180   : > { %v1437_v55 = vsel %vm1214_vm1, %v1380_v13, %v1072_v58 }
 0x182   : > { %2972 = vmatmul.mubr.msk.bf16.gmra.mxu1 %vm280_vm0, %v630_v20  ;;  %v928_v8 = vpop.permute.xlu1 %927 }
 0x183   : > { %v1123_v9 = vpop.permute.xlu0 %1122  ;;  %v1307_v36 = vsel %vm1263_vm2, %v1244_v19, %v928_v8  ;;  %2975 = vmatprep.mubr.msk.bf16.mxu1 %vm280_vm0, %v5055_v17 }
 0x184   : > { %v1499_v12 = vsel %vm1263_vm2, %v1437_v55, %v1123_v9 }
 0x185   : > { %1895 = vmatprep.mubr.bf16.mxu0 %v1499_v12 }
 0x186   : > { %1896 = vmatmul.mubr.bf16.gmra.mxu0 %v1307_v36  ;;  %v786_v16 = vpop.permute.xlu1 %785 }
 0x187   : > { %v1002_v20 = vpop.permute.xlu0 %1001  ;;  %v1189_v46 = vsel %vm280_vm0, %v4044_v4, %v786_v16 }
 0x188   : > { %v1383_v27 = vsel %vm280_vm0, %v5056_v62, %v1002_v20  ;;  %v5059_v20 = vld [vmem:[#allocation30_spill] sm:$0xff] }
 0x18a   : > { %2976 = vmatmul.mubr.msk.bf16.gmra.mxu1 %vm280_vm0, %v728_v31  ;;  %v858_v60 = vpop.permute.xlu1 %857 }
 0x18b   : > { %v1074_v7 = vpop.permute.xlu0 %1073  ;;  %2979 = vmatprep.mubr.msk.bf16.mxu1 %vm280_vm0, %v729_v39  ;;  %v1246_v38 = vsel %vm1214_vm1, %v1189_v46, %v858_v60 }
 0x18c   : > { %v1439_v26 = vsel %vm1214_vm1, %v1383_v27, %v1074_v7 }
 0x18e   : > { %v930_v45 = vpop.permute.xlu1 %929 }
 0x18f   : > { %v1125_v49 = vpop.permute.xlu0 %1124  ;;  %v1310_v57 = vsel %vm1263_vm2, %v1246_v38, %v930_v45 }
 0x190   : > { %v1502_v0 = vsel %vm1263_vm2, %v1439_v26, %v1125_v49  ;;  %v5060_v49 = vld [vmem:[#allocation34_spill] sm:$0xff] }
 0x191   : > { %1903 = vmatprep.mubr.bf16.mxu0 %v1502_v0 }
 0x192   : > { %v4518_v37 = vpop.f32.mrf.mxu0  ;;  %1904 = vmatmul.mubr.bf16.gmra.mxu0 %v1310_v57  ;;  %2980 = vmatmul.mubr.msk.bf16.gmra.mxu1 %vm280_vm0, %v730_v47  ;;  %v788_v11 = vpop.permute.xlu1 %787  ;;  %v5061_v57 = vld [vmem:[#allocation10_spill] sm:$0xff] }
 0x193   : > { %v1004_v34 = vpop.permute.xlu0 %1003  ;;  %v1192_v52 = vsel %vm280_vm0, %v4080_v2, %v788_v11  ;;  %v681_v0 = vpack.c.bf16 %v5061_v57, %v5060_v49 }
 0x194   : > { %v1787_v4 = vpop.f32.mrf.mxu0  ;;  %v1386_v50 = vsel %vm280_vm0, %v5057_v56, %v1004_v34 }
 0x196   : > { %v4521_v21 = vpop.f32.mrf.mxu0  ;;  %v860_v28 = vpop.permute.xlu1 %859 }
 0x197   : > { %v1076_v29 = vpop.permute.xlu0 %1075  ;;  %v1248_v1 = vsel %vm1214_vm1, %v1192_v52, %v860_v28 }
 0x198   : > { %v1790_v41 = vpop.f32.mrf.mxu0  ;;  %v1441_v6 = vsel %vm1214_vm1, %v1386_v50, %v1076_v29  ;;  %v5062_v29 = vld [vmem:[#allocation31_spill] sm:$0xff] }
 0x19a   : > { %v932_v53 = vpop.permute.xlu1 %931 }
 0x19b   : > { %v1127_v48 = vpop.permute.xlu0 %1126  ;;  %v1313_v30 = vsel %vm1263_vm2, %v1248_v1, %v932_v53 }
 0x19c   : > { %v1505_v25 = vsel %vm1263_vm2, %v1441_v6, %v1127_v48 }
 0x19d   : > { %1911 = vmatprep.mubr.bf16.mxu0 %v1505_v25 }
 0x19e   : > { %v4533_v43 = vpop.f32.mrf.mxu0  ;;  %v790_v35 = vpop.permute.xlu1 %789  ;;  %1912 = vmatmul.mubr.bf16.gmra.mxu0 %v1313_v30 }
 0x19f   : > { %v1006_v2 = vpop.permute.xlu0 %1005  ;;  %v1195_v3 = vsel %vm280_vm0, %v4116_v22, %v790_v35  ;;  %v5058_v22 = vld [vmem:[#allocation33_spill] sm:$0xff] }
 0x1a0   : > { %v1795_v40 = vpop.f32.mrf.mxu0  ;;  %v1389_v13 = vsel %vm280_vm0, %v679_v14, %v1006_v2  ;;  %v680_v15 = vpack.c.bf16 %v5058_v22, %v4200_v54 }
 0x1a1   : > { %v5063_v40 = vld [vmem:[#allocation9_spill] sm:$0xff] }
 0x1a2   : > { %v4537_v23 = vpop.f32.mrf.mxu0  ;;  %v862_v18 = vpop.permute.xlu1 %861  ;;  %v682_v14 = vpack.c.bf16 %v4355_v32, %v5063_v40 }
 0x1a3   : > { %v1078_v58 = vpop.permute.xlu0 %1077  ;;  %v1250_v19 = vsel %vm1214_vm1, %v1195_v3, %v862_v18 }
 0x1a4   : > { %v1798_v5 = vpop.f32.mrf.mxu0  ;;  %v1443_v55 = vsel %vm1214_vm1, %v1389_v13, %v1078_v58  ;;  %v5064_v13 = vld [vmem:[#allocation32_spill] sm:$0xff] }
 0x1a6   : > { %v934_v8 = vpop.permute.xlu1 %933 }
 0x1a7   : > { %v1129_v9 = vpop.permute.xlu0 %1128  ;;  %v1316_v36 = vsel %vm1263_vm2, %v1250_v19, %v934_v8 }
 0x1a8   : > { %v1508_v59 = vsel %vm1263_vm2, %v1443_v55, %v1129_v9 }
 0x1a9   : > { %1919 = vmatprep.mubr.bf16.mxu0 %v1508_v59 }
 0x1aa   : > { %v4546_v63 = vpop.f32.mrf.mxu0  ;;  %v792_v17 = vpop.permute.xlu1 %791  ;;  %1920 = vmatmul.mubr.bf16.gmra.mxu0 %v1316_v36 }
 0x1ab   : > { %v1008_v44 = vpop.permute.xlu0 %1007  ;;  %v1198_v60 = vsel %vm280_vm0, %v5059_v20, %v792_v17 }
 0x1ac   : > { %v1803_v12 = vpop.f32.mrf.mxu0  ;;  %v1392_v7 = vsel %vm280_vm0, %v680_v15, %v1008_v44 }
 0x1ae   : > { %v4550_v31 = vpop.f32.mrf.mxu0  ;;  %v864_v16 = vpop.permute.xlu1 %863 }
 0x1af   : > { %v1080_v42 = vpop.permute.xlu0 %1079  ;;  %v1252_v51 = vsel %vm1214_vm1, %v1198_v60, %v864_v16  ;;  %v3121_v16 = vld [vmem:[#allocation2 + $0x178] sm:$0xff] }
 0x1b0   : > { %v1806_v39 = vpop.f32.mrf.mxu0  ;;  %v1445_v46 = vsel %vm1214_vm1, %v1392_v7, %v1080_v42  ;;  %v683_v42 = vpack.c.bf16 %v3121_v16, %v4348_v10 }
 0x1b2   : > { %v936_v33 = vpop.permute.xlu1 %935 }
 0x1b3   : > { %v1131_v62 = vpop.permute.xlu0 %1130  ;;  %v1319_v27 = vsel %vm1263_vm2, %v1252_v51, %v936_v33  ;;  %v5065_v51 = vld [vmem:[#allocation16_spill] sm:$0xff] }
 0x1b4   : > { %v1511_v54 = vsel %vm1263_vm2, %v1445_v46, %v1131_v62 }
 0x1b5   : > { %1927 = vmatprep.mubr.bf16.mxu0 %v1511_v54 }
 0x1b6   : > { %v4559_v38 = vpop.f32.mrf.mxu0  ;;  %v794_v45 = vpop.permute.xlu1 %793  ;;  %1928 = vmatmul.mubr.bf16.gmra.mxu0 %v1319_v27 }
 0x1b7   : > { %v1010_v47 = vpop.permute.xlu0 %1009  ;;  %v1201_v41 = vsel %vm280_vm0, %v5062_v29, %v794_v45 }
 0x1b8   : > { %v1811_v26 = vpop.f32.mrf.mxu0  ;;  %v1395_v52 = vsel %vm280_vm0, %v681_v0, %v1010_v47 }
 0x1ba   : > { %v4563_v11 = vpop.f32.mrf.mxu0  ;;  %v866_v34 = vpop.permute.xlu1 %865 }
 0x1bb   : > { %v1082_v4 = vpop.permute.xlu0 %1081  ;;  %v1254_v56 = vsel %vm1214_vm1, %v1201_v41, %v866_v34  ;;  %v3122_v34 = vld [vmem:[#allocation2 + $0x180] sm:$0xff] }
 0x1bc   : > { %v1814_v28 = vpop.f32.mrf.mxu0  ;;  %v1447_v1 = vsel %vm1214_vm1, %v1395_v52, %v1082_v4  ;;  %v684_v4 = vpack.c.bf16 %v4422_v24, %v3122_v34 }
 0x1be   : > { %v938_v50 = vpop.permute.xlu1 %937 }
 0x1bf   : > { %v1133_v53 = vpop.permute.xlu0 %1132  ;;  %v1322_v6 = vsel %vm1263_vm2, %v1254_v56, %v938_v50 }
 0x1c0   : > { %v1514_v48 = vsel %vm1263_vm2, %v1447_v1, %v1133_v53 }
 0x1c1   : > { %1935 = vmatprep.mubr.bf16.mxu0 %v1514_v48 }
 0x1c2   : > { %v4572_v30 = vpop.f32.mrf.mxu0  ;;  %v796_v25 = vpop.permute.xlu1 %795  ;;  %1936 = vmatmul.mubr.bf16.gmra.mxu0 %v1322_v6 }
 0x1c3   : > { %v1012_v35 = vpop.permute.xlu0 %1011  ;;  %v1204_v19 = vsel %vm280_vm0, %v5064_v13, %v796_v25 }
 0x1c4   : > { %v1819_v2 = vpop.f32.mrf.mxu0  ;;  %v1398_v8 = vsel %vm280_vm0, %v682_v14, %v1012_v35 }
 0x1c6   : > { %v4576_v18 = vpop.f32.mrf.mxu0  ;;  %v868_v58 = vpop.permute.xlu1 %867 }
 0x1c7   : > { %v1084_v5 = vpop.permute.xlu0 %1083  ;;  %v1256_v55 = vsel %vm1214_vm1, %v1204_v19, %v868_v58 }
 0x1c8   : > { %v1822_v3 = vpop.f32.mrf.mxu0  ;;  %v1449_v36 = vsel %vm1214_vm1, %v1398_v8, %v1084_v5 }
 0x1c9   : > { %v4620_v3 = vld [vmem:[%s4949_s3] ss:$0 sm:$0xff] }
 0x1ca   : > { %v940_v9 = vpop.permute.xlu1 %939  ;;  %v1794_v19 = vadd.f32 %v4620_v3, %v4533_v43  ;;  %v1810_v43 = vadd.f32 %v4620_v3, %v4559_v38 }
 0x1cb   : > { %v1135_v59 = vpop.permute.xlu0 %1134  ;;  %v1325_v17 = vsel %vm1263_vm2, %v1256_v55, %v940_v9  ;;  %v1786_v55 = vadd.f32 %v4620_v3, %v4518_v37 }
 0x1cc   : > { %v1517_v32 = vsel %vm1263_vm2, %v1449_v36, %v1135_v59  ;;  %v1797_v59 = vadd.f32 %v4620_v3, %v4537_v23 }
 0x1cd   : > { %1943 = vmatprep.mubr.bf16.mxu0 %v1517_v32 }
 0x1ce   : > { %v4585_v44 = vpop.f32.mrf.mxu0  ;;  %v798_v12 = vpop.permute.xlu1 %797  ;;  %1944 = vmatmul.mubr.bf16.gmra.mxu0 %v1325_v17 }
 0x1cf   : > { %v1014_v22 = vpop.permute.xlu0 %1013  ;;  %v1207_v33 = vsel %vm280_vm0, %v5065_v51, %v798_v12 }
 0x1d0   : > { %v1827_v15 = vpop.f32.mrf.mxu0  ;;  %v1401_v46 = vsel %vm280_vm0, %v683_v42, %v1014_v22  ;;  %v1789_v22 = vadd.f32 %v4620_v3, %v4521_v21 }
 0x1d2   : > { %v4588_v39 = vpop.f32.mrf.mxu0  ;;  %v870_v20 = vpop.permute.xlu1 %869 }
 0x1d3   : > { %v1086_v60 = vpop.permute.xlu0 %1085  ;;  %v1258_v62 = vsel %vm1214_vm1, %v1207_v33, %v870_v20 }
 0x1d4   : > { %v1830_v7 = vpop.f32.mrf.mxu0  ;;  %v1451_v54 = vsel %vm1214_vm1, %v1401_v46, %v1086_v60 }
 0x1d5   : > { %v1802_v7 = vadd.f32 %v4620_v3, %v4546_v63  ;;  %v1805_v63 = vadd.f32 %v4620_v3, %v4550_v31  ;;  %v1829_v31 = vadd.f32 %v4620_v3, %v4588_v39 }
 0x1d6   : > { %v942_v27 = vpop.permute.xlu1 %941 }
 0x1d7   : > { %v1137_v45 = vpop.permute.xlu0 %1136  ;;  %v1328_v47 = vsel %vm1263_vm2, %v1258_v62, %v942_v27 }
 0x1d8   : > { %v1520_v10 = vsel %vm1263_vm2, %v1451_v54, %v1137_v45  ;;  %v1813_v45 = vadd.f32 %v4620_v3, %v4563_v11  ;;  %v1826_v11 = vadd.f32 %v4620_v3, %v4585_v44 }
 0x1d9   : > { %1951 = vmatprep.mubr.bf16.mxu0 %v1520_v10 }
 0x1da   : > { %v4597_v26 = vpop.f32.mrf.mxu0  ;;  %v800_v49 = vpop.permute.xlu1 %799  ;;  %1952 = vmatmul.mubr.bf16.gmra.mxu0 %v1328_v47 }
 0x1db   : > { %v1016_v57 = vpop.permute.xlu0 %1015  ;;  %v1210_v56 = vsel %vm280_vm0, %v4346_v61, %v800_v49 }
 0x1dc   : > { %v1835_v0 = vpop.f32.mrf.mxu0  ;;  %v1404_v50 = vsel %vm280_vm0, %v684_v4, %v1016_v57 }
 0x1de   : > { %v4600_v28 = vpop.f32.mrf.mxu0  ;;  %v872_v29 = vpop.permute.xlu1 %871 }
 0x1df   : > { %v1088_v41 = vpop.permute.xlu0 %1087  ;;  %v1260_v1 = vsel %vm1214_vm1, %v1210_v56, %v872_v29  ;;  %v1818_v29 = vadd.f32 %v4620_v3, %v4572_v30 }
 0x1e0   : > { %v1838_v52 = vpop.f32.mrf.mxu0  ;;  %v1453_v6 = vsel %vm1214_vm1, %v1404_v50, %v1088_v41 }
 0x1e2   : > { %v944_v53 = vpop.permute.xlu1 %943 }
 0x1e3   : > { %v1139_v48 = vpop.permute.xlu0 %1138  ;;  %v1331_v25 = vsel %vm1263_vm2, %v1260_v1, %v944_v53 }
 0x1e4   : > { %v1523_v24 = vsel %vm1263_vm2, %v1453_v6, %v1139_v48 }
 0x1e5   : > { %1959 = vmatprep.mubr.bf16.mxu0 %v1523_v24 }
 0x1e6   : > { %1960 = vmatmul.mubr.bf16.gmra.mxu0 %v1331_v25 }
 0x1e8   : > { %v4609_v35 = vpop.f32.mrf.mxu0 }
 0x1ea   : > { %v1843_v2 = vpop.f32.mrf.mxu0 }
 0x1ec   : > { %v4611_v40 = vpop.f32.mrf.mxu0 }
 0x1ee   : > { %v1846_v61 = vpop.f32.mrf.mxu0 }
 0x1ef   : > { %v1821_v61 = vadd.f32 %v4620_v3, %v4576_v18  ;;  %v1845_v18 = vadd.f32 %v4620_v3, %v4611_v40 }
 0x1f2   : > { %v4613_v14 = vpop.f32.mrf.mxu1 }
 0x1f4   : > { %v1971_v58 = vpop.f32.mrf.mxu1 }
 0x1f6   : > { %v4615_v5 = vpop.f32.mrf.mxu1 }
 0x1f8   : > { %v1974_v13 = vpop.f32.mrf.mxu1 }
 0x1fa   : > { %v2937_v8 = vpop.f32.mrf.mxu1 }
 0x1fb   : > { %v2019_v9 = vadd.f32 %v2937_v8, %v1794_v19 }
 0x1fc   : > { %v2010_v36 = vpop.f32.mrf.mxu1 }
 0x1fd   : > { %v2011_v17 = vadd.f32 %v2010_v36, %v1786_v55  ;;  %v2203_v20 = vmax.f32 %v2019_v9, 0.0  ;;  %v1842_v36 = vadd.f32 %v4620_v3, %v4609_v35 }
 0x1fe   : > { %v4628_v32 = vpop.f32.mrf.mxu0  ;;  %v2938_v12 = vpop.f32.mrf.mxu1 }
 0x1ff   : > { %v2022_v15 = vadd.f32 %v2938_v12, %v1797_v59  ;;  %v2201_v33 = vmax.f32 %v2011_v17, 0.0  ;;  %v1850_v40 = vadd.f32 %v4620_v3, %v4628_v32 }
 0x200   : > { %v1851_v16 = vpop.f32.mrf.mxu0  ;;  %v2013_v42 = vpop.f32.mrf.mxu1 }
 0x201   : > { %v2204_v37 = vmax.f32 %v2022_v15, 0.0  ;;  %v2014_v60 = vadd.f32 %v2013_v42, %v1789_v22  ;;  %v1834_v22 = vadd.f32 %v4620_v3, %v4597_v26 }
 0x202   : > { %v4636_v23 = vpop.f32.mrf.mxu0  ;;  %v2941_v51 = vpop.f32.mrf.mxu1 }
 0x203   : > { %v4638_v46 = vpack.c.bf16 %v2204_v37, %v2203_v20  ;;  %v2202_v62 = vmax.f32 %v2014_v60, 0.0  ;;  %v2035_v21 = vadd.f32 %v2941_v51, %v1810_v43  ;;  %v1837_v20 = vadd.f32 %v4620_v3, %v4600_v28 }
 0x204   : > { %v1854_v27 = vpop.f32.mrf.mxu0  ;;  %v2026_v54 = vpop.f32.mrf.mxu1 }
 0x205   : > { %v4642_v38 = vpack.c.bf16 %v2202_v62, %v2201_v33  ;;  %v2027_v47 = vadd.f32 %v2026_v54, %v1802_v7  ;;  %v2207_v0 = vmax.f32 %v2035_v21, 0.0 }
 0x206   : > { %v2942_v10 = vpop.f32.mrf.mxu1 }
 0x207   : > { %v2038_v49 = vadd.f32 %v2942_v10, %v1813_v45  ;;  %v2205_v56 = vmax.f32 %v2027_v47, 0.0 }
 0x208   : > { %v2029_v57 = vpop.f32.mrf.mxu1 }
 0x209   : > { %v2208_v34 = vmax.f32 %v2038_v49, 0.0  ;;  %v2030_v4 = vadd.f32 %v2029_v57, %v1805_v63  ;;  %v4678_v49 = vld [vmem:[%s4950_s4] sm:$0xff]  }
 0x20a   : > { %v1857_v41 = vpop.f32.mrf.mxu0  ;;  %v2945_v52 = vpop.f32.mrf.mxu1  ;;  %2920 = vmatprep.mubr.msk.bf16.mxu1 %vm280_vm0, %v4678_v49 }
 0x20b   : > { %v4650_v50 = vpack.c.bf16 %v2208_v34, %v2207_v0  ;;  %v2206_v1 = vmax.f32 %v2030_v4, 0.0  ;;  %v2051_v25 = vadd.f32 %v2945_v52, %v1826_v11  ;;  %v1858_v51 = vadd.f32 %v4620_v3, %v1857_v41 }
 0x20c   : > { %v1859_v53 = vpop.f32.mrf.mxu0  ;;  %v2042_v6 = vpop.f32.mrf.mxu1  ;;  %v1853_v4 = vadd.f32 %v4620_v3, %v4636_v23 }
 0x20d   : > { %v4654_v48 = vpack.c.bf16 %v2206_v1, %v2205_v56  ;;  %v2043_v24 = vadd.f32 %v2042_v6, %v1818_v29  ;;  %v2211_v19 = vmax.f32 %v2051_v25, 0.0 }
 0x20e   : > { %v1860_v2 = vpop.f32.mrf.mxu0  ;;  %v2946_v30 = vpop.f32.mrf.mxu1 }
 0x20f   : > { %v2054_v58 = vadd.f32 %v2946_v30, %v1829_v31  ;;  %v2209_v39 = vmax.f32 %v2043_v24, 0.0  ;;  %v1861_v57 = vadd.f32 %v4620_v3, %v1860_v2 }
 0x210   : > { %v1862_v44 = vpop.f32.mrf.mxu0  ;;  %v2045_v13 = vpop.f32.mrf.mxu1 }
 0x211   : > { %v2212_v8 = vmax.f32 %v2054_v58, 0.0  ;;  %v2046_v55 = vadd.f32 %v2045_v13, %v1821_v61 }
 0x212   : > { %v2949_v9 = vpop.f32.mrf.mxu1 }
 0x213   : > { %v4660_v59 = vpack.c.bf16 %v2212_v8, %v2211_v19  ;;  %v2210_v17 = vmax.f32 %v2046_v55, 0.0  ;;  %v2067_v16 = vadd.f32 %v2949_v9, %v1842_v36 }
 0x214   : > { %v2058_v12 = vpop.f32.mrf.mxu1 }
 0x215   : > { %v4666_v15 = vpack.c.bf16 %v2210_v17, %v2209_v39  ;;  %v2059_v35 = vadd.f32 %v2058_v12, %v1834_v22  ;;  %v2215_v33 = vmax.f32 %v2067_v16, 0.0 }
 0x216   : > { %v1865_v42 = vpop.f32.mrf.mxu0  ;;  %v2950_v43 = vpop.f32.mrf.mxu1 }
 0x217   : > { %v2070_v37 = vadd.f32 %v2950_v43, %v1845_v18  ;;  %v2213_v54 = vmax.f32 %v2059_v35, 0.0  ;;  %v1866_v61 = vadd.f32 %v4620_v3, %v1865_v42 }
 0x218   : > { %v1867_v60 = vpop.f32.mrf.mxu0  ;;  %v2061_v7 = vpop.f32.mrf.mxu1 }
 0x219   : > { %v2216_v62 = vmax.f32 %v2070_v37, 0.0  ;;  %v2062_v26 = vadd.f32 %v2061_v7, %v1837_v20 }
 0x21a   : > { %v1868_v21 = vpop.f32.mrf.mxu0  ;;  %v2953_v27 = vpop.f32.mrf.mxu1 }
 0x21b   : > { %v4673_v45 = vpack.c.bf16 %v2216_v62, %v2215_v33  ;;  %v2214_v47 = vmax.f32 %v2062_v26, 0.0  ;;  %v2083_v10 = vadd.f32 %v2953_v27, %v1858_v51  ;;  %v1869_v13 = vadd.f32 %v4620_v3, %v1868_v21 }
 0x21c   : > { %v1870_v28 = vpop.f32.mrf.mxu0  ;;  %v2074_v63 = vpop.f32.mrf.mxu1 }
 0x21d   : > { %v4681_v0 = vpack.c.bf16 %v2214_v47, %v2213_v54  ;;  %v2075_v34 = vadd.f32 %v2074_v63, %v1850_v40  ;;  %v2219_v52 = vmax.f32 %v2083_v10, 0.0 }
 0x21e   : > { %v2954_v32 = vpop.f32.mrf.mxu1 }
 0x21f   : > { %v2086_v29 = vadd.f32 %v2954_v32, %v1861_v57  ;;  %v2217_v6 = vmax.f32 %v2075_v34, 0.0 }
 0x220   : > { %v2077_v41 = vpop.f32.mrf.mxu1 }
 0x221   : > { %v2220_v11 = vmax.f32 %v2086_v29, 0.0  ;;  %v2078_v56 = vadd.f32 %v2077_v41, %v1853_v4 }
 0x222   : > { %v1873_v1 = vpop.f32.mrf.mxu0  ;;  %v2957_v53 = vpop.f32.mrf.mxu1 }
 0x223   : > { %v4687_v31 = vpack.c.bf16 %v2220_v11, %v2219_v52  ;;  %v2218_v25 = vmax.f32 %v2078_v56, 0.0  ;;  %v1874_v24 = vadd.f32 %v4620_v3, %v1873_v1 }
 0x224   : > { %v1875_v2 = vpop.f32.mrf.mxu0  ;;  %v2090_v30 = vpop.f32.mrf.mxu1 }
 0x225   : > { %v4691_v58 = vpack.c.bf16 %v2218_v25, %v2217_v6  ;;  %v2099_v19 = vadd.f32 %v2957_v53, %v1874_v24  ;;  %v2091_v8 = vadd.f32 %v2090_v30, %v1866_v61 }
 0x226   : > { %v1876_v23 = vpop.f32.mrf.mxu0  ;;  %v2958_v44 = vpop.f32.mrf.mxu1 }
 0x227   : > { %v1877_v55 = vadd.f32 %v4620_v3, %v1876_v23  ;;  %v2223_v22 = vmax.f32 %v2099_v19, 0.0  ;;  %v2221_v18 = vmax.f32 %v2091_v8, 0.0  ;;  %v1970_v23 = vadd.f32 %v4620_v3, %v4613_v14 }
 0x228   : > { %v1878_v9 = vpop.f32.mrf.mxu0  ;;  %v2093_v36 = vpop.f32.mrf.mxu1 }
 0x229   : > { %v2102_v39 = vadd.f32 %v2958_v44, %v1877_v55  ;;  %v2094_v17 = vadd.f32 %v2093_v36, %v1869_v13  ;;  %v1973_v55 = vadd.f32 %v4620_v3, %v4615_v5 }
 0x22a   : > { %v4695_v12 = vpop.f32.mrf.mxu1 }
 0x22b   : > { %v2224_v16 = vmax.f32 %v2102_v39, 0.0  ;;  %v2222_v42 = vmax.f32 %v2094_v17, 0.0 }
 0x22c   : > { %v4697_v43 = vpop.f32.mrf.mxu1 }
 0x22d   : > { %v4699_v20 = vpack.c.bf16 %v2224_v16, %v2223_v22  ;;  %v4701_v35 = vpack.c.bf16 %v2222_v42, %v2221_v18 }
 0x22e   : > { %v4703_v37 = vpop.f32.mrf.mxu0  ;;  %v2962_v60 = vpop.f32.mrf.mxu1 }
 0x230   : > { %v1883_v7 = vpop.f32.mrf.mxu0  ;;  %v4705_v51 = vpop.f32.mrf.mxu1 }
 0x232   : > { %v4707_v33 = vpop.f32.mrf.mxu0  ;;  %v2965_v62 = vpop.f32.mrf.mxu1 }
 0x234   : > { %v1886_v26 = vpop.f32.mrf.mxu0  ;;  %v2122_v40 = vpop.f32.mrf.mxu1 }
 0x236   : > { %v2966_v21 = vpop.f32.mrf.mxu1 }
 0x238   : > { %v2125_v27 = vpop.f32.mrf.mxu1 }
 0x23a   : > { %v1889_v54 = vpop.f32.mrf.mxu0  ;;  %v4709_v47 = vpop.f32.mrf.mxu1 }
 0x23c   : > { %v1891_v10 = vpop.f32.mrf.mxu0  ;;  %v2138_v28 = vpop.f32.mrf.mxu1 }
 0x23e   : > { %v1892_v63 = vpop.f32.mrf.mxu0  ;;  %v4711_v57 = vpop.f32.mrf.mxu1 }
 0x240   : > { %v1894_v34 = vpop.f32.mrf.mxu0  ;;  %v2141_v32 = vpop.f32.mrf.mxu1 }
 0x242   : > { %v4713_v4 = vpop.f32.mrf.mxu1 }
 0x244   : > { %v4715_v29 = vpop.f32.mrf.mxu1 }
 0x246   : > { %v1897_v41 = vpop.f32.mrf.mxu0  ;;  %v4717_v52 = vpop.f32.mrf.mxu1 }
 0x247   : > { %v1898_v9 = vadd.f32 %v4620_v3, %v1897_v41  ;;  %v1890_v41 = vadd.f32 %v4620_v3, %v1889_v54 }
 0x248   : > { %v1899_v11 = vpop.f32.mrf.mxu0  ;;  %v4719_v56 = vpop.f32.mrf.mxu1 }
 0x249   : > { %v2123_v7 = vadd.f32 %v2122_v40, %v1898_v9  ;;  %v1893_v11 = vadd.f32 %v4620_v3, %v1892_v63  ;;  %v2317_v40 = vsel %vm280_vm0, %v4673_v45, 0  ;;  %v2276_v45 = vld [vmem:[%s4951_s5 + $0x8] sm:$0x7f] }
 0x24a   : > { %v1900_v1 = vpop.f32.mrf.mxu0  ;;  %v4721_v53 = vpop.f32.mrf.mxu1  ;;  %2284 = vperm.xlu0 %3092, %v2276_v45  }
 0x24b   : > { %v1901_v44 = vadd.f32 %v4620_v3, %v1900_v1 }
 0x24c   : > { %v1902_v6 = vpop.f32.mrf.mxu0  ;;  %v4723_v25 = vpop.f32.mrf.mxu1 }
 0x24d   : > { %v2126_v22 = vadd.f32 %v2125_v27, %v1901_v44 }
 0x24e   : > { %v4725_v24 = vpop.f32.mrf.mxu1 }
 0x24f   : > { %v2230_v1 = vmax.f32 %v2126_v22, 0.0 }
 0x250   : > { %v4727_v2 = vpop.f32.mrf.mxu1 }
 0x252   : > { %v1905_v30 = vpop.f32.mrf.mxu0  ;;  %v2981_v61 = vpop.f32.mrf.mxu1 }
 0x253   : > { %v1906_v13 = vadd.f32 %v4620_v3, %v1905_v30  ;;  %v2195_v36 = vadd.f32 %v2981_v61, %v1970_v23  ;;  %v2229_v61 = vmax.f32 %v2123_v7, 0.0  ;;  %v2118_v23 = vadd.f32 %v2962_v60, %v1893_v11 }
 0x254   : > { %v1907_v19 = vpop.f32.mrf.mxu0  ;;  %v4733_v8 = vpop.f32.mrf.mxu1 }
 0x255   : > { %v2131_v18 = vadd.f32 %v2965_v62, %v1906_v13  ;;  %v2247_v26 = vmax.f32 %v2195_v36, 0.0  ;;  %v2265_v44 = vpack.c.bf16 %v2230_v1, %v2229_v61  ;;  %v2115_v13 = vadd.f32 %v4695_v12, %v1890_v41 }
 0x256   : > { %v1908_v39 = vpop.f32.mrf.mxu0  ;;  %v2982_v17 = vpop.f32.mrf.mxu1  ;;  %v2228_v60 = vmax.f32 %v2118_v23, 0.0 }
 0x257   : > { %v1909_v16 = vadd.f32 %v4620_v3, %v1908_v39  ;;  %v2198_v14 = vadd.f32 %v2982_v17, %v1973_v55  ;;  %v2231_v6 = vmax.f32 %v2131_v18, 0.0  ;;  %v1885_v55 = vadd.f32 %v4620_v3, %v4707_v33 }
 0x258   : > { %v1910_v42 = vpop.f32.mrf.mxu0  ;;  %v1882_v39 = vadd.f32 %v4620_v3, %v4703_v37  ;;  %v2227_v17 = vmax.f32 %v2115_v13, 0.0 }
 0x259   : > { %v2134_v10 = vadd.f32 %v2966_v21, %v1909_v16  ;;  %v2248_v34 = vmax.f32 %v2198_v14, 0.0  ;;  %v2110_v22 = vadd.f32 %v4705_v51, %v1885_v55 }
 0x25a   : > { %v2264_v33 = vpack.c.bf16 %v2228_v60, %v2227_v17  ;;  %v2107_v14 = vadd.f32 %v4697_v43, %v1882_v39  ;;  %v2311_v43 = vsel %vm280_vm0, %v4660_v59, 0  ;;  %v2296_v17 = vsel %vm280_vm0, %v4642_v38, 0 }
 0x25b   : > { %v2232_v5 = vmax.f32 %v2134_v10, 0.0  ;;  %v4740_v30 = vpack.c.bf16 %v2248_v34, %v2247_v26  ;;  %v2226_v37 = vmax.f32 %v2110_v22, 0.0 }
 0x25c   : > { %v2225_v51 = vmax.f32 %v2107_v14, 0.0 }
 0x25d   : > { %v2266_v27 = vpack.c.bf16 %v2232_v5, %v2231_v6 }
 0x25e   : > { %v1913_v62 = vpop.f32.mrf.mxu0  ;;  %v2263_v11 = vpack.c.bf16 %v2226_v37, %v2225_v51  ;;  %v2189_v37 = vpop.f32.mrf.mxu1 }
 0x25f   : > { %3035 = vmatprep.subr.msk.bf16.mxu1 %vm280_vm0, %v2266_v27  ;;  %v1914_v21 = vadd.f32 %v4620_v3, %v1913_v62 }
 0x260   : > { %2905 = vmatpush3.bf16.xpose.msra.mxu1 %v2317_v40  ;;  %v1915_v63 = vpop.f32.mrf.mxu0 }
 0x261   : > { %3036 = vmatprep.subr.msk.bf16.mxu1 %vm280_vm0, %v2265_v44  ;;  %v2139_v19 = vadd.f32 %v2138_v28, %v1914_v21  ;;  %v2314_v28 = vsel %vm280_vm0, %v4681_v0, 0  ;;  %v2275_v0 = vld [vmem:[%s4951_s5] sm:$0xff] }
 0x262   : > { %v1916_v54 = vpop.f32.mrf.mxu0  ;;  %2279 = vperm.xlu1 %3093, %v2275_v0  }
 0x263   : > { %v1917_v9 = vadd.f32 %v4620_v3, %v1916_v54  ;;  %v2233_v18 = vmax.f32 %v2139_v19, 0.0  ;;  %v2305_v19 = vsel %vm280_vm0, %v4650_v50, 0 }
 0x264   : > { %v1918_v36 = vpop.f32.mrf.mxu0 }
 0x265   : > { %v2142_v12 = vadd.f32 %v2141_v32, %v1917_v9 }
 0x267   : > { %v2234_v16 = vmax.f32 %v2142_v12, 0.0 }
 0x268   : > { %2907 = vmatpush3.bf16.xpose.msra.mxu1 %v2314_v28 }
 0x269   : > { %3037 = vmatprep.subr.msk.bf16.mxu1 %vm280_vm0, %v2264_v33  ;;  %v4762_v42 = vpack.c.bf16 %v2234_v16, %v2233_v18 }
 0x26a   : > { %v1921_v7 = vpop.f32.mrf.mxu0 }
 0x26b   : > { %v1922_v32 = vadd.f32 %v4620_v3, %v1921_v7 }
 0x26c   : > { %v1923_v26 = vpop.f32.mrf.mxu0 }
 0x26d   : > { %v2147_v10 = vadd.f32 %v4709_v47, %v1922_v32  ;;  %v2308_v47 = vsel %vm280_vm0, %v4666_v15, 0 }
 0x26e   : > { %v1924_v34 = vpop.f32.mrf.mxu0 }
 0x26f   : > { %v1925_v1 = vadd.f32 %v4620_v3, %v1924_v34  ;;  %v2235_v41 = vmax.f32 %v2147_v10, 0.0 }
 0x270   : > { %2909 = vmatpush3.bf16.xpose.msra.mxu1 %v2311_v43  ;;  %v1926_v6 = vpop.f32.mrf.mxu0 }
 0x271   : > { %3038 = vmatprep.subr.msk.bf16.mxu1 %vm280_vm0, %v2263_v11  ;;  %v2150_v5 = vadd.f32 %v4711_v57, %v1925_v1 }
 0x273   : > { %v2236_v61 = vmax.f32 %v2150_v5, 0.0 }
 0x275   : > { %v4774_v27 = vpack.c.bf16 %v2236_v61, %v2235_v41 }
 0x276   : > { %v1929_v62 = vpop.f32.mrf.mxu0 }
 0x277   : > { %v1930_v23 = vadd.f32 %v4620_v3, %v1929_v62 }
 0x278   : > { %2911 = vmatpush3.bf16.xpose.msra.mxu1 %v2308_v47  ;;  %v1931_v59 = vpop.f32.mrf.mxu0 }
 0x279   : > { %3039 = vmatprep.subr.msk.bf16.mxu1 %vm280_vm0, %v4699_v20  ;;  %v2155_v44 = vadd.f32 %v4715_v29, %v1930_v23 }
 0x27a   : > { %v1932_v40 = vpop.f32.mrf.mxu0 }
 0x27b   : > { %v1933_v57 = vadd.f32 %v4620_v3, %v1932_v40  ;;  %v2237_v13 = vmax.f32 %v2155_v44, 0.0 }
 0x27c   : > { %v1934_v21 = vpop.f32.mrf.mxu0 }
 0x27d   : > { %v2158_v63 = vadd.f32 %v4719_v56, %v1933_v57  ;;  %v2302_v56 = vsel %vm280_vm0, %v4654_v48, 0  ;;  %v5066_v48 = vmov 0.0  }
 0x27f   : > { %v2238_v15 = vmax.f32 %v2158_v63, 0.0  ;;  %v2344_v63 = vsel %vm280_vm0, %v4762_v42, 0 }
 0x280   : > { %2913 = vmatpush3.bf16.xpose.msra.mxu1 %v2305_v19 }
 0x281   : > { %3040 = vmatprep.subr.msk.bf16.mxu1 %vm280_vm0, %v4701_v35  ;;  %v4788_v54 = vpack.c.bf16 %v2238_v15, %v2237_v13  ;;  %v2299_v35 = vsel %vm280_vm0, %v4638_v46, 0  ;;  %v2365_v46 = vsel %vm280_vm0, %v4740_v30, 0 }
 0x282   : > { %v1937_v20 = vpop.f32.mrf.mxu0 }
 0x283   : > { %v1938_v29 = vadd.f32 %v4620_v3, %v1937_v20  ;;  %v2350_v21 = vsel %vm280_vm0, %v4788_v54, 0 }
 0x284   : > { %v1939_v55 = vpop.f32.mrf.mxu0 }
 0x285   : > { %v4792_v60 = vadd.f32 %v4713_v4, %v1938_v29 }
 0x286   : > { %v1940_v9 = vpop.f32.mrf.mxu0 }
 0x287   : > { %v1941_v62 = vadd.f32 %v4620_v3, %v1940_v9 }
 0x288   : > { %2915 = vmatpush3.bf16.xpose.msra.mxu1 %v2302_v56  ;;  %v1942_v50 = vpop.f32.mrf.mxu0 }
 0x289   : > { %3041 = vmatprep.subr.msk.bf16.mxu1 %vm280_vm0, %v4687_v31  ;;  %v2166_v59 = vadd.f32 %v4717_v52, %v1941_v62  ;;  %v2347_v52 = vsel %vm280_vm0, %v4774_v27, 0  ;;  %v2460_v50 = vld [vmem:[%s4952_s6 + $0x18] sm:$0xf] }
 0x28b   : > { %v2240_v40 = vmax.f32 %v2166_v59, 0.0 }
 0x28e   : > { %v1945_v36 = vpop.f32.mrf.mxu0 }
 0x290   : > { %2917 = vmatpush3.bf16.xpose.msra.mxu1 %v2299_v35  ;;  %v1947_v45 = vpop.f32.mrf.mxu0  ;;  %v2457_v35 = vld [vmem:[%s4952_s6] sm:$0xc0] }
 0x291   : > { %3042 = vmatprep.subr.msk.bf16.mxu1 %vm280_vm0, %v4691_v58  ;;  %v2461_v45 = vld [vmem:[%s4952_s6 + $0x20] sm:$0xf] }
 0x292   : > { %v1948_v4 = vpop.f32.mrf.mxu0 }
 0x293   : > { %v1949_v43 = vadd.f32 %v4620_v3, %v1948_v4  ;;  %v2458_v4 = vld [vmem:[%s4952_s6 + $0x8] sm:$0xc0] }
 0x294   : > { %v1950_v39 = vpop.f32.mrf.mxu0 }
 0x295   : > { %v2174_v41 = vadd.f32 %v4727_v2, %v1949_v43  ;;  %v2239_v2 = vmax.f32 %v4792_v60, 0.0  ;;  %v2530_v39 = vlaneseq }
 0x298   : > { %2919 = vmatpush3.bf16.xpose.msra.mxu1 %v2296_v17 }
 0x299   : > { %2983 = vmatprep.subr.bf16.mxu1 %v5066_v48 }
 0x29a   : > { %v1953_v12 = vpop.f32.mrf.mxu0 }
 0x29b   : > { %v1954_v32 = vadd.f32 %v4620_v3, %v1953_v12  ;;  %v2486_v12 = vrot.slane %v2460_v50, 3 }
 0x29c   : > { %v1955_v28 = vpop.f32.mrf.mxu0 }
 0x29d   : > { %v2179_v34 = vadd.f32 %v4721_v53, %v1954_v32  ;;  %v2242_v53 = vmax.f32 %v2174_v41, 0.0 }
 0x29e   : > { %v1956_v31 = vpop.f32.mrf.mxu0 }
 0x29f   : > { %2921 = vmatmul.mubr.msk.bf16.vlgmr.msra.gmra.mxu1 %vm280_vm0, %v4678_v49  ;;  %v1957_v16 = vadd.f32 %v4620_v3, %v1956_v31  ;;  %v2243_v5 = vmax.f32 %v2179_v34, 0.0  ;;  %v2485_v31 = vrot.slane %v2457_v35, 3  ;;  %v2533_v34 = vstv %s2529_s16 }
 0x2a0   : > { %2984 = vmatpush3.bf16.xpose.msra.mxu1 %v2365_v46  ;;  %v1958_v22 = vpop.f32.mrf.mxu0  ;;  %2999 = vmatprep.mubr.msk.bf16.mxu1 %vm3210_vm3, %v5066_v48 }
 0x2a1   : > { %2985 = vmatprep.subr.bf16.mxu1 %v5066_v48  ;;  %v2182_v26 = vadd.f32 %v4725_v24, %v1957_v16  ;;  %v2489_v22 = vrot.slane %v2461_v45, 3 }
 0x2a3   : > { %v2244_v1 = vmax.f32 %v2182_v26, 0.0 }
 0x2a5   : > { %v2272_v61 = vpack.c.bf16 %v2244_v1, %v2243_v5 }
 0x2a6   : > { %v1961_v38 = vpop.f32.mrf.mxu0 }
 0x2a7   : > { %v1962_v58 = vadd.f32 %v4620_v3, %v1961_v38  ;;  %v2359_v47 = vsel %vm280_vm0, %v2272_v61, 0  ;;  %v2488_v38 = vrot.slane %v2458_v4, 3 }
 0x2a8   : > { %v1963_v33 = vpop.f32.mrf.mxu0 }
 0x2a9   : > { %v2187_v14 = vadd.f32 %v4733_v8, %v1962_v58  ;;  %v1946_v8 = vadd.f32 %v4620_v3, %v1945_v36  ;;  %v2455_v36 = vld [vmem:[%s4952_s6 + $0x8] sm:$0x3f]  ;;  %v2531_v33 = vshrl.u32 %v2530_v39, 7 }
 0x2aa   : > { %v1964_v18 = vpop.f32.mrf.mxu0  ;;  %v2467_v28 = vrot.slane %v2455_v36, 5 }
 0x2ab   : > { %v1965_v7 = vadd.f32 %v4620_v3, %v1964_v18  ;;  %v2245_v51 = vmax.f32 %v2187_v14, 0.0  ;;  %v2171_v24 = vadd.f32 %v4723_v25, %v1946_v8  ;;  %v2270_v25 = vpack.c.bf16 %v2240_v40, %v2239_v2 }
 0x2ac   : > { %v1966_v30 = vpop.f32.mrf.mxu0  ;;  %vm2532_vm5 = vcmp.lt.s32.totalorder %v2531_v33, 3 }
 0x2ad   : > { %v2190_v0 = vadd.f32 %v2189_v37, %v1965_v7  ;;  %v2241_v23 = vmax.f32 %v2171_v24, 0.0  ;;  %v2353_v3 = vsel %vm280_vm0, %v2270_v25, 0  ;;  %v2516_v7 = vrot.slane %v2455_v36, 7 }
 0x2af   : > { %v2246_v10 = vmax.f32 %v2190_v0, 0.0  ;;  %v2271_v44 = vpack.c.bf16 %v2242_v53, %v2241_v23  ;;  %v2487_v0 = vsel %vm2484_vm4, %v2485_v31, %v2486_v12 }
 0x2b1   : > { %v2273_v11 = vpack.c.bf16 %v2246_v10, %v2245_v51  ;;  %v2356_v57 = vsel %vm280_vm0, %v2271_v44, 0  ;;  %v2490_v10 = vsel %vm2484_vm4, %v2488_v38, %v2489_v22 }
 0x2b3   : > { %v2362_v6 = vsel %vm280_vm0, %v2273_v11, 0  ;;  %v2534_v11 = vstv %s2526_s12 }
 0x2b4   : > { %2986 = vmatpush3.bf16.xpose.msra.mxu1 %v2362_v6 }
 0x2b5   : > { %2987 = vmatprep.subr.bf16.mxu1 %v5066_v48 }
 0x2bc   : > { %2988 = vmatpush3.bf16.xpose.msra.mxu1 %v2359_v47  ;;  %v4885_v47 = vsel %vm2532_vm5, %v2533_v34, %v2534_v11 }
 0x2bd   : > { %2989 = vmatprep.subr.bf16.mxu1 %v5066_v48 }
 0x2c4   : > { %2990 = vmatpush3.bf16.xpose.msra.mxu1 %v2356_v57 }
 0x2c5   : > { %2991 = vmatprep.subr.bf16.mxu1 %v5066_v48  ;;  %v4843_v15 = vpop.permute.xlu0 %2284 }
 0x2cc   : > { %2992 = vmatpush3.bf16.xpose.msra.mxu1 %v2353_v3 }
 0x2cd   : > { %2993 = vmatprep.subr.bf16.mxu1 %v5066_v48 }
 0x2d4   : > { %2994 = vmatpush3.bf16.xpose.msra.mxu1 %v2350_v21 }
 0x2d5   : > { %2995 = vmatprep.subr.bf16.mxu1 %v5066_v48 }
 0x2dc   : > { %2996 = vmatpush3.bf16.xpose.msra.mxu1 %v2347_v52 }
 0x2dd   : > { %2997 = vmatprep.subr.bf16.mxu1 %v5066_v48  ;;  %v4855_v56 = vpop.permute.xlu1 %2279 }
 0x2e4   : > { %2998 = vmatpush3.bf16.xpose.msra.mxu1 %v2344_v63 }
 0x2eb   : > { %3000 = vmatmul.mubr.msk.bf16.vlgmr.msra.gmra.mxu1 %vm280_vm0, %v4678_v49  ;;  %v2454_v49 = vld [vmem:[%s4952_s6] sm:$0x3f] }
 0x2ec   : > { %v2466_v17 = vrot.slane %v2454_v49, 5  ;;  %v2515_v46 = vrot.slane %v2454_v49, 7 }
 0x35f   : > { %v2401_v13 = vpop.f32.mrf.mxu1 }
 0x360   : > { %v4873_v48 = vadd.f32 %v2401_v13, %v4855_v56 }
 0x361   : > { %v2403_v19 = vpop.f32.mrf.mxu1 }
 0x362   : > { %v4878_v18 = vadd.f32 %v2403_v19, %v4855_v56  ;;  %v2472_v37 = vmul.f32 %v2466_v17, %v4873_v48 }
 0x363   : > { %v2405_v54 = vpop.f32.mrf.mxu1 }
 0x364   : > { %v2406_v20 = vadd.f32 %v2405_v54, %v4843_v15  ;;  %v2473_v43 = vmul.f32 %v2467_v28, %v4878_v18  ;;  %v2500_v5 = vadd.f32 %v2487_v0, %v2472_v37 }
 0x365   : > { %v2407_v29 = vpop.f32.mrf.mxu1 }
 0x366   : > { %v2451_v27 = vmin.f32 %v2406_v20, 4.1351666  ;;  %v2408_v55 = vadd.f32 %v2407_v29, %v4843_v15  ;;  %v2475_v16 = vmul.f32 %v2466_v17, %v2406_v20  ;;  %v2501_v23 = vadd.f32 %v2490_v10, %v2473_v43 }
 0x368   : > { %v2506_v60 = vmul.f32 1.442695, %v2451_v27  ;;  %v2452_v9 = vmin.f32 %v2408_v55, 4.1351666  ;;  %v2476_v32 = vmul.f32 %v2467_v28, %v2408_v55  ;;  %v2503_v1 = vadd.f32 %v2486_v12, %v2475_v16 }
 0x36a   : > { %3113 = vpow2.f32 %v2506_v60  ;;  %v2508_v42 = vmul.f32 1.442695, %v2452_v9  ;;  %v2504_v41 = vadd.f32 %v2489_v22, %v2476_v32 }
 0x36c   : > { %3115 = vpow2.f32 %v2508_v42 }
 0x377   : > { %v3114_v58 = vpop.eup %3113 }
 0x378   : > { %v2512_v14 = vmul.f32 0.5, %v3114_v58 }
 0x379   : > { %v3116_v30 = vpop.eup %3115 }
 0x37a   : > { %v2521_v26 = vmul.f32 %v2515_v46, %v2512_v14  ;;  %v2513_v51 = vmul.f32 0.5, %v3116_v30 }
 0x37c   : > { %v2539_v6 = vrot.slane %v2521_v26, 6  ;;  %v2522_v8 = vmul.f32 %v2516_v7, %v2513_v51  ;;  %v2462_v51 = vld [vmem:[%s4952_s6 + $0x28] sm:$0xf] }
 0x37d   : > { %v2492_v11 = vrot.slane %v2462_v51, 3 }
 0x37e   : > { %v2548_v61 = vsub.f32 %v2503_v1, %v2539_v6  ;;  %v2581_v24 = vadd.f32 %v2539_v6, %v2503_v1  ;;  %v2540_v62 = vrot.slane %v2522_v8, 6  ;;  %v2545_v53 = vsub.f32 %v2500_v5, %v2539_v6 }
 0x37f   : > { %v2578_v59 = vadd.f32 %v2539_v6, %v2500_v5 }
 0x380   : > { %v2554_v44 = vmax.f32 %v2548_v61, 0.0  ;;  %v2587_v40 = vmax.f32 %v2581_v24, 0.0  ;;  %v2549_v57 = vsub.f32 %v2504_v41, %v2540_v62  ;;  %v2582_v2 = vadd.f32 %v2540_v62, %v2504_v41 }
 0x381   : > { %v2546_v25 = vsub.f32 %v2501_v23, %v2540_v62  ;;  %v2551_v3 = vmax.f32 %v2545_v53, 0.0  ;;  %v2579_v21 = vadd.f32 %v2540_v62, %v2501_v23  ;;  %v2584_v52 = vmax.f32 %v2578_v59, 0.0 }
 0x382   : > { %v2564_v63 = vrot.slane %v2554_v44, 3  ;;  %v2597_v13 = vrot.slane %v2587_v40, 3  ;;  %v2555_v19 = vmax.f32 %v2549_v57, 0.0  ;;  %v2588_v54 = vmax.f32 %v2582_v2, 0.0 }
 0x383   : > { %v2552_v20 = vmax.f32 %v2546_v25, 0.0  ;;  %v2563_v29 = vrot.slane %v2551_v3, 3  ;;  %v2585_v27 = vmax.f32 %v2579_v21, 0.0  ;;  %v2596_v55 = vrot.slane %v2584_v52, 3 }
 0x384   : > { %v2567_v60 = vrot.slane %v2555_v19, 3  ;;  %v2600_v9 = vrot.slane %v2588_v54, 3 }
 0x385   : > { %v2565_v42 = vsel %vm2484_vm4, %v2563_v29, %v2564_v63  ;;  %v2566_v49 = vrot.slane %v2552_v20, 3  ;;  %v2598_v50 = vsel %vm2484_vm4, %v2596_v55, %v2597_v13  ;;  %v2599_v36 = vrot.slane %v2585_v27, 3 }
 0x386   : > { %v2575_v35 = vmin.f32 %v4885_v47, %v2565_v42  ;;  %v2608_v45 = vmin.f32 %v4885_v47, %v2598_v50 }
 0x387   : > { %v2568_v4 = vsel %vm2484_vm4, %v2566_v49, %v2567_v60  ;;  %v2601_v39 = vsel %vm2484_vm4, %v2599_v36, %v2600_v9 }
 0x388   : > { %v2576_v17 = vmin.f32 %v4885_v47, %v2568_v4  ;;  %v2609_v12 = vmin.f32 %v4885_v47, %v2601_v39  ;;  %v2614_v28 = vrot.slane %v2575_v35, 5  ;;  %v2623_v31 = vrot.slane %v2608_v45, 7 }
 0x38a   : > { %v2615_v46 = vrot.slane %v2576_v17, 5  ;;  %v2624_v22 = vrot.slane %v2609_v12, 7  ;;  %v2630_v38 = vsel %vm2629_vm6, %v4873_v48, %v2614_v28  ;;  %v2634_v58 = vsel %vm2633_vm7, %v2614_v28, %v2623_v31  ;;  %v2456_v48 = vld [vmem:[%s4952_s6 + $0x10] sm:$0x3f] }
 0x38b   : > { %2637 = vst [vmem:[%s4899_s9] sm:$0xff] %v2630_v38  ;;  %2640 = vst [vmem:[%s4899_s9 + $0x18] sm:$0x7f] %v2634_v58  ;;  %v2468_v34 = vrot.slane %v2456_v48, 5  ;;  %v2517_v43 = vrot.slane %v2456_v48, 7 }
 0x38c   : > { %v2631_v33 = vsel %vm2629_vm6, %v4878_v18, %v2615_v46  ;;  %v2635_v16 = vsel %vm2633_vm7, %v2615_v46, %v2624_v22  ;;  %v2459_v18 = vld [vmem:[%s4952_s6 + $0x10] sm:$0xc0] }
 0x38d   : > { %2638 = vst [vmem:[%s4899_s9 + $0x8] sm:$0xff] %v2631_v33  ;;  %2641 = vst [vmem:[%s4899_s9 + $0x20] sm:$0x7f] %v2635_v16 }
 0x3ab   : > { %v2444_v14 = vpop.f32.mrf.mxu1 }
 0x3ac   : > { %v2445_v10 = vadd.f32 %v2444_v14, %v4855_v56 }
 0x3ad   : > { %v3001_v7 = vpop.f32.mrf.mxu1 }
 0x3ae   : > { %v2474_v6 = vmul.f32 %v2468_v34, %v2445_v10 }
 0x3af   : > { %v2447_v37 = vpop.f32.mrf.mxu1 }
 0x3b0   : > { %v2448_v30 = vadd.f32 %v2447_v37, %v4843_v15  ;;  %v2491_v15 = vrot.slane %v2459_v18, 3 }
 0x3b1   : > { %v3002_v32 = vpop.f32.mrf.mxu1 }
 0x3b2   : > { %v2453_v0 = vmin.f32 %v2448_v30, 4.1351666  ;;  %v2477_v8 = vmul.f32 %v2468_v34, %v2448_v30  ;;  %v2493_v41 = vsel %vm2484_vm4, %v2491_v15, %v2492_v11 }
 0x3b3   : > { %v2502_v24 = vadd.f32 %v2493_v41, %v2474_v6 }
 0x3b4   : > { %v2510_v26 = vmul.f32 1.442695, %v2453_v0  ;;  %v2505_v62 = vadd.f32 %v2492_v11, %v2477_v8 }
 0x3b6   : > { %3117 = vpow2.f32 %v2510_v26 }
 0x3c3   : > { %v3118_v1 = vpop.eup %3117 }
 0x3c4   : > { %v2514_v5 = vmul.f32 0.5, %v3118_v1 }
 0x3c6   : > { %v2523_v61 = vmul.f32 %v2517_v43, %v2514_v5 }
 0x3c8   : > { %v2541_v53 = vrot.slane %v2523_v61, 6 }
 0x3ca   : > { %v2547_v23 = vsub.f32 %v2502_v24, %v2541_v53  ;;  %v2550_v59 = vsub.f32 %v2505_v62, %v2541_v53  ;;  %v2580_v44 = vadd.f32 %v2541_v53, %v2502_v24  ;;  %v2583_v40 = vadd.f32 %v2541_v53, %v2505_v62 }
 0x3cc   : > { %v2553_v57 = vmax.f32 %v2547_v23, 0.0  ;;  %v2556_v56 = vmax.f32 %v2550_v59, 0.0  ;;  %v2586_v2 = vmax.f32 %v2580_v44, 0.0  ;;  %v2589_v25 = vmax.f32 %v2583_v40, 0.0 }
 0x3ce   : > { %v2569_v3 = vrot.slane %v2553_v57, 3  ;;  %v2570_v21 = vrot.slane %v2556_v56, 3  ;;  %v2602_v52 = vrot.slane %v2586_v2, 3  ;;  %v2603_v63 = vrot.slane %v2589_v25, 3 }
 0x3d0   : > { %v2571_v13 = vsel %vm2484_vm4, %v2569_v3, %v2570_v21  ;;  %v2604_v19 = vsel %vm2484_vm4, %v2602_v52, %v2603_v63 }
 0x3d1   : > { %v2577_v54 = vmin.f32 %v4885_v47, %v2571_v13  ;;  %v2610_v20 = vmin.f32 %v4885_v47, %v2604_v19 }
 0x3d3   : > { %v2616_v29 = vrot.slane %v2577_v54, 5  ;;  %v2625_v27 = vrot.slane %v2610_v20, 7 }
 0x3d5   : > { %v2632_v55 = vsel %vm2629_vm6, %v2445_v10, %v2616_v29  ;;  %v2636_v60 = vsel %vm2633_vm7, %v2616_v29, %v2625_v27 }
 0x3d6   : > { %2639 = vst [vmem:[%s4899_s9 + $0x10] sm:$0xff] %v2632_v55  ;;  %2642 = vst [vmem:[%s4899_s9 + $0x28] sm:$0x7f] %v2636_v60 }
 0x3d7 PF: > { %p23_p0 = scmp.ge.s32.totalorder %s3276_s10, 4   ;;  %s5067_s29 = smov %s3191_s30 }
 0x3d8   : > { %s5068_s30 = smov %s3195_s0  ;;  %s5069_s0 = smov %s3286_s13 }
 0x3d9   : > { %s5070_s8 = smov %s3276_s10  ;;  %25 = sbr.rel (!%p23_p0) target bundleno = 18 (0x12), region = 99 }
 0x3de   :  { %2664 = vsyncpa [#allocation6], 1 }
 0x3df   :  { %2666 = vsyncpa [#allocation6 + $0x1], 1 }

</bundles_post_ra>
